<compile_context>
chip_gen: v5e
topology: v5e:2x2
jax: 0.10.0
libtpu: 0.0.40
codegen_flags: <defaults>
</compile_context>

<pallas_src>
import functools

import jax
import jax.numpy as jnp
from jax import lax
from jax.experimental import pallas as pl
from jax.experimental.pallas import tpu as pltpu

LANE = 128
_BN_EPS = 1e-5


def _round_up(x, m):
    return ((x + m - 1) // m) * m


def _pad_axis(a, axis, target):
    if a.shape[axis] == target:
        return a
    cfg = [(0, 0)] * a.ndim
    cfg[axis] = (0, target - a.shape[axis])
    return jnp.pad(a, cfg)


def _fold_bn(gamma, beta, mean, var, conv_bias=None, eps=_BN_EPS):
    """Inference-mode BN folded into a per-channel (scale, shift)."""
    scale = gamma / jnp.sqrt(var + eps)
    if conv_bias is None:
        shift = beta - scale * mean
    else:
        shift = beta + scale * (conv_bias - mean)
    return scale, shift


# ----------------------- backend capability probes ----------------------------
@functools.lru_cache(maxsize=None)
def _vmem_limit_bytes():
    """Generation-aware scoped-VMEM limit (v7x has 64 MiB/TC, v5e/v6e 128 MiB)."""
    try:
        cap = int(pltpu.get_tpu_info().vmem_capacity_bytes)
    except Exception:
        cap = 64 * 1024 * 1024  # conservative: assume v7x per-core capacity
    # Leave headroom for compiler-internal scratch and double-buffered act blocks.
    return max(32 * 1024 * 1024, min(int(0.60 * cap), 96 * 1024 * 1024))


@functools.lru_cache(maxsize=None)
def _single_buffer_weights_supported():
    """Probe whether pipeline_mode=pl.Buffered(1) compiles; fall back silently."""
    try:
        spec = pl.BlockSpec((8, 128), lambda i: (0, 0), pipeline_mode=pl.Buffered(1))

        def _k(x_ref, o_ref):
            o_ref[...] = x_ref[...] + 1.0

        fn = pl.pallas_call(
            _k,
            out_shape=jax.ShapeDtypeStruct((8, 128), jnp.float32),
            grid_spec=pltpu.PrefetchScalarGridSpec(
                num_scalar_prefetch=0, grid=(1,),
                in_specs=[spec],
                out_specs=pl.BlockSpec((8, 128), lambda i: (0, 0))),
        )
        jax.jit(fn).lower(jnp.zeros((8, 128), jnp.float32)).compile()
        return True
    except Exception:
        return False


def _resident_spec(shape, single_buffer):
    """BlockSpec for VMEM-resident weights/biases (constant block index)."""
    index_map = lambda n, _shape=shape: (0,) * len(_shape)
    if single_buffer:
        return pl.BlockSpec(shape, index_map, pipeline_mode=pl.Buffered(1))
    return pl.BlockSpec(shape, index_map)


# ------------------------------- the kernel -----------------------------------
def _make_bottleneck_kernel(H, W, Ho, Wo, stride, dilation, has_downsample, w_off):
    pad = dilation
    f32 = jnp.float32
    bf16 = jnp.bfloat16

    def kernel(*refs):
        if has_downsample:
            (x_ref, w1_ref, b1_ref, w2_ref, b2_ref, w3_ref, b3_ref,
             wd_ref, bd_ref, o_ref, t1p_ref) = refs
        else:
            (x_ref, w1_ref, b1_ref, w2_ref, b2_ref, w3_ref, b3_ref,
             o_ref, t1p_ref) = refs
            wd_ref = bd_ref = None

        cin = x_ref.shape[-1]
        cmid = w1_ref.shape[-1]
        cout = w3_ref.shape[-1]
        Wh = t1p_ref.shape[1]

        # ---- Stage 1: 1x1 conv (+ folded-BN bias) + ReLU; bf16 operands, f32 acc.
        xm = x_ref[0].reshape(H * W, cin)                      # f32 (for residual)
        t1 = jnp.dot(xm.astype(bf16), w1_ref[...],
                     preferred_element_type=f32) + b1_ref[...]
        t1 = jnp.maximum(t1, 0.0)

        # ---- Stage-2 prep: only the halo *ring* is re-zeroed each step
        # (megacore-safe, ~pad rows/cols instead of a full-buffer memset); the
        # interior lands at a tile-aligned W offset so it's an unmasked store.
        t1p_ref[pl.ds(0, pad), :, :] = jnp.zeros((pad, Wh, cmid), bf16)
        t1p_ref[pl.ds(pad + H, pad), :, :] = jnp.zeros((pad, Wh, cmid), bf16)
        t1p_ref[pl.ds(pad, H), pl.ds(w_off - pad, pad), :] = (
            jnp.zeros((H, pad, cmid), bf16))
        t1p_ref[pl.ds(pad, H), pl.ds(w_off + W, pad), :] = (
            jnp.zeros((H, pad, cmid), bf16))
        t1p_ref[pl.ds(pad, H), pl.ds(w_off, W), :] = (
            t1.reshape(H, W, cmid).astype(bf16))

        # ---- Stage 2: 3x3 conv as 3 fat-K MXU matmuls (horizontal taps of each
        # kernel row concatenated along K -> K = 3*cmid).  No im2col in HBM, no
        # zeros-init accumulator.
        def window(dy, dx):
            r0 = dy * dilation
            c0 = w_off - pad + dx * dilation
            if stride == 1:
                return t1p_ref[pl.ds(r0, Ho), pl.ds(c0, Wo), :]
            return t1p_ref[pl.ds(r0, Ho, stride=stride),
                           pl.ds(c0, Wo, stride=stride), :]

        acc2 = None
        for dy in range(3):
            win = jnp.concatenate([window(dy, dx) for dx in range(3)], axis=-1)
            part = jnp.dot(win.reshape(Ho * Wo, 3 * cmid), w2_ref[dy],
                           preferred_element_type=f32)
            acc2 = part if acc2 is None else acc2 + part
        t2 = jnp.maximum(acc2 + b2_ref[...], 0.0)              # f32 epilogue

        # ---- Stage 3: 1x1 expansion (+ folded-BN bias), residual add and final
        # ReLU fused into the f32 epilogue.
        y = jnp.dot(t2.astype(bf16), w3_ref[...],
                    preferred_element_type=f32) + b3_ref[...]
        if has_downsample:
            if stride == 1:
                xs = xm
            else:
                xs = x_ref[0, pl.ds(0, Ho, stride=stride),
                           pl.ds(0, Wo, stride=stride), :].reshape(Ho * Wo, cin)
            shortcut = (jnp.dot(xs.astype(bf16), wd_ref[...],
                                preferred_element_type=f32) + bd_ref[...])
        else:
            shortcut = xm                                      # exact f32 identity

        out = jnp.maximum(y + shortcut, 0.0)
        o_ref[0] = out.reshape(Ho, Wo, cout).astype(o_ref.dtype)

    return kernel


# ------------------------------- wrappers --------------------------------------
@functools.partial(jax.jit, static_argnames=("stride", "dilation",
                                             "single_buffer", "vmem_limit"))
def _bottleneck_nhwc_jit(x_nhwc, params, *, stride, dilation,
                         single_buffer, vmem_limit):
    N, H, W, in_ch = x_nhwc.shape
    width = params["conv1_w"].shape[0]
    out_ch_final = params["conv3_w"].shape[0]
    has_ds = "ds_conv_w" in params
    if stride != 1 and not has_ds:
        raise ValueError("stride > 1 requires the downsample branch "
                         "(as in the PyTorch Bottleneck spec)")
    Ho = (H - 1) // stride + 1
    Wo = (W - 1) // stride + 1
    pad = dilation
    w_off = _round_up(pad, 16)           # tile-aligned interior offset in the halo

    cin_p = _round_up(in_ch, LANE)
    cmid_p = _round_up(width, LANE)
    cout_p = _round_up(out_ch_final, LANE)

    # --- Fold BN into weight columns + f32 bias vectors; weights cast to bf16.
    s1, b1 = _fold_bn(*params["bn1"])
    s2, b2 = _fold_bn(*params["bn2"], params["conv2_b"])
    s3, b3 = _fold_bn(*params["bn3"])
    bf16 = jnp.bfloat16

    w1 = params["conv1_w"].reshape(width, in_ch).T * s1[None, :]        # (Cin, Cmid)
    w1 = _pad_axis(_pad_axis(w1, 0, cin_p), 1, cmid_p).astype(bf16)

    w2t = (jnp.transpose(params["conv2_w"], (2, 3, 1, 0))               # (3,3,Cin,Cout)
           * s2[None, None, None, :])
    w2 = _pad_axis(_pad_axis(w2t, 2, cmid_p), 3, cmid_p)                # (3,3,cmid_p,cmid_p)
    w2 = w2.reshape(3, 3 * cmid_p, cmid_p).astype(bf16)                 # fat-K layout

    w3 = params["conv3_w"].reshape(out_ch_final, width).T * s3[None, :]  # (Cmid, Cout)
    w3 = _pad_axis(_pad_axis(w3, 0, cmid_p), 1, cout_p).astype(bf16)

    xp = _pad_axis(x_nhwc, 3, cin_p)     # lane-dense channel padding (zeros exact)

    args = [xp,
            w1, _pad_axis(b1[None, :], 1, cmid_p),
            w2, _pad_axis(b2[None, :], 1, cmid_p),
            w3, _pad_axis(b3[None, :], 1, cout_p)]
    in_specs = [
        pl.BlockSpec((1, H, W, cin_p), lambda n: (n, 0, 0, 0)),
        _resident_spec((cin_p, cmid_p), single_buffer),
        _resident_spec((1, cmid_p), single_buffer),
        _resident_spec((3, 3 * cmid_p, cmid_p), single_buffer),
        _resident_spec((1, cmid_p), single_buffer),
        _resident_spec((cmid_p, cout_p), single_buffer),
        _resident_spec((1, cout_p), single_buffer),
    ]
    if has_ds:
        sd, bd = _fold_bn(*params["ds_bn"])
        wd = params["ds_conv_w"].reshape(out_ch_final, in_ch).T * sd[None, :]
        wd = _pad_axis(_pad_axis(wd, 0, cin_p), 1, cout_p).astype(bf16)
        args += [wd, _pad_axis(bd[None, :], 1, cout_p)]
        in_specs += [_resident_spec((cin_p, cout_p), single_buffer),
                     _resident_spec((1, cout_p), single_buffer)]

    out_specs = pl.BlockSpec((1, Ho, Wo, cout_p), lambda n: (n, 0, 0, 0))
    out_shape = jax.ShapeDtypeStruct((N, Ho, Wo, cout_p), x_nhwc.dtype)

    # Padded stage-1 activation lives in a bf16 VMEM halo scratch; interior is
    # stored at W offset `w_off`, ring columns/rows hold the conv zero padding.
    Wh = w_off + _round_up(W + pad, 16)
    scratch_shapes = [pltpu.VMEM((H + 2 * pad, Wh, cmid_p), jnp.bfloat16)]

    itemsize_out = jnp.dtype(x_nhwc.dtype).itemsize
    flops = (2 * N * H * W * cin_p * cmid_p
             + 2 * N * Ho * Wo * 9 * cmid_p * cmid_p
             + 2 * N * Ho * Wo * cmid_p * cout_p)
    if has_ds:
        flops += 2 * N * Ho * Wo * cin_p * cout_p
    bytes_accessed = (sum(int(a.size) * jnp.dtype(a.dtype).itemsize for a in args)
                      + N * Ho * Wo * cout_p * itemsize_out)

    kernel = _make_bottleneck_kernel(H, W, Ho, Wo, stride, dilation, has_ds, w_off)
    return pl.pallas_call(
        kernel,
        out_shape=out_shape,
        grid_spec=pltpu.PrefetchScalarGridSpec(
            num_scalar_prefetch=0,
            grid=(N,),
            in_specs=in_specs,
            out_specs=out_specs,
            scratch_shapes=scratch_shapes),
        compiler_params=pltpu.CompilerParams(
            dimension_semantics=("parallel",),       # shard batch across TCs (v7x)
            vmem_limit_bytes=vmem_limit),
        cost_estimate=pl.CostEstimate(
            flops=int(flops), transcendentals=0,
            bytes_accessed=int(bytes_accessed)),
    )(*args)


def bottleneck_pallas_nhwc(x_nhwc, params, *, stride=1, dilation=1):
    """NHWC (channel-padded to 128) in / out — use this when chaining blocks so
    there are no per-block NCHW<->NHWC transposes or channel-slice copies."""
    return _bottleneck_nhwc_jit(
        x_nhwc, params, stride=stride, dilation=dilation,
        single_buffer=_single_buffer_weights_supported(),
        vmem_limit=_vmem_limit_bytes())


def bottleneck_pallas(x_nchw, params, *, stride=1, dilation=1):
    """Forward pass of the PyTorch Bottleneck module (eval-mode BN), NCHW in/out."""
    out_ch_final = params["conv3_w"].shape[0]
    x_nhwc = jnp.transpose(x_nchw, (0, 2, 3, 1))     # single boundary transpose
    y = bottleneck_pallas_nhwc(x_nhwc, params, stride=stride, dilation=dilation)
    y = y[..., :out_ch_final]                        # drop channel padding
    return jnp.transpose(y, (0, 3, 1, 2))            # back to NCHW


# ----------------------------- pure-JAX reference -----------------------------
def _bn_eval_nchw(x, bn, eps=_BN_EPS):
    gamma, beta, mean, var = bn
    inv = gamma / jnp.sqrt(var + eps)
    return x * inv[None, :, None, None] + (beta - mean * inv)[None, :, None, None]


def _conv_nchw(x, w, stride=1, padding=0, dilation=1, bias=None):
    y = lax.conv_general_dilated(
        x, w, window_strides=(stride, stride),
        padding=((padding, padding), (padding, padding)),
        rhs_dilation=(dilation, dilation),
        dimension_numbers=("NCHW", "OIHW", "NCHW"),
        precision=lax.Precision.HIGHEST)
    if bias is not None:
        y = y + bias[None, :, None, None]
    return y


def bottleneck_reference(x, params, *, stride=1, dilation=1):
    out = jax.nn.relu(_bn_eval_nchw(_conv_nchw(x, params["conv1_w"]), params["bn1"]))
    out = jax.nn.relu(_bn_eval_nchw(
        _conv_nchw(out, params["conv2_w"], stride, dilation, dilation,
                   params["conv2_b"]), params["bn2"]))
    out = _bn_eval_nchw(_conv_nchw(out, params["conv3_w"]), params["bn3"])
    if "ds_conv_w" in params:
        shortcut = _bn_eval_nchw(_conv_nchw(x, params["ds_conv_w"], stride),
                                 params["ds_bn"])
    else:
        shortcut = x
    return jax.nn.relu(out + shortcut)


# ----------------------------------- demo -------------------------------------
def _make_params(key, in_ch, width, stride):
    out_ch_final = 4 * width
    keys = jax.random.split(key, 10)

    def conv_w(k, shape):
        return 0.1 * jax.random.normal(k, shape, jnp.float32)

    def bn_params(k, c):
        k1, k2, k3, k4 = jax.random.split(k, 4)
        gamma = 1.0 + 0.1 * jax.random.normal(k1, (c,), jnp.float32)
        beta = 0.1 * jax.random.normal(k2, (c,), jnp.float32)
        mean = 0.1 * jax.random.normal(k3, (c,), jnp.float32)
        var = 0.5 + jax.random.uniform(k4, (c,), jnp.float32)
        return (gamma, beta, mean, var)

    p = {
        "conv1_w": conv_w(keys[0], (width, in_ch, 1, 1)),
        "bn1": bn_params(keys[1], width),
        "conv2_w": conv_w(keys[2], (width, width, 3, 3)),
        "conv2_b": 0.1 * jax.random.normal(keys[3], (width,), jnp.float32),
        "bn2": bn_params(keys[4], width),
        "conv3_w": conv_w(keys[5], (out_ch_final, width, 1, 1)),
        "bn3": bn_params(keys[6], out_ch_final),
    }
    if in_ch != out_ch_final or stride != 1:
        p["ds_conv_w"] = conv_w(keys[7], (out_ch_final, in_ch, 1, 1))
        p["ds_bn"] = bn_params(keys[8], out_ch_final)
    return p


if __name__ == "__main__":
    root = jax.random.PRNGKey(0)

    configs = [
        # identity shortcut (in_ch == expansion*width, stride 1)
        dict(in_ch=128, width=32, stride=1, dilation=1, H=16, W=16),
        # 1x1-conv + BN downsample shortcut, dilated 3x3
        dict(in_ch=64, width=32, stride=1, dilation=2, H=16, W=16),
    ]

    all_ok = True
    for cfg in configs:
        root, kx, kp = jax.random.split(root, 3)
        x = jax.random.normal(kx, (2, cfg["in_ch"], cfg["H"], cfg["W"]), jnp.float32)
        params = _make_params(kp, cfg["in_ch"], cfg["width"], cfg["stride"])

        y = bottleneck_pallas(x, params, stride=cfg["stride"], dilation=cfg["dilation"])
        y = jax.block_until_ready(y)

        y_ref = bottleneck_reference(x, params, stride=cfg["stride"],
                                     dilation=cfg["dilation"])
        all_ok = all_ok and bool(jnp.allclose(y, y_ref, rtol=3e-2, atol=3e-2))

    if not all_ok:
        raise SystemExit("Pallas bottleneck does not match the reference")
    print("KERNEL_OK")
</pallas_src>

<mosaic_0001>
module attributes {stable_mosaic.version = 11 : i64} {
  func.func @kernel(%arg0: i32, %arg1: memref<1x16x16x128xf32, #tpu.memory_space<vmem>>, %arg2: memref<128x128xbf16, #tpu.memory_space<vmem>>, %arg3: memref<1x128xf32, #tpu.memory_space<vmem>>, %arg4: memref<3x384x128xbf16, #tpu.memory_space<vmem>>, %arg5: memref<1x128xf32, #tpu.memory_space<vmem>>, %arg6: memref<128x128xbf16, #tpu.memory_space<vmem>>, %arg7: memref<1x128xf32, #tpu.memory_space<vmem>>, %arg8: memref<1x16x16x128xf32, #tpu.memory_space<vmem>>, %arg9: memref<18x48x128xbf16, #tpu.memory_space<vmem>>) attributes {dimension_semantics = [#tpu.dimension_semantics<parallel>], iteration_bounds = array<i64: 2>, scalar_prefetch = 0 : i64, scratch_operands = 1 : i64, tpu.core_type = #tpu.core_type<tc>, window_params = [{transform_indices = @transform_0, window_bounds = array<i64: 1, 16, 16, 128>}, {pipeline_mode = #tpu.pipeline_mode<synchronous>, transform_indices = @transform_1, window_bounds = array<i64: 128, 128>}, {pipeline_mode = #tpu.pipeline_mode<synchronous>, transform_indices = @transform_2, window_bounds = array<i64: 1, 128>}, {pipeline_mode = #tpu.pipeline_mode<synchronous>, transform_indices = @transform_3, window_bounds = array<i64: 3, 384, 128>}, {pipeline_mode = #tpu.pipeline_mode<synchronous>, transform_indices = @transform_4, window_bounds = array<i64: 1, 128>}, {pipeline_mode = #tpu.pipeline_mode<synchronous>, transform_indices = @transform_5, window_bounds = array<i64: 128, 128>}, {pipeline_mode = #tpu.pipeline_mode<synchronous>, transform_indices = @transform_6, window_bounds = array<i64: 1, 128>}, {transform_indices = @transform_7, window_bounds = array<i64: 1, 16, 16, 128>}]} {
    %c0 = arith.constant 0 : index
    %c0_0 = arith.constant 0 : index
    %c0_1 = arith.constant 0 : index
    %c0_2 = arith.constant 0 : index
    %0 = vector.load %arg1[%c0, %c0_0, %c0_1, %c0_2] : memref<1x16x16x128xf32, #tpu.memory_space<vmem>>, vector<1x16x16x128xf32>
    %1 = vector.shape_cast %0 : vector<1x16x16x128xf32> to vector<16x16x128xf32>
    %2 = vector.shape_cast %1 : vector<16x16x128xf32> to vector<256x128xf32>
    %3 = arith.truncf %2 : vector<256x128xf32> to vector<256x128xbf16>
    %c0_3 = arith.constant 0 : index
    %c0_4 = arith.constant 0 : index
    %4 = vector.load %arg2[%c0_3, %c0_4] : memref<128x128xbf16, #tpu.memory_space<vmem>>, vector<128x128xbf16>
    %cst = arith.constant dense<0.000000e+00> : vector<256x128xf32>
    %5 = tpu.matmul %3, %4, %cst {dimension_numbers = #tpu.dot_dimension_numbers<[1], [0], [0], [1], [0, 0, 1, 1], [], []>} : vector<256x128xbf16>, vector<128x128xbf16>, vector<256x128xf32> -> vector<256x128xf32>
    %c0_5 = arith.constant 0 : index
    %c0_6 = arith.constant 0 : index
    %6 = vector.load %arg3[%c0_5, %c0_6] : memref<1x128xf32, #tpu.memory_space<vmem>>, vector<1x128xf32>
    %7 = vector.broadcast %6 : vector<1x128xf32> to vector<256x128xf32>
    %8 = arith.addf %5, %7 : vector<256x128xf32>
    %cst_7 = arith.constant 0.000000e+00 : f32
    %9 = vector.broadcast %cst_7 : f32 to vector<256x128xf32>
    %10 = arith.maximumf %8, %9 : vector<256x128xf32>
    %cst_8 = arith.constant 0.000000e+00 : bf16
    %11 = vector.broadcast %cst_8 : bf16 to vector<1x48x128xbf16>
    %c0_9 = arith.constant 0 : index
    %c0_10 = arith.constant 0 : index
    %c0_11 = arith.constant 0 : index
    %12 = vector.load %arg9[%c0_9, %c0_10, %c0_11] : memref<18x48x128xbf16, #tpu.memory_space<vmem>>, vector<1x48x128xbf16>
    tpu.vector_store %arg9[%c0_9, %c0_10, %c0_11], %11 {strides = array<i32>} : memref<18x48x128xbf16, #tpu.memory_space<vmem>>, vector<1x48x128xbf16>,
    %cst_12 = arith.constant 0.000000e+00 : bf16
    %13 = vector.broadcast %cst_12 : bf16 to vector<1x48x128xbf16>
    %c17 = arith.constant 17 : index
    %c0_13 = arith.constant 0 : index
    %c0_14 = arith.constant 0 : index
    %14 = vector.load %arg9[%c17, %c0_13, %c0_14] : memref<18x48x128xbf16, #tpu.memory_space<vmem>>, vector<1x48x128xbf16>
    tpu.vector_store %arg9[%c17, %c0_13, %c0_14], %13 {strides = array<i32>} : memref<18x48x128xbf16, #tpu.memory_space<vmem>>, vector<1x48x128xbf16>,
    %cst_15 = arith.constant 0.000000e+00 : bf16
    %15 = vector.broadcast %cst_15 : bf16 to vector<16x1x128xbf16>
    %c1 = arith.constant 1 : index
    %c15 = arith.constant 15 : index
    %c0_16 = arith.constant 0 : index
    %16 = vector.load %arg9[%c1, %c15, %c0_16] : memref<18x48x128xbf16, #tpu.memory_space<vmem>>, vector<16x1x128xbf16>
    tpu.vector_store %arg9[%c1, %c15, %c0_16], %15 {strides = array<i32>} : memref<18x48x128xbf16, #tpu.memory_space<vmem>>, vector<16x1x128xbf16>,
    %cst_17 = arith.constant 0.000000e+00 : bf16
    %17 = vector.broadcast %cst_17 : bf16 to vector<16x1x128xbf16>
    %c1_18 = arith.constant 1 : index
    %c32 = arith.constant 32 : index
    %c0_19 = arith.constant 0 : index
    %18 = vector.load %arg9[%c1_18, %c32, %c0_19] : memref<18x48x128xbf16, #tpu.memory_space<vmem>>, vector<16x1x128xbf16>
    tpu.vector_store %arg9[%c1_18, %c32, %c0_19], %17 {strides = array<i32>} : memref<18x48x128xbf16, #tpu.memory_space<vmem>>, vector<16x1x128xbf16>,
    %19 = vector.shape_cast %10 : vector<256x128xf32> to vector<16x16x128xf32>
    %20 = arith.truncf %19 : vector<16x16x128xf32> to vector<16x16x128xbf16>
    %c1_20 = arith.constant 1 : index
    %c16 = arith.constant 16 : index
    %c0_21 = arith.constant 0 : index
    %21 = vector.load %arg9[%c1_20, %c16, %c0_21] : memref<18x48x128xbf16, #tpu.memory_space<vmem>>, vector<16x16x128xbf16>
    tpu.vector_store %arg9[%c1_20, %c16, %c0_21], %20 {strides = array<i32>} : memref<18x48x128xbf16, #tpu.memory_space<vmem>>, vector<16x16x128xbf16>,
    %c0_22 = arith.constant 0 : index
    %c15_23 = arith.constant 15 : index
    %c0_24 = arith.constant 0 : index
    %22 = vector.load %arg9[%c0_22, %c15_23, %c0_24] : memref<18x48x128xbf16, #tpu.memory_space<vmem>>, vector<16x16x128xbf16>
    %c0_25 = arith.constant 0 : index
    %c16_26 = arith.constant 16 : index
    %c0_27 = arith.constant 0 : index
    %23 = vector.load %arg9[%c0_25, %c16_26, %c0_27] : memref<18x48x128xbf16, #tpu.memory_space<vmem>>, vector<16x16x128xbf16>
    %c0_28 = arith.constant 0 : index
    %c17_29 = arith.constant 17 : index
    %c0_30 = arith.constant 0 : index
    %24 = vector.load %arg9[%c0_28, %c17_29, %c0_30] : memref<18x48x128xbf16, #tpu.memory_space<vmem>>, vector<16x16x128xbf16>
    %25 = tpu.concatenate %22, %23, %24 in 2 : vector<16x16x128xbf16>, vector<16x16x128xbf16>, vector<16x16x128xbf16> -> vector<16x16x384xbf16>
    %26 = vector.shape_cast %25 : vector<16x16x384xbf16> to vector<256x384xbf16>
    %c0_31 = arith.constant 0 : index
    %c0_32 = arith.constant 0 : index
    %c0_33 = arith.constant 0 : index
    %27 = vector.load %arg4[%c0_31, %c0_32, %c0_33] : memref<3x384x128xbf16, #tpu.memory_space<vmem>>, vector<1x384x128xbf16>
    %28 = vector.shape_cast %27 : vector<1x384x128xbf16> to vector<384x128xbf16>
    %cst_34 = arith.constant dense<0.000000e+00> : vector<256x128xf32>
    %29 = tpu.matmul %26, %28, %cst_34 {dimension_numbers = #tpu.dot_dimension_numbers<[1], [0], [0], [1], [0, 0, 1, 1], [], []>} : vector<256x384xbf16>, vector<384x128xbf16>, vector<256x128xf32> -> vector<256x128xf32>
    %c1_35 = arith.constant 1 : index
    %c15_36 = arith.constant 15 : index
    %c0_37 = arith.constant 0 : index
    %30 = vector.load %arg9[%c1_35, %c15_36, %c0_37] : memref<18x48x128xbf16, #tpu.memory_space<vmem>>, vector<16x16x128xbf16>
    %c1_38 = arith.constant 1 : index
    %c16_39 = arith.constant 16 : index
    %c0_40 = arith.constant 0 : index
    %31 = vector.load %arg9[%c1_38, %c16_39, %c0_40] : memref<18x48x128xbf16, #tpu.memory_space<vmem>>, vector<16x16x128xbf16>
    %c1_41 = arith.constant 1 : index
    %c17_42 = arith.constant 17 : index
    %c0_43 = arith.constant 0 : index
    %32 = vector.load %arg9[%c1_41, %c17_42, %c0_43] : memref<18x48x128xbf16, #tpu.memory_space<vmem>>, vector<16x16x128xbf16>
    %33 = tpu.concatenate %30, %31, %32 in 2 : vector<16x16x128xbf16>, vector<16x16x128xbf16>, vector<16x16x128xbf16> -> vector<16x16x384xbf16>
    %34 = vector.shape_cast %33 : vector<16x16x384xbf16> to vector<256x384xbf16>
    %c1_44 = arith.constant 1 : index
    %c0_45 = arith.constant 0 : index
    %c0_46 = arith.constant 0 : index
    %35 = vector.load %arg4[%c1_44, %c0_45, %c0_46] : memref<3x384x128xbf16, #tpu.memory_space<vmem>>, vector<1x384x128xbf16>
    %36 = vector.shape_cast %35 : vector<1x384x128xbf16> to vector<384x128xbf16>
    %cst_47 = arith.constant dense<0.000000e+00> : vector<256x128xf32>
    %37 = tpu.matmul %34, %36, %cst_47 {dimension_numbers = #tpu.dot_dimension_numbers<[1], [0], [0], [1], [0, 0, 1, 1], [], []>} : vector<256x384xbf16>, vector<384x128xbf16>, vector<256x128xf32> -> vector<256x128xf32>
    %38 = arith.addf %29, %37 : vector<256x128xf32>
    %c2 = arith.constant 2 : index
    %c15_48 = arith.constant 15 : index
    %c0_49 = arith.constant 0 : index
    %39 = vector.load %arg9[%c2, %c15_48, %c0_49] : memref<18x48x128xbf16, #tpu.memory_space<vmem>>, vector<16x16x128xbf16>
    %c2_50 = arith.constant 2 : index
    %c16_51 = arith.constant 16 : index
    %c0_52 = arith.constant 0 : index
    %40 = vector.load %arg9[%c2_50, %c16_51, %c0_52] : memref<18x48x128xbf16, #tpu.memory_space<vmem>>, vector<16x16x128xbf16>
    %c2_53 = arith.constant 2 : index
    %c17_54 = arith.constant 17 : index
    %c0_55 = arith.constant 0 : index
    %41 = vector.load %arg9[%c2_53, %c17_54, %c0_55] : memref<18x48x128xbf16, #tpu.memory_space<vmem>>, vector<16x16x128xbf16>
    %42 = tpu.concatenate %39, %40, %41 in 2 : vector<16x16x128xbf16>, vector<16x16x128xbf16>, vector<16x16x128xbf16> -> vector<16x16x384xbf16>
    %43 = vector.shape_cast %42 : vector<16x16x384xbf16> to vector<256x384xbf16>
    %c2_56 = arith.constant 2 : index
    %c0_57 = arith.constant 0 : index
    %c0_58 = arith.constant 0 : index
    %44 = vector.load %arg4[%c2_56, %c0_57, %c0_58] : memref<3x384x128xbf16, #tpu.memory_space<vmem>>, vector<1x384x128xbf16>
    %45 = vector.shape_cast %44 : vector<1x384x128xbf16> to vector<384x128xbf16>
    %cst_59 = arith.constant dense<0.000000e+00> : vector<256x128xf32>
    %46 = tpu.matmul %43, %45, %cst_59 {dimension_numbers = #tpu.dot_dimension_numbers<[1], [0], [0], [1], [0, 0, 1, 1], [], []>} : vector<256x384xbf16>, vector<384x128xbf16>, vector<256x128xf32> -> vector<256x128xf32>
    %47 = arith.addf %38, %46 : vector<256x128xf32>
    %c0_60 = arith.constant 0 : index
    %c0_61 = arith.constant 0 : index
    %48 = vector.load %arg5[%c0_60, %c0_61] : memref<1x128xf32, #tpu.memory_space<vmem>>, vector<1x128xf32>
    %49 = vector.broadcast %48 : vector<1x128xf32> to vector<256x128xf32>
    %50 = arith.addf %47, %49 : vector<256x128xf32>
    %cst_62 = arith.constant 0.000000e+00 : f32
    %51 = vector.broadcast %cst_62 : f32 to vector<256x128xf32>
    %52 = arith.maximumf %50, %51 : vector<256x128xf32>
    %53 = arith.truncf %52 : vector<256x128xf32> to vector<256x128xbf16>
    %c0_63 = arith.constant 0 : index
    %c0_64 = arith.constant 0 : index
    %54 = vector.load %arg6[%c0_63, %c0_64] : memref<128x128xbf16, #tpu.memory_space<vmem>>, vector<128x128xbf16>
    %cst_65 = arith.constant dense<0.000000e+00> : vector<256x128xf32>
    %55 = tpu.matmul %53, %54, %cst_65 {dimension_numbers = #tpu.dot_dimension_numbers<[1], [0], [0], [1], [0, 0, 1, 1], [], []>} : vector<256x128xbf16>, vector<128x128xbf16>, vector<256x128xf32> -> vector<256x128xf32>
    %c0_66 = arith.constant 0 : index
    %c0_67 = arith.constant 0 : index
    %56 = vector.load %arg7[%c0_66, %c0_67] : memref<1x128xf32, #tpu.memory_space<vmem>>, vector<1x128xf32>
    %57 = vector.broadcast %56 : vector<1x128xf32> to vector<256x128xf32>
    %58 = arith.addf %55, %57 : vector<256x128xf32>
    %59 = arith.addf %58, %2 : vector<256x128xf32>
    %cst_68 = arith.constant 0.000000e+00 : f32
    %60 = vector.broadcast %cst_68 : f32 to vector<256x128xf32>
    %61 = arith.maximumf %59, %60 : vector<256x128xf32>
    %62 = vector.shape_cast %61 : vector<256x128xf32> to vector<16x16x128xf32>
    %c0_69 = arith.constant 0 : index
    %c0_70 = arith.constant 0 : index
    %c0_71 = arith.constant 0 : index
    %c0_72 = arith.constant 0 : index
    %63 = vector.load %arg8[%c0_69, %c0_70, %c0_71, %c0_72] : memref<1x16x16x128xf32, #tpu.memory_space<vmem>>, vector<1x16x16x128xf32>
    %64 = vector.shape_cast %63 : vector<1x16x16x128xf32> to vector<16x16x128xf32>
    %65 = vector.shape_cast %62 : vector<16x16x128xf32> to vector<1x16x16x128xf32>
    tpu.vector_store %arg8[%c0_69, %c0_70, %c0_71, %c0_72], %65 {strides = array<i32>} : memref<1x16x16x128xf32, #tpu.memory_space<vmem>>, vector<1x16x16x128xf32>,
    return
  }
  func.func @transform_0(%arg0: i32) -> (i32, i32, i32, i32) {
    %c0_i32 = arith.constant 0 : i32
    %c0_i32_0 = arith.constant 0 : i32
    %c0_i32_1 = arith.constant 0 : i32
    %c0_i32_2 = arith.constant 0 : i32
    return %arg0, %c0_i32, %c0_i32_0, %c0_i32_1 : i32, i32, i32, i32
  }
  func.func @transform_1(%arg0: i32) -> (i32, i32) {
    %c0_i32 = arith.constant 0 : i32
    %c0_i32_0 = arith.constant 0 : i32
    %c0_i32_1 = arith.constant 0 : i32
    return %c0_i32, %c0_i32_0 : i32, i32
  }
  func.func @transform_2(%arg0: i32) -> (i32, i32) {
    %c0_i32 = arith.constant 0 : i32
    %c0_i32_0 = arith.constant 0 : i32
    %c0_i32_1 = arith.constant 0 : i32
    return %c0_i32, %c0_i32_0 : i32, i32
  }
  func.func @transform_3(%arg0: i32) -> (i32, i32, i32) {
    %c0_i32 = arith.constant 0 : i32
    %c0_i32_0 = arith.constant 0 : i32
    %c0_i32_1 = arith.constant 0 : i32
    %c0_i32_2 = arith.constant 0 : i32
    return %c0_i32, %c0_i32_0, %c0_i32_1 : i32, i32, i32
  }
  func.func @transform_4(%arg0: i32) -> (i32, i32) {
    %c0_i32 = arith.constant 0 : i32
    %c0_i32_0 = arith.constant 0 : i32
    %c0_i32_1 = arith.constant 0 : i32
    return %c0_i32, %c0_i32_0 : i32, i32
  }
  func.func @transform_5(%arg0: i32) -> (i32, i32) {
    %c0_i32 = arith.constant 0 : i32
    %c0_i32_0 = arith.constant 0 : i32
    %c0_i32_1 = arith.constant 0 : i32
    return %c0_i32, %c0_i32_0 : i32, i32
  }
  func.func @transform_6(%arg0: i32) -> (i32, i32) {
    %c0_i32 = arith.constant 0 : i32
    %c0_i32_0 = arith.constant 0 : i32
    %c0_i32_1 = arith.constant 0 : i32
    return %c0_i32, %c0_i32_0 : i32, i32
  }
  func.func @transform_7(%arg0: i32) -> (i32, i32, i32, i32) {
    %c0_i32 = arith.constant 0 : i32
    %c0_i32_0 = arith.constant 0 : i32
    %c0_i32_1 = arith.constant 0 : i32
    %c0_i32_2 = arith.constant 0 : i32
    return %arg0, %c0_i32, %c0_i32_0, %c0_i32_1 : i32, i32, i32, i32
  }
}

</mosaic_0001>

<bundles_post_ra>
// kernel: _bottleneck_nhwc_jit.1
= control target key start
LH: loop header
LB: loop body
LE: loop exit
PB: predicated region body
PF: predicated region fallthrough
CT: control target
= control target key end

     0   :  { %12 = vsyncpa [#allocation4], 0  ;;  %s9141_s0 = inlined_call_operand.vmem [shape: f32[2,16,16,128], index: 0, kind: input, shape index: {}]   ;;  %s9142_s1 = inlined_call_operand.vmem [shape: bf16[128,128], index: 1, kind: input, shape index: {}]   ;;  %s9143_s2 = inlined_call_operand.vmem [shape: f32[1,128], index: 2, kind: input, shape index: {}]   ;;  %s9144_s3 = inlined_call_operand.vmem [shape: bf16[3,384,128], index: 3, kind: input, shape index: {}]   ;;  %s9145_s4 = inlined_call_operand.vmem [shape: f32[1,128], index: 4, kind: input, shape index: {}]   ;;  %s9146_s5 = inlined_call_operand.vmem [shape: bf16[128,128], index: 5, kind: input, shape index: {}]   ;;  %s9147_s6 = inlined_call_operand.vmem [shape: f32[1,128], index: 6, kind: input, shape index: {}]   ;;  %s9148_s7 = inlined_call_operand.hbm [shape: f32[2,16,16,128], index: 7, kind: output, shape index: {}]  }
   0x1   :  { %14 = vsyncpa [#allocation4 + $0x1], 0  ;;  %s7397_s24 = smov 0   ;;  %s7399_s25 = smov 0  }
   0x2   :  { %s7401_s26 = smov 0   ;;  %s7403_s27 = smov 0  }
   0x3 LB: > { %s7418_s28 = sadd.s32 4294967295, %s7352_s27   ;;  %s6028_s29 = sadd.s32 4294967294, %s7352_s27   ;;  %s7352_s27 = sphi %s7403_s27, %s9266_s27   ;;  %s7348_s26 = sphi %s7401_s26, %s9265_s26   ;;  %s7344_s25 = sphi %s7399_s25, %s9264_s25   ;;  %s7340_s24 = sphi %s7397_s24, %s9263_s24  }
   0x4   : > { %s7422_s30 = sadd.s32 1, %s7352_s27   ;;  %s179_s8 = sadd.s32 1, %s7348_s26 }
   0x5   : > { %s176_s9 = ssub.s32 %s7352_s27, %s7422_s30  ;;  %p189_p0 = scmp.ne.s32.totalorder %s7348_s26, %s7344_s25 }
   0x6   : > { %p177_p1 = scmp.eq.s32.totalorder %s176_s9, 0  ;;  %p190_p2 = scmp.eq.s32.totalorder %s7418_s28, 1 }
   0x7   : > { %p195_p3 = scmp.ne.s32.totalorder %s7344_s25, %s7340_s24  ;;  %p196_p4 = scmp.eq.s32.totalorder %s6028_s29, 1 }
   0x8   : > { %s7433_s10 = scalar_select %p177_p1, %s7348_s26, %s179_s8  }
   0x9   : > { %p7435_p5 = por %p190_p2, %p189_p0  ;;  %p7439_p6 = por %p196_p4, %p195_p3 }
   0xa   : > { %p6031_p7 = scmp.ge.s32.totalorder %s7352_s27, 1  ;;  %p240_p8 = scmp.lt.s32.totalorder %s7352_s27, 3 }
   0xc   : > { %p241_p9 = pnand %p6031_p7, %p240_p8 }
   0xe   : > { %244 = sbr.rel (%p241_p9) target bundleno = 1190 (0x4a6), region = 48 }
  0x13   : > { %v6496_v0 = vld [vmem:[%s9142_s1 + $0x38] sm:$0xff]  ;;  %v6495_v1 = vld [vmem:[%s9142_s1 + $0x30] sm:$0xff]  ;;  %v6494_v2 = vld [vmem:[%s9142_s1 + $0x28] sm:$0xff]  ;;  %p272_p10 = scmp.lt.s32.totalorder %s7418_s28, 1  ;;  %vm529_vm0 = vcmask 1043459   ;;  %vm580_vm3 = vcmask 1040384  }
  0x14   : > { %394 = vmatpush.bf16.msra.mxu0 %v6496_v0  ;;  %7106 = vmatpush.bf16.msra.mxu3 %v6496_v0  ;;  %v6493_v3 = vld [vmem:[%s9142_s1 + $0x20] sm:$0xff]  ;;  %v6492_v4 = vld [vmem:[%s9142_s1 + $0x18] sm:$0xff]  ;;  %v6491_v5 = vld [vmem:[%s9142_s1 + $0x10] sm:$0xff]  ;;  %vm530_vm1 = vsmask.f32 7950  ;;  %vm1079_vm7 = vcmask 1042432  }
  0x15   : > { %s273_s23 = scalar_select %p272_p10, %s7418_s28, 1  ;;  %v6490_v6 = vld [vmem:[%s9142_s1 + $0x8] sm:$0xff]  ;;  %v6489_v7 = vld [vmem:[%s9142_s1] sm:$0xff]  ;;  %v7499_v38 = vld [vmem:[%s9144_s3 + $0x138] sm:$0xff]  ;;  %vm581_vm4 = vsmask.f32 256 }
  0x16   : > { %3363 = vmatpush.bf16.msra.mxu2 %v7499_v38  ;;  %v7507_v41 = vld [vmem:[%s9144_s3 + $0x130] sm:$0xff]  ;;  %v6528_v43 = vld [vmem:[%s9144_s3 + $0xf8] sm:$0xff]  ;;  %v7516_v44 = vld [vmem:[%s9144_s3 + $0x128] sm:$0xff]  ;;  %vm1128_vm6 = vsmask.f32 4352  ;;  %s269_s19 = sand.u32 1, %s7344_s25  }
  0x17   : > { %s6488_s9 = sshll.u32 %s273_s23, 8  ;;  %3274 = vmatpush.bf16.msra.mxu1 %v6528_v43  ;;  %v6527_v45 = vld [vmem:[%s9144_s3 + $0xf0] sm:$0xff]  ;;  %v7525_v46 = vld [vmem:[%s9144_s3 + $0x120] sm:$0xff]  ;;  %v6526_v47 = vld [vmem:[%s9144_s3 + $0xe8] sm:$0xff]  ;;  %s6032_s20 = sshll.u32 %s269_s19, 8 }
  0x18   : > { %395 = vmatpush.bf16.msra.mxu0 %v6495_v1  ;;  %7107 = vmatpush.bf16.msra.mxu3 %v6495_v1  ;;  %s7471_s17 = scalar_lea.vmem %s9141_s0, %s6488_s9  ;;  %v7534_v48 = vld [vmem:[%s9144_s3 + $0x118] sm:$0xff]  ;;  %v6525_v49 = vld [vmem:[%s9144_s3 + $0xe0] sm:$0xff]  ;;  %vm7542_vm2 = vmand %vm529_vm0, %vm530_vm1  ;;  %s8979_s21 = scalar_lea.vmem [#allocation3], %s6032_s20 }
  0x19   : > { %v278_v8 = vld [vmem:[%s7471_s17] sm:$0xff]  ;;  %v279_v9 = vld [vmem:[%s7471_s17 + $0x8] sm:$0xff]  ;;  %v280_v14 = vld [vmem:[%s7471_s17 + $0x10] sm:$0xff]  ;;  %s6577_s29 = sshll.u32 %s7418_s28, 8  ;;  %s5963_s14 = sshll.u32 %s8979_s21, 4  ;;  %s5964_s14 = int_to_ptr.vmem [resolvable:$true] %s5963_s14 }
  0x1a   : > { %v302_v10 = vld [vmem:[%s7471_s17 + $0xc0] sm:$0xff]  ;;  %v303_v11 = vld [vmem:[%s7471_s17 + $0xc8] sm:$0xff]  ;;  %v310_v12 = vpack.c.bf16 %v279_v9, %v278_v8  ;;  %v281_v15 = vld [vmem:[%s7471_s17 + $0x18] sm:$0xff]  ;;  %3364 = vmatpush.bf16.msra.mxu2 %v7507_v41  ;;  %s5962_s13 = scalar_lea.hbm %s9148_s7, %s6577_s29  ;;  %s5951_s28 = scalar_lea.sflag [#allocation4], %s269_s19 }
  0x1b   : > { %v322_v13 = vpack.c.bf16 %v303_v11, %v302_v10  ;;  %v304_v16 = vld [vmem:[%s7471_s17 + $0xd0] sm:$0xff]  ;;  %v305_v17 = vld [vmem:[%s7471_s17 + $0xd8] sm:$0xff]  ;;  %v311_v18 = vpack.c.bf16 %v281_v15, %v280_v14  ;;  %v282_v20 = vld [vmem:[%s7471_s17 + $0x20] sm:$0xff]  ;;  %3275 = vmatpush.bf16.msra.mxu1 %v6527_v45  ;;  %s5965_s15 = sshll.u32 %s5962_s13, 4  ;;  %s7310_s23 = scalar_lea.hbm %s9148_s7, 512  ;;  %s5966_s15 = int_to_ptr.hbm [resolvable:$true] %s5965_s15 }
  0x1c   : > { %396 = vmatpush.bf16.msra.mxu0 %v6494_v2  ;;  %7108 = vmatpush.bf16.msra.mxu3 %v6494_v2  ;;  %v323_v19 = vpack.c.bf16 %v305_v17, %v304_v16  ;;  %v283_v21 = vld [vmem:[%s7471_s17 + $0x28] sm:$0xff]  ;;  %v306_v22 = vld [vmem:[%s7471_s17 + $0xe0] sm:$0xff]  ;;  %v284_v26 = vld [vmem:[%s7471_s17 + $0x30] sm:$0xff]  ;;  %s7304_s16 = sshra.s32 %s5966_s15, 4  ;;  %s7305_s16 = int_to_ptr.hbm [resolvable:$true] %s7304_s16 }
  0x1d   : > { %v307_v23 = vld [vmem:[%s7471_s17 + $0xe8] sm:$0xff]  ;;  %v312_v24 = vpack.c.bf16 %v283_v21, %v282_v20  ;;  %v285_v27 = vld [vmem:[%s7471_s17 + $0x38] sm:$0xff]  ;;  %v308_v28 = vld [vmem:[%s7471_s17 + $0xf0] sm:$0xff]  ;;  %s7306_s18 = scalar_lea.hbm %s7305_s16, 256  ;;  %p7311_p0 = scmp.lt.s32.totalorder %s7305_s16, %s9148_s7 }
  0x1e   : > { %v324_v25 = vpack.c.bf16 %v307_v23, %v306_v22  ;;  %v309_v29 = vld [vmem:[%s7471_s17 + $0xf8] sm:$0xff]  ;;  %v313_v30 = vpack.c.bf16 %v285_v27, %v284_v26  ;;  %v286_v32 = vld [vmem:[%s7471_s17 + $0x40] sm:$0xff]  ;;  %v287_v33 = vld [vmem:[%s7471_s17 + $0x48] sm:$0xff]  ;;  %3365 = vmatpush.bf16.msra.mxu2 %v7516_v44  ;;  %p7307_p11 = scmp.ne.s32.totalorder %s7305_s16, %s7306_s18  ;;  %p7312_p1 = scmp.lt.s32.totalorder %s7310_s23, %s7306_s18 }
  0x1f   : > { %v325_v31 = vpack.c.bf16 %v309_v29, %v308_v28  ;;  %v314_v34 = vpack.c.bf16 %v287_v33, %v286_v32  ;;  %v288_v35 = vld [vmem:[%s7471_s17 + $0x50] sm:$0xff]  ;;  %v289_v36 = vld [vmem:[%s7471_s17 + $0x58] sm:$0xff]  ;;  %v290_v39 = vld [vmem:[%s7471_s17 + $0x60] sm:$0xff]  ;;  %3276 = vmatpush.bf16.msra.mxu1 %v6526_v47 }
  0x20   : > { %397 = vmatpush.bf16.msra.mxu0 %v6493_v3  ;;  %7109 = vmatpush.bf16.msra.mxu3 %v6493_v3  ;;  %v315_v37 = vpack.c.bf16 %v289_v36, %v288_v35  ;;  %v291_v40 = vld [vmem:[%s7471_s17 + $0x68] sm:$0xff]  ;;  %v292_v50 = vld [vmem:[%s7471_s17 + $0x70] sm:$0xff]  ;;  %v293_v51 = vld [vmem:[%s7471_s17 + $0x78] sm:$0xff]  ;;  %p7308_p12 = pnand %p7307_p11, %p7435_p5  ;;  %p7313_p2 = por %p7312_p1, %p7311_p0 }
  0x21   : > { %v316_v42 = vpack.c.bf16 %v291_v40, %v290_v39  ;;  %v532_v53 = vld [vmem:[#allocation2 + $0x1c] sm:$0x8]  ;;  %v7549_v54 = vld [vmem:[%s9144_s3 + $0x110] sm:$0xff]  ;;  %v317_v56 = vpack.c.bf16 %v293_v51, %v292_v50  ;;  %v7560_v58 = vld [vmem:[%s9144_s3 + $0x108] sm:$0xff] }
  0x22   : > { %3366 = vmatpush.bf16.msra.mxu2 %v7525_v46  ;;  %v533_v55 = vsel %vm7542_vm2, 0, %v532_v53  ;;  %v6524_v57 = vld [vmem:[%s9144_s3 + $0xd8] sm:$0xff]  ;;  %v6523_v59 = vld [vmem:[%s9144_s3 + $0xd0] sm:$0xff]  ;;  %v7571_v62 = vld [vmem:[%s9144_s3 + $0x100] sm:$0xff]  ;;  %p7309_p13 = pneg %p7308_p12 }
  0x23   : > { %3277 = vmatpush.bf16.msra.mxu1 %v6525_v49  ;;  %534 = vst [vmem:[#allocation2 + $0x1c] sm:$0x8] %v533_v55  ;;  %v568_v60 = vld [vmem:[#allocation2 + $0x13c] sm:$0x8]  ;;  %vm7573_vm5 = vmand %vm580_vm3, %vm581_vm4  ;;  %v6522_v0 = vld [vmem:[%s9144_s3 + $0xc8] sm:$0xff] }
  0x24   : > { %398 = vmatpush.bf16.msra.mxu0 %v6492_v4  ;;  %7110 = vmatpush.bf16.msra.mxu3 %v6492_v4  ;;  %v569_v61 = vsel %vm7542_vm2, 0, %v568_v60  ;;  %v583_v1 = vld [vmem:[#allocation2 + $0x28] sm:$0x1]  ;;  %v6521_v3 = vld [vmem:[%s9144_s3 + $0xc0] sm:$0xff]  ;;  %v6504_v10 = vld [vmem:[%s9144_s3 + $0x38] sm:$0xff]  ;;  %p7314_p3 = pnand %p7313_p2, %p7309_p13 }
  0x25   : > { %570 = vst [vmem:[#allocation2 + $0x13c] sm:$0x8] %v569_v61  ;;  %v584_v2 = vsel %vm7573_vm5, 0, %v583_v1  ;;  %v294_v4 = vld [vmem:[%s7471_s17 + $0x80] sm:$0xff]  ;;  %v6503_v17 = vld [vmem:[%s9144_s3 + $0x30] sm:$0xff]  ;;  %v6548_v63 = vld [vmem:[%s9144_s3 + $0x198] sm:$0xff] }
  0x26   : > { %3367 = vmatpush.bf16.msra.mxu2 %v7534_v48  ;;  %585 = vst [vmem:[#allocation2 + $0x28] sm:$0x1] %v584_v2  ;;  %v7598_v11 = vld [vmem:[%s9143_s2] ss:$0 sm:$0xff]  ;;  %v296_v23 = vld [vmem:[%s7471_s17 + $0x90] sm:$0xff] }
  0x27   : > { %3278 = vmatpush.bf16.msra.mxu1 %v6524_v57  ;;  %v6501_v35 = vld [vmem:[%s9144_s3 + $0x20] sm:$0xff] }
  0x28   : > { %399 = vmatpush.bf16.msra.mxu0 %v6491_v5  ;;  %7111 = vmatpush.bf16.msra.mxu3 %v6491_v5  ;;  %v295_v5 = vld [vmem:[%s7471_s17 + $0x88] sm:$0xff] }
  0x2a   : > { %3368 = vmatpush.bf16.msra.mxu2 %v7549_v54 }
  0x2b   : > { %3279 = vmatpush.bf16.msra.mxu1 %v6523_v59 }
  0x2c   : > { %400 = vmatpush.bf16.msra.mxu0 %v6490_v6  ;;  %7112 = vmatpush.bf16.msra.mxu3 %v6490_v6  ;;  %v535_v6 = vld [vmem:[#allocation2 + $0x34] sm:$0x8] }
  0x2d   : > { %v536_v8 = vsel %vm7542_vm2, 0, %v535_v6 }
  0x2e   : > { %3369 = vmatpush.bf16.msra.mxu2 %v7560_v58  ;;  %537 = vst [vmem:[#allocation2 + $0x34] sm:$0x8] %v536_v8  ;;  %v298_v8 = vld [vmem:[%s7471_s17 + $0xa0] sm:$0xff] }
  0x2f   : > { %3280 = vmatpush.bf16.msra.mxu1 %v6522_v0 }
  0x30   : > { %401 = vmatpush.bf16.msra.mxu0 %v6489_v7  ;;  %7113 = vmatpush.bf16.msra.mxu3 %v6489_v7  ;;  %v318_v7 = vpack.c.bf16 %v295_v5, %v294_v4 }
  0x32   : > { %3370 = vmatpush.bf16.msra.mxu2 %v7571_v62 }
  0x33   : > { %402 = vmatmul.bf16.vlgmr.msra.gmra.mxu0 %v310_v12  ;;  %462 = vmatmul.bf16.vlgmr.msra.gmra.mxu3 %v322_v13  ;;  %v571_v12 = vld [vmem:[#allocation2 + $0x154] sm:$0x8]  ;;  %v6512_v13 = vld [vmem:[%s9144_s3 + $0x78] sm:$0xff] }
  0x34   : > { %7114 = vmatpush.bf16.msrb.mxu3 %v6528_v43  ;;  %3281 = vmatpush.bf16.msra.mxu1 %v6521_v3  ;;  %v572_v14 = vsel %vm7542_vm2, 0, %v571_v12  ;;  %v6500_v43 = vld [vmem:[%s9144_s3 + $0x18] sm:$0xff] }
  0x35   : > { %3685 = vmatpush.bf16.msrb.mxu0 %v6504_v10  ;;  %573 = vst [vmem:[#allocation2 + $0x154] sm:$0x8] %v572_v14 }
  0x38   : > { %7115 = vmatpush.bf16.msrb.mxu3 %v6527_v45  ;;  %3774 = vmatpush.bf16.msrb.mxu1 %v6512_v13  ;;  %v6980_v45 = vld [vmem:[#allocation2 + $0x1c] sm:$0x8] }
  0x39   : > { %3686 = vmatpush.bf16.msrb.mxu0 %v6503_v17  ;;  %v6498_v17 = vld [vmem:[%s9144_s3 + $0x8] sm:$0xff] }
  0x3c   : > { %7116 = vmatpush.bf16.msrb.mxu3 %v6526_v47 }
  0x40   : > { %7117 = vmatpush.bf16.msrb.mxu3 %v6525_v49 }
  0x43   : > { %407 = vmatmul.bf16.gmra.mxu0 %v311_v18  ;;  %467 = vmatmul.bf16.gmra.mxu3 %v323_v19 }
  0x44   : > { %7118 = vmatpush.bf16.msrb.mxu3 %v6524_v57 }
  0x48   : > { %7119 = vmatpush.bf16.msrb.mxu3 %v6523_v59  ;;  %v6499_v59 = vld [vmem:[%s9144_s3 + $0x10] sm:$0xff] }
  0x4c   : > { %7120 = vmatpush.bf16.msrb.mxu3 %v6522_v0 }
  0x50   : > { %7121 = vmatpush.bf16.msrb.mxu3 %v6521_v3  ;;  %v7028_v3 = vld [vmem:[#allocation2 + $0x13c] sm:$0x8] }
  0x53   : > { %412 = vmatmul.bf16.gmra.mxu0 %v312_v24  ;;  %472 = vmatmul.bf16.gmra.mxu3 %v324_v25  ;;  %v297_v24 = vld [vmem:[%s7471_s17 + $0x98] sm:$0xff]  ;;  %v6502_v25 = vld [vmem:[%s9144_s3 + $0x28] sm:$0xff] }
  0x54   : > { %7122 = vmatpush.bf16.msra.mxu3 %v7499_v38  ;;  %3687 = vmatpush.bf16.msrb.mxu0 %v6502_v25  ;;  %v319_v29 = vpack.c.bf16 %v297_v24, %v296_v23 }
  0x58   : > { %7123 = vmatpush.bf16.msra.mxu3 %v7507_v41  ;;  %3688 = vmatpush.bf16.msrb.mxu0 %v6501_v35 }
  0x5c   : > { %7124 = vmatpush.bf16.msra.mxu3 %v7516_v44  ;;  %v7354_v44 = vmov 0   ;;  %3689 = vmatpush.bf16.msrb.mxu0 %v6500_v43 }
  0x5d   : > { %516 = vst [vmem:[#allocation2 + $0x4] sm:$0xf] %v7354_v44 }
  0x5e   : > { %517 = vst [vmem:[#allocation2 + $0x8] sm:$0xf] %v7354_v44 }
  0x5f   : > { %518 = vst [vmem:[#allocation2 + $0xc] sm:$0xf] %v7354_v44 }
  0x60   : > { %7125 = vmatpush.bf16.msra.mxu3 %v7525_v46  ;;  %3690 = vmatpush.bf16.msrb.mxu0 %v6499_v59  ;;  %519 = vst [vmem:[#allocation2 + $0x10] sm:$0xf] %v7354_v44 }
  0x61   : > { %523 = vst [vmem:[#allocation2 + $0x19c] sm:$0xf] %v7354_v44 }
  0x62   : > { %524 = vst [vmem:[#allocation2 + $0x1a0] sm:$0xf] %v7354_v44 }
  0x63   : > { %417 = vmatmul.bf16.gmra.mxu0 %v313_v30  ;;  %477 = vmatmul.bf16.gmra.mxu3 %v325_v31  ;;  %v538_v30 = vld [vmem:[#allocation2 + $0x4c] sm:$0x8]  ;;  %525 = vst [vmem:[#allocation2 + $0x1a4] sm:$0xf] %v7354_v44 }
  0x64   : > { %7126 = vmatpush.bf16.msra.mxu3 %v7534_v48  ;;  %3691 = vmatpush.bf16.msrb.mxu0 %v6498_v17  ;;  %526 = vst [vmem:[#allocation2 + $0x1a8] sm:$0xf] %v7354_v44 }
  0x66   : > { %v6866_v44 = vld [vmem:[#allocation2 + $0x8] sm:$0xff]  }
  0x68   : > { %7127 = vmatpush.bf16.msra.mxu3 %v7549_v54 }
  0x6c   : > { %7128 = vmatpush.bf16.msra.mxu3 %v7560_v58 }
  0x70   : > { %7129 = vmatpush.bf16.msra.mxu3 %v7571_v62 }
  0x73   : > { %422 = vmatmul.bf16.gmra.mxu0 %v314_v34 }
  0x83   : > { %427 = vmatmul.bf16.gmra.mxu0 %v315_v37  ;;  %v539_v37 = vsel %vm7542_vm2, 0, %v538_v30 }
  0x84   : > { %540 = vst [vmem:[#allocation2 + $0x4c] sm:$0x8] %v539_v37 }
  0x93   : > { %432 = vmatmul.bf16.gmra.mxu0 %v316_v42 }
  0xa3   : > { %437 = vmatmul.bf16.gmra.mxu0 %v317_v56 }
  0xb0   : > { %v403_v9 = vpop.f32.mrf.mxu0 }
  0xb1   : > { %v404_v16 = vadd.f32 %v7598_v11, %v403_v9  ;;  %v299_v9 = vld [vmem:[%s7471_s17 + $0xa8] sm:$0xff] }
  0xb3   : > { %442 = vmatmul.bf16.gmra.mxu0 %v318_v7  ;;  %v483_v21 = vmax.f32 %v404_v16, 0.0 }
  0xb6   : > { %v463_v15 = vpop.f32.mrf.mxu3 }
  0xb7   : > { %v464_v20 = vadd.f32 %v7598_v11, %v463_v15 }
  0xb8   : > { %v405_v18 = vpop.f32.mrf.mxu0 }
  0xb9   : > { %v406_v19 = vadd.f32 %v7598_v11, %v405_v18  ;;  %v507_v27 = vmax.f32 %v464_v20, 0.0  ;;  %v574_v18 = vld [vmem:[#allocation2 + $0x16c] sm:$0x8] }
  0xbb   : > { %v484_v22 = vmax.f32 %v406_v19, 0.0 }
  0xbd   : > { %v6581_v26 = vpack.c.bf16 %v484_v22, %v483_v21 }
  0xbe   : > { %v465_v28 = vpop.f32.mrf.mxu3 }
  0xbf   : > { %6850 = vst [vmem:[#allocation2 + $0x20] sm:$0xff] %v6581_v26   ;;  %v466_v31 = vadd.f32 %v7598_v11, %v465_v28  ;;  %v6725_v32 = vunpack.c.h.b16 %v6581_v26  ;;  %v2122_v33 = vshrl.u32 %v6581_v26, 16  ;;  %v2125_v34 = vshll.u32 %v6581_v26, 16 }
  0xc0   : > { %v408_v36 = vpop.f32.mrf.mxu0  ;;  %v575_v28 = vsel %vm7542_vm2, 0, %v574_v18 }
  0xc1   : > { %v508_v38 = vmax.f32 %v466_v31, 0.0  ;;  %v2074_v39 = vpack.c.b16 %v6725_v32, %v6725_v32  ;;  %v2124_v40 = vrot.slane %v2122_v33, 4  ;;  %v2127_v41 = vrot.slane %v2125_v34, 5  ;;  %v6511_v33 = vld [vmem:[%s9144_s3 + $0x70] sm:$0xff]  ;;  %v6497_v34 = vld [vmem:[%s9144_s3] sm:$0xff] }
  0xc2   : > { %v409_v49 = vadd.f32 %v7598_v11, %v408_v36  ;;  %3775 = vmatpush.bf16.msrb.mxu1 %v6511_v33  ;;  %3692 = vmatpush.bf16.msrb.mxu0 %v6497_v34  ;;  %576 = vst [vmem:[#allocation2 + $0x16c] sm:$0x8] %v575_v28 }
  0xc3   : > { %v7626_v42 = vpack.c.bf16 %v508_v38, %v507_v27  ;;  %447 = vmatmul.bf16.gmra.mxu0 %v319_v29  ;;  %v2354_v46 = vshrl.u32 %v2074_v39, 16  ;;  %v2357_v47 = vshll.u32 %v2074_v39, 16  ;;  %v2128_v48 = vor.u32 %v2127_v41, %v2124_v40 }
  0xc4   : > { %v485_v4 = vmax.f32 %v409_v49, 0.0  ;;  %v320_v27 = vpack.c.bf16 %v299_v9, %v298_v8 }
  0xc5   : > { %6862 = vst [vmem:[#allocation2 + $0x140] sm:$0xff] %v7626_v42   ;;  %v6773_v50 = vunpack.c.h.b16 %v7626_v42  ;;  %v2363_v54 = vshrl.u32 %v2128_v48, 16  ;;  %v2366_v55 = vshll.u32 %v2128_v48, 16  ;;  %v2356_v61 = vrot.slane %v2354_v46, 3 }
  0xc6   : > { %v468_v51 = vpop.f32.mrf.mxu3  ;;  %v7146_v53 = vld [vmem:[#allocation2 + $0x1c] sm:$0xf0]   ;;  %v2359_v0 = vrot.slane %v2357_v47, 4 }
  0xc7   : > { %v6981_v56 = vor.u32 %v7146_v53, %v6980_v45  ;;  %v2098_v57 = vpack.c.b16 %v6773_v50, %v6773_v50  ;;  %v2365_v1 = vrot.slane %v2363_v54, 3  ;;  %v2368_v2 = vrot.slane %v2366_v55, 4  ;;  %v6984_v50 = vld [vmem:[#allocation2 + $0x34] sm:$0x8] }
  0xc8   : > { %v410_v60 = vpop.f32.mrf.mxu0  ;;  %v469_v58 = vadd.f32 %v7598_v11, %v468_v51  ;;  %v7650_v19 = vor.u32 %v2359_v0, %v2356_v61  ;;  %v6916_v51 = vld [vmem:[#allocation2 + $0x4] sm:$0x8] }
  0xc9   : > { %v411_v5 = vadd.f32 %v7598_v11, %v410_v60  ;;  %v2346_v6 = vshrl.u32 %v6981_v56, 16  ;;  %v2349_v7 = vshll.u32 %v6981_v56, 16  ;;  %v2369_v10 = vor.u32 %v2368_v2, %v2365_v1  ;;  %v7130_v56 = vld [vmem:[#allocation2 + $0x4] sm:$0xf0]  }
  0xca   : > { %v2870_v12 = vshrl.u32 %v2098_v57, 16  ;;  %v2873_v13 = vshll.u32 %v2098_v57, 16  ;;  %v509_v62 = vmax.f32 %v469_v58, 0.0 }
  0xcb   : > { %v486_v14 = vmax.f32 %v411_v5, 0.0  ;;  %v2348_v15 = vrot.slane %v2346_v6, 3  ;;  %v2351_v16 = vrot.slane %v2349_v7, 4  ;;  %3371 = vmatmul.bf16.vlgmr.msra.gmra.mxu2 %v2369_v10  ;;  %v6661_v5 = vunpack.c.h.b16 %v6866_v44 }
  0xcc   : > { %v7158_v20 = vld [vmem:[#allocation2 + $0x13c] sm:$0xf0]   ;;  %v2872_v21 = vrot.slane %v2870_v12, 3  ;;  %v2875_v25 = vrot.slane %v2873_v13, 4  ;;  %v7673_v6 = vor.u32 %v7130_v56, %v6916_v51  ;;  %v541_v12 = vld [vmem:[#allocation2 + $0x64] sm:$0x8] }
  0xcd   : > { %v6586_v22 = vpack.c.bf16 %v486_v14, %v485_v4  ;;  %v2352_v23 = vor.u32 %v2351_v16, %v2348_v15  ;;  %v7029_v24 = vor.u32 %v7158_v20, %v7028_v3  ;;  %v7032_v20 = vld [vmem:[#allocation2 + $0x154] sm:$0x8] }
  0xce   : > { %v470_v26 = vpop.f32.mrf.mxu3  ;;  %v2876_v43 = vor.u32 %v2875_v25, %v2872_v21  ;;  %v1133_v51 = vshll.u32 %v7673_v6, 16 }
  0xcf   : > { %6851 = vst [vmem:[#allocation2 + $0x38] sm:$0xff] %v6586_v22   ;;  %v471_v29 = vadd.f32 %v7598_v11, %v470_v26  ;;  %v2361_v30 = vsel %vm1128_vm6, %v2352_v23, %v7650_v19  ;;  %v2862_v31 = vshrl.u32 %v7029_v24, 16  ;;  %v2865_v32 = vshll.u32 %v7029_v24, 16  ;;  %v301_v26 = vld [vmem:[%s7471_s17 + $0xb8] sm:$0xff] }
  0xd0   : > { %v413_v35 = vpop.f32.mrf.mxu0  ;;  %3282 = vmatmul.bf16.vlgmr.msra.gmra.mxu1 %v2361_v30  ;;  %v6729_v36 = vunpack.c.h.b16 %v6586_v22  ;;  %v2130_v37 = vshrl.u32 %v6586_v22, 16  ;;  %v2133_v38 = vshll.u32 %v6586_v22, 16 }
  0xd1   : > { %v510_v39 = vmax.f32 %v471_v29, 0.0  ;;  %v2864_v40 = vrot.slane %v2862_v31, 3  ;;  %v2867_v41 = vrot.slane %v2865_v32, 4  ;;  %v414_v57 = vadd.f32 %v7598_v11, %v413_v35 }
  0xd2   : > { %v2076_v45 = vpack.c.b16 %v6729_v36, %v6729_v36  ;;  %v2132_v46 = vrot.slane %v2130_v37, 4  ;;  %v2135_v47 = vrot.slane %v2133_v38, 5  ;;  %v856_v38 = vpack.c.b16 %v6661_v5, %v6661_v5 }
  0xd3   : > { %v7667_v48 = vpack.c.bf16 %v510_v39, %v509_v62  ;;  %452 = vmatmul.bf16.gmra.mxu0 %v320_v27  ;;  %v2868_v49 = vor.u32 %v2867_v41, %v2864_v40  ;;  %v487_v13 = vmax.f32 %v414_v57, 0.0  ;;  %v300_v62 = vld [vmem:[%s7471_s17 + $0xb0] sm:$0xff]  ;;  %v542_v27 = vsel %vm7542_vm2, 0, %v541_v12 }
  0xd4   : > { %v2397_v53 = vshrl.u32 %v2076_v45, 16  ;;  %v2400_v54 = vshll.u32 %v2076_v45, 16  ;;  %v2136_v55 = vor.u32 %v2135_v47, %v2132_v46  ;;  %543 = vst [vmem:[#allocation2 + $0x64] sm:$0x8] %v542_v27  ;;  %v321_v37 = vpack.c.bf16 %v301_v26, %v300_v62  ;;  %v577_v62 = vld [vmem:[#allocation2 + $0x184] sm:$0x8] }
  0xd5   : > { %6863 = vst [vmem:[#allocation2 + $0x158] sm:$0xff] %v7667_v48   ;;  %v2877_v59 = vsel %vm1128_vm6, %v2868_v49, %v2876_v43  ;;  %v6777_v60 = vunpack.c.h.b16 %v7667_v48  ;;  %v1130_v39 = vshrl.u32 %v7673_v6, 16 }
  0xd6   : > { %v473_v61 = vpop.f32.mrf.mxu3  ;;  %3342 = vmatmul.bf16.vlgmr.msrb.gmra.mxu3 %v2877_v59  ;;  %v7147_v0 = vld [vmem:[#allocation2 + $0x34] sm:$0xf0]   ;;  %v2406_v1 = vshrl.u32 %v2136_v55, 16  ;;  %v2409_v2 = vshll.u32 %v2136_v55, 16  ;;  %v2399_v58 = vrot.slane %v2397_v53, 3  ;;  %v2402_v8 = vrot.slane %v2400_v54, 4 }
  0xd7   : > { %v6985_v3 = vor.u32 %v7147_v0, %v6984_v50  ;;  %v2100_v4 = vpack.c.b16 %v6777_v60, %v6777_v60  ;;  %v474_v17 = vadd.f32 %v7598_v11, %v473_v61  ;;  %v1138_v60 = vshrl.u32 %v856_v38, 16 }
  0xd8   : > { %v415_v7 = vpop.f32.mrf.mxu0  ;;  %v2408_v9 = vrot.slane %v2406_v1, 3  ;;  %v2411_v10 = vrot.slane %v2409_v2, 4  ;;  %v7681_v28 = vor.u32 %v2402_v8, %v2399_v58  ;;  %v1141_v1 = vshll.u32 %v856_v38, 16  ;;  %v6510_v2 = vld [vmem:[%s9144_s3 + $0x68] sm:$0xff] }
  0xd9   : > { %v416_v14 = vadd.f32 %v7598_v11, %v415_v7  ;;  %v2389_v15 = vshrl.u32 %v6985_v3, 16  ;;  %v2392_v16 = vshll.u32 %v6985_v3, 16  ;;  %v2913_v21 = vshrl.u32 %v2100_v4, 16  ;;  %v6988_v3 = vld [vmem:[#allocation2 + $0x4c] sm:$0x8]  ;;  %3776 = vmatpush.bf16.msrb.mxu1 %v6510_v2 }
  0xda   : > { %v2412_v18 = vor.u32 %v2411_v10, %v2408_v9  ;;  %v2916_v22 = vshll.u32 %v2100_v4, 16  ;;  %v511_v35 = vmax.f32 %v474_v17, 0.0  ;;  %v1132_v58 = vrot.slane %v1130_v39, 3 }
  0xdb   : > { %v488_v23 = vmax.f32 %v416_v14, 0.0  ;;  %v2391_v24 = vrot.slane %v2389_v15, 3  ;;  %v2394_v25 = vrot.slane %v2392_v16, 4  ;;  %v2915_v30 = vrot.slane %v2913_v21, 3 }
  0xdc   : > { %3376 = vmatmul.bf16.gmra.mxu2 %v2412_v18  ;;  %v7159_v29 = vld [vmem:[#allocation2 + $0x154] sm:$0xf0]   ;;  %v2918_v34 = vrot.slane %v2916_v22, 4  ;;  %v1135_v14 = vrot.slane %v1133_v51, 4  ;;  %v1140_v15 = vrot.slane %v1138_v60, 3  ;;  %v1143_v18 = vrot.slane %v1141_v1, 4 }
  0xdd   : > { %v6591_v31 = vpack.c.bf16 %v488_v23, %v487_v13  ;;  %v2395_v32 = vor.u32 %v2394_v25, %v2391_v24  ;;  %v7033_v33 = vor.u32 %v7159_v29, %v7032_v20 }
  0xde   : > { %v475_v36 = vpop.f32.mrf.mxu3  ;;  %v2919_v44 = vor.u32 %v2918_v34, %v2915_v30  ;;  %v7036_v34 = vld [vmem:[#allocation2 + $0x16c] sm:$0x8] }
  0xdf   : > { %6852 = vst [vmem:[#allocation2 + $0x50] sm:$0xff] %v6591_v31   ;;  %v476_v40 = vadd.f32 %v7598_v11, %v475_v36  ;;  %v2404_v41 = vsel %vm1128_vm6, %v2395_v32, %v7681_v28  ;;  %v2905_v43 = vshrl.u32 %v7033_v33, 16  ;;  %v2908_v45 = vshll.u32 %v7033_v33, 16  ;;  %v7131_v32 = vld [vmem:[#allocation2 + $0x1c] sm:$0xf0]  }
  0xe0   : > { %v418_v46 = vpop.f32.mrf.mxu0  ;;  %3287 = vmatmul.bf16.gmra.mxu1 %v2404_v41  ;;  %v6733_v47 = vunpack.c.h.b16 %v6591_v31  ;;  %v2138_v49 = vshrl.u32 %v6591_v31, 16  ;;  %v2141_v50 = vshll.u32 %v6591_v31, 16  ;;  %v6920_v31 = vld [vmem:[#allocation2 + $0x1c] sm:$0x8] }
  0xe1   : > { %v512_v53 = vmax.f32 %v476_v40, 0.0  ;;  %v2907_v54 = vrot.slane %v2905_v43, 3  ;;  %v2910_v55 = vrot.slane %v2908_v45, 4  ;;  %v419_v16 = vadd.f32 %v7598_v11, %v418_v46 }
  0xe2   : > { %v2078_v56 = vpack.c.b16 %v6733_v47, %v6733_v47  ;;  %v2140_v57 = vrot.slane %v2138_v49, 4  ;;  %v2143_v59 = vrot.slane %v2141_v50, 5  ;;  %v1136_v45 = vor.u32 %v1135_v14, %v1132_v58  ;;  %v544_v14 = vld [vmem:[#allocation2 + $0x7c] sm:$0x8] }
  0xe3   : > { %v7688_v61 = vpack.c.bf16 %v512_v53, %v511_v35  ;;  %457 = vmatmul.bf16.gmra.mxu0 %v321_v37  ;;  %v2911_v0 = vor.u32 %v2910_v55, %v2907_v54  ;;  %v578_v37 = vsel %vm7542_vm2, 0, %v577_v62  ;;  %v489_v38 = vmax.f32 %v419_v16, 0.0 }
  0xe4   : > { %v2440_v4 = vshrl.u32 %v2078_v56, 16  ;;  %v2443_v5 = vshll.u32 %v2078_v56, 16  ;;  %v2144_v6 = vor.u32 %v2143_v59, %v2140_v57  ;;  %579 = vst [vmem:[#allocation2 + $0x184] sm:$0x8] %v578_v37  ;;  %v1144_v46 = vor.u32 %v1143_v18, %v1140_v15 }
  0xe5   : > { %6864 = vst [vmem:[#allocation2 + $0x170] sm:$0xff] %v7688_v61   ;;  %v2920_v7 = vsel %vm1128_vm6, %v2911_v0, %v2919_v44  ;;  %v6781_v8 = vunpack.c.h.b16 %v7688_v61  ;;  %v6921_v56 = vor.u32 %v7131_v32, %v6920_v31  ;;  %v545_v18 = vsel %vm7542_vm2, 0, %v544_v14 }
  0xe6   : > { %v478_v9 = vpop.f32.mrf.mxu3  ;;  %3347 = vmatmul.bf16.gmra.mxu3 %v2920_v7  ;;  %v7148_v10 = vld [vmem:[#allocation2 + $0x4c] sm:$0xf0]   ;;  %v2449_v12 = vshrl.u32 %v2144_v6, 16  ;;  %v2452_v13 = vshll.u32 %v2144_v6, 16  ;;  %v2442_v22 = vrot.slane %v2440_v4, 3  ;;  %v2445_v23 = vrot.slane %v2443_v5, 4 }
  0xe7   : > { %v6989_v17 = vor.u32 %v7148_v10, %v6988_v3  ;;  %v2102_v20 = vpack.c.b16 %v6781_v8, %v6781_v8  ;;  %v479_v26 = vadd.f32 %v7598_v11, %v478_v9  ;;  %v1145_v2 = vsel %vm1128_vm6, %v1136_v45, %v1144_v46  ;;  %546 = vst [vmem:[#allocation2 + $0x7c] sm:$0x8] %v545_v18 }
  0xe8   : > { %v420_v21 = vpop.f32.mrf.mxu0  ;;  %v2451_v24 = vrot.slane %v2449_v12, 3  ;;  %v2454_v25 = vrot.slane %v2452_v13, 4  ;;  %v7701_v43 = vor.u32 %v2445_v23, %v2442_v22  ;;  %v1173_v13 = vshrl.u32 %v6921_v56, 16 }
  0xe9   : > { %v421_v27 = vadd.f32 %v7598_v11, %v420_v21  ;;  %v2432_v29 = vshrl.u32 %v6989_v17, 16  ;;  %v2435_v30 = vshll.u32 %v6989_v17, 16  ;;  %v2956_v35 = vshrl.u32 %v2102_v20, 16 }
  0xea   : > { %v2455_v33 = vor.u32 %v2454_v25, %v2451_v24  ;;  %v2959_v36 = vshll.u32 %v2102_v20, 16  ;;  %v513_v55 = vmax.f32 %v479_v26, 0.0  ;;  %v1176_v17 = vshll.u32 %v6921_v56, 16  ;;  %v6992_v20 = vld [vmem:[#allocation2 + $0x64] sm:$0x8] }
  0xeb   : > { %v490_v39 = vmax.f32 %v421_v27, 0.0  ;;  %v2434_v40 = vrot.slane %v2432_v29, 3  ;;  %v2437_v41 = vrot.slane %v2435_v30, 4  ;;  %v2958_v49 = vrot.slane %v2956_v35, 3 }
  0xec   : > { %3381 = vmatmul.bf16.gmra.mxu2 %v2455_v33  ;;  %v7160_v47 = vld [vmem:[#allocation2 + $0x16c] sm:$0xf0]   ;;  %v2961_v54 = vrot.slane %v2959_v36, 4  ;;  %v1175_v29 = vrot.slane %v1173_v13, 3  ;;  %v1178_v32 = vrot.slane %v1176_v17, 4 }
  0xed   : > { %v6596_v50 = vpack.c.bf16 %v490_v39, %v489_v38  ;;  %v2438_v51 = vor.u32 %v2437_v41, %v2434_v40  ;;  %v7037_v53 = vor.u32 %v7160_v47, %v7036_v34  ;;  %v7040_v47 = vld [vmem:[#allocation2 + $0x184] sm:$0x8] }
  0xee   : > { %v480_v44 = vpop.f32.mrf.mxu3  ;;  %v2962_v8 = vor.u32 %v2961_v54, %v2958_v49 }
  0xef   : > { %6853 = vst [vmem:[#allocation2 + $0x68] sm:$0xff] %v6596_v50   ;;  %v481_v57 = vadd.f32 %v7598_v11, %v480_v44  ;;  %v2447_v59 = vsel %vm1128_vm6, %v2438_v51, %v7701_v43  ;;  %v2948_v60 = vshrl.u32 %v7037_v53, 16  ;;  %v2951_v0 = vshll.u32 %v7037_v53, 16  ;;  %v7132_v44 = vld [vmem:[#allocation2 + $0x34] sm:$0xf0]  }
  0xf0   : > { %v423_v1 = vpop.f32.mrf.mxu0  ;;  %3292 = vmatmul.bf16.gmra.mxu1 %v2447_v59  ;;  %v6737_v3 = vunpack.c.h.b16 %v6596_v50  ;;  %v2146_v4 = vshrl.u32 %v6596_v50, 16  ;;  %v2149_v5 = vshll.u32 %v6596_v50, 16  ;;  %v6924_v50 = vld [vmem:[#allocation2 + $0x34] sm:$0x8] }
  0xf1   : > { %v514_v6 = vmax.f32 %v481_v57, 0.0  ;;  %v2950_v7 = vrot.slane %v2948_v60, 3  ;;  %v2953_v58 = vrot.slane %v2951_v0, 4  ;;  %v424_v30 = vadd.f32 %v7598_v11, %v423_v1 }
  0xf2   : > { %v2080_v9 = vpack.c.b16 %v6737_v3, %v6737_v3  ;;  %v2148_v10 = vrot.slane %v2146_v4, 4  ;;  %v2151_v12 = vrot.slane %v2149_v5, 5  ;;  %v1179_v57 = vor.u32 %v1178_v32, %v1175_v29 }
  0xf3   : > { %v7707_v15 = vpack.c.bf16 %v514_v6, %v513_v55  ;;  %3693 = vmatmul.bf16.vlgmr.msrb.gmra.mxu0 %v1145_v2  ;;  %v2954_v16 = vor.u32 %v2953_v58, %v2950_v7  ;;  %v491_v51 = vmax.f32 %v424_v30, 0.0  ;;  %v6925_v4 = vor.u32 %v7132_v44, %v6924_v50 }
  0xf4   : > { %v2483_v21 = vshrl.u32 %v2080_v9, 16  ;;  %v2486_v22 = vshll.u32 %v2080_v9, 16  ;;  %v2152_v23 = vor.u32 %v2151_v12, %v2148_v10  ;;  %v2218_v5 = vshrl.u32 %v7626_v42, 16  ;;  %v6509_v10 = vld [vmem:[%s9144_s3 + $0x60] sm:$0xff] }
  0xf5   : > { %6865 = vst [vmem:[#allocation2 + $0x188] sm:$0xff] %v7707_v15   ;;  %v2963_v24 = vsel %vm1128_vm6, %v2954_v16, %v2962_v8  ;;  %v6785_v25 = vunpack.c.h.b16 %v7707_v15  ;;  %v2221_v6 = vshll.u32 %v7626_v42, 16  ;;  %v1188_v13 = vsel %vm1128_vm6, %v1179_v57, %v7650_v19  ;;  %3777 = vmatpush.bf16.msrb.mxu1 %v6509_v10 }
  0xf6   : > { %3352 = vmatmul.bf16.gmra.mxu3 %v2963_v24  ;;  %v7149_v62 = vld [vmem:[#allocation2 + $0x64] sm:$0xf0]   ;;  %v2492_v26 = vshrl.u32 %v2152_v23, 16  ;;  %v2495_v27 = vshll.u32 %v2152_v23, 16  ;;  %v2485_v35 = vrot.slane %v2483_v21, 3  ;;  %v2488_v36 = vrot.slane %v2486_v22, 4 }
  0xf7   : > { %v6993_v31 = vor.u32 %v7149_v62, %v6992_v20  ;;  %v2104_v33 = vpack.c.b16 %v6785_v25, %v6785_v25  ;;  %v2220_v23 = vrot.slane %v2218_v5, 4  ;;  %v2223_v24 = vrot.slane %v2221_v6, 5  ;;  %v547_v25 = vld [vmem:[#allocation2 + $0x94] sm:$0x8] }
  0xf8   : > { %v425_v34 = vpop.f32.mrf.mxu0  ;;  %v2494_v37 = vrot.slane %v2492_v26, 3  ;;  %v2497_v38 = vrot.slane %v2495_v27, 4  ;;  %v7716_v56 = vor.u32 %v2488_v36, %v2485_v35  ;;  %v1216_v26 = vshrl.u32 %v6925_v4, 16  ;;  %v6996_v27 = vld [vmem:[#allocation2 + $0x7c] sm:$0x8] }
  0xf9   : > { %v426_v39 = vadd.f32 %v7598_v11, %v425_v34  ;;  %v2475_v40 = vshrl.u32 %v6993_v31, 16  ;;  %v2478_v41 = vshll.u32 %v6993_v31, 16  ;;  %v2999_v45 = vshrl.u32 %v2104_v33, 16 }
  0xfa   : > { %v2498_v46 = vor.u32 %v2497_v38, %v2494_v37  ;;  %v3002_v49 = vshll.u32 %v2104_v33, 16  ;;  %v1219_v31 = vshll.u32 %v6925_v4, 16  ;;  %v548_v19 = vsel %vm7542_vm2, 0, %v547_v25  ;;  %v586_v4 = vld [vmem:[#allocation2 + $0x40] sm:$0x1] }
  0xfb   : > { %v492_v53 = vmax.f32 %v426_v39, 0.0  ;;  %v2477_v54 = vrot.slane %v2475_v40, 3  ;;  %v2480_v55 = vrot.slane %v2478_v41, 4  ;;  %v3001_v60 = vrot.slane %v2999_v45, 3  ;;  %549 = vst [vmem:[#allocation2 + $0x94] sm:$0x8] %v548_v19 }
  0xfc   : > { %3386 = vmatmul.bf16.gmra.mxu2 %v2498_v46  ;;  %v7161_v59 = vld [vmem:[#allocation2 + $0x184] sm:$0xf0]   ;;  %v3004_v3 = vrot.slane %v3002_v49, 4  ;;  %v2224_v37 = vor.u32 %v2223_v24, %v2220_v23  ;;  %v1218_v40 = vrot.slane %v1216_v26, 3  ;;  %v1221_v49 = vrot.slane %v1219_v31, 4  ;;  %v6508_v31 = vld [vmem:[%s9144_s3 + $0x58] sm:$0xff] }
  0xfd   : > { %v6601_v0 = vpack.c.bf16 %v492_v53, %v491_v51  ;;  %v2481_v1 = vor.u32 %v2480_v55, %v2477_v54  ;;  %v7041_v2 = vor.u32 %v7161_v59, %v7040_v47  ;;  %v6928_v59 = vld [vmem:[#allocation2 + $0x4c] sm:$0x8]  ;;  %3778 = vmatpush.bf16.msrb.mxu1 %v6508_v31  ;;  %v592_v31 = vld [vmem:[#allocation2 + $0x70] sm:$0x1] }
  0xfe   : > { %v3005_v18 = vor.u32 %v3004_v3, %v3001_v60  ;;  %v2879_v44 = vshrl.u32 %v2224_v37, 16  ;;  %v2882_v57 = vshll.u32 %v2224_v37, 16  ;;  %v7133_v60 = vld [vmem:[#allocation2 + $0x4c] sm:$0xf0]   ;;  %v1222_v5 = vor.u32 %v1221_v49, %v1218_v40 }
  0xff   : > { %6854 = vst [vmem:[#allocation2 + $0x80] sm:$0xff] %v6601_v0   ;;  %v2490_v7 = vsel %vm1128_vm6, %v2481_v1, %v7716_v56  ;;  %v2991_v58 = vshrl.u32 %v7041_v2, 16  ;;  %v2994_v8 = vshll.u32 %v7041_v2, 16  ;;  %v6741_v9 = vunpack.c.h.b16 %v6601_v0 }
 0x100   : > { %v428_v12 = vpop.f32.mrf.mxu0  ;;  %3297 = vmatmul.bf16.gmra.mxu1 %v2490_v7  ;;  %v2154_v14 = vshrl.u32 %v6601_v0, 16  ;;  %v2157_v16 = vshll.u32 %v6601_v0, 16  ;;  %v2884_v10 = vrot.slane %v2882_v57, 4  ;;  %v1231_v24 = vsel %vm1128_vm6, %v1222_v5, %v7681_v28  ;;  %v7134_v57 = vld [vmem:[#allocation2 + $0x64] sm:$0xf0]  }
 0x101   : > { %v2993_v17 = vrot.slane %v2991_v58, 3  ;;  %v2996_v42 = vrot.slane %v2994_v8, 4  ;;  %v2082_v20 = vpack.c.b16 %v6741_v9, %v6741_v9  ;;  %v429_v38 = vadd.f32 %v7598_v11, %v428_v12 }
 0x102   : > { %v2156_v21 = vrot.slane %v2154_v14, 4  ;;  %v2159_v22 = vrot.slane %v2157_v16, 5  ;;  %v6929_v8 = vor.u32 %v7133_v60, %v6928_v59  ;;  %v2881_v9 = vrot.slane %v2879_v44, 3  ;;  %v7000_v19 = vld [vmem:[#allocation2 + $0x94] sm:$0x8] }
 0x103   : > { %3698 = vmatmul.bf16.gmra.mxu0 %v1188_v13  ;;  %v2997_v62 = vor.u32 %v2996_v42, %v2993_v17  ;;  %v2526_v29 = vshrl.u32 %v2082_v20, 16  ;;  %v2529_v33 = vshll.u32 %v2082_v20, 16  ;;  %v493_v0 = vmax.f32 %v429_v38, 0.0  ;;  %v6932_v44 = vld [vmem:[#allocation2 + $0x64] sm:$0x8] }
 0x104   : > { %v2160_v30 = vor.u32 %v2159_v22, %v2156_v21  ;;  %v2226_v12 = vshrl.u32 %v7667_v48, 16  ;;  %v587_v13 = vsel %vm7573_vm5, 0, %v586_v4  ;;  %v2229_v20 = vshll.u32 %v7667_v48, 16 }
 0x105   : > { %v3006_v32 = vsel %vm1128_vm6, %v2997_v62, %v3005_v18  ;;  %v2528_v45 = vrot.slane %v2526_v29, 3  ;;  %v2531_v54 = vrot.slane %v2529_v33, 4  ;;  %588 = vst [vmem:[#allocation2 + $0x40] sm:$0x1] %v587_v13  ;;  %v1259_v25 = vshrl.u32 %v6929_v8, 16 }
 0x106   : > { %3357 = vmatmul.bf16.gmra.mxu3 %v3006_v32  ;;  %v7150_v34 = vld [vmem:[#allocation2 + $0x7c] sm:$0xf0]   ;;  %v2535_v35 = vshrl.u32 %v2160_v30, 16  ;;  %v2538_v36 = vshll.u32 %v2160_v30, 16  ;;  %v550_v62 = vld [vmem:[#allocation2 + $0xac] sm:$0x8]  ;;  %v2885_v26 = vor.u32 %v2884_v10, %v2881_v9  ;;  %v6933_v9 = vor.u32 %v7134_v57, %v6932_v44 }
 0x107   : > { %v6997_v39 = vor.u32 %v7150_v34, %v6996_v27  ;;  %v7732_v58 = vor.u32 %v2531_v54, %v2528_v45  ;;  %v1262_v29 = vshll.u32 %v6929_v8, 16  ;;  %v2228_v30 = vrot.slane %v2226_v12, 4 }
 0x108   : > { %v430_v41 = vpop.f32.mrf.mxu0  ;;  %v2537_v46 = vrot.slane %v2535_v35, 3  ;;  %v2540_v47 = vrot.slane %v2538_v36, 4  ;;  %v2231_v33 = vrot.slane %v2229_v20, 5  ;;  %v551_v34 = vsel %vm7542_vm2, 0, %v550_v62 }
 0x109   : > { %v431_v50 = vadd.f32 %v7598_v11, %v430_v41  ;;  %v2518_v51 = vshrl.u32 %v6997_v39, 16  ;;  %v2521_v53 = vshll.u32 %v6997_v39, 16  ;;  %552 = vst [vmem:[#allocation2 + $0xac] sm:$0x8] %v551_v34  ;;  %v1261_v37 = vrot.slane %v1259_v25, 3 }
 0x10a   : > { %v2541_v55 = vor.u32 %v2540_v47, %v2537_v46  ;;  %v1264_v49 = vrot.slane %v1262_v29, 4  ;;  %v2237_v10 = vshll.u32 %v7688_v61, 16 }
 0x10b   : > { %v494_v1 = vmax.f32 %v431_v50, 0.0  ;;  %v2520_v2 = vrot.slane %v2518_v51, 3  ;;  %v2523_v3 = vrot.slane %v2521_v53, 4  ;;  %v2232_v50 = vor.u32 %v2231_v33, %v2228_v30 }
 0x10c   : > { %3391 = vmatmul.bf16.gmra.mxu2 %v2541_v55  ;;  %v1265_v8 = vor.u32 %v1264_v49, %v1261_v37  ;;  %v1302_v30 = vshrl.u32 %v6933_v9, 16  ;;  %v1305_v37 = vshll.u32 %v6933_v9, 16  ;;  %v595_v49 = vld [vmem:[#allocation2 + $0x88] sm:$0x1] }
 0x10d   : > { %v6606_v6 = vpack.c.bf16 %v494_v1, %v493_v0  ;;  %v2524_v7 = vor.u32 %v2523_v3, %v2520_v2  ;;  %v589_v2 = vld [vmem:[#allocation2 + $0x58] sm:$0x1]  ;;  %v2922_v3 = vshrl.u32 %v2232_v50, 16  ;;  %v2925_v4 = vshll.u32 %v2232_v50, 16 }
 0x10e   : > { %v590_v12 = vsel %vm7573_vm5, 0, %v589_v2  ;;  %v1274_v25 = vsel %vm1128_vm6, %v1265_v8, %v7701_v43  ;;  %v6542_v43 = vld [vmem:[%s9144_s3 + $0x168] sm:$0xff] }
 0x10f   : > { %6855 = vst [vmem:[#allocation2 + $0x98] sm:$0xff] %v6606_v6   ;;  %v2533_v14 = vsel %vm1128_vm6, %v2524_v7, %v7732_v58  ;;  %v6745_v16 = vunpack.c.h.b16 %v6606_v6  ;;  %v2162_v17 = vshrl.u32 %v6606_v6, 16  ;;  %v2165_v42 = vshll.u32 %v6606_v6, 16 }
 0x110   : > { %v433_v18 = vpop.f32.mrf.mxu0  ;;  %3302 = vmatmul.bf16.gmra.mxu1 %v2533_v14  ;;  %v2924_v20 = vrot.slane %v2922_v3, 3  ;;  %591 = vst [vmem:[#allocation2 + $0x58] sm:$0x1] %v590_v12  ;;  %v596_v3 = vsel %vm7573_vm5, 0, %v595_v49  ;;  %v6936_v12 = vld [vmem:[#allocation2 + $0x7c] sm:$0x8] }
 0x111   : > { %v2084_v21 = vpack.c.b16 %v6745_v16, %v6745_v16  ;;  %v2164_v22 = vrot.slane %v2162_v17, 4  ;;  %v2167_v23 = vrot.slane %v2165_v42, 5  ;;  %v434_v38 = vadd.f32 %v7598_v11, %v433_v18  ;;  %v6544_v42 = vld [vmem:[%s9144_s3 + $0x178] sm:$0xff]  ;;  %597 = vst [vmem:[#allocation2 + $0x88] sm:$0x1] %v596_v3 }
 0x112   : > { %3452 = vmatpush.bf16.msrb.mxu3 %v6544_v42  ;;  %v7135_v42 = vld [vmem:[#allocation2 + $0x7c] sm:$0xf0]  }
 0x113   : > { %3703 = vmatmul.bf16.gmra.mxu0 %v1231_v24  ;;  %v2168_v27 = vor.u32 %v2167_v23, %v2164_v22  ;;  %v2569_v48 = vshrl.u32 %v2084_v21, 16  ;;  %v2572_v32 = vshll.u32 %v2084_v21, 16  ;;  %v495_v59 = vmax.f32 %v434_v38, 0.0  ;;  %v6543_v24 = vld [vmem:[%s9144_s3 + $0x170] sm:$0xff] }
 0x114   : > { %v2927_v21 = vrot.slane %v2925_v4, 4 }
 0x115   : > { %v2578_v35 = vshrl.u32 %v2168_v27, 16  ;;  %v2581_v28 = vshll.u32 %v2168_v27, 16  ;;  %v2571_v46 = vrot.slane %v2569_v48, 3  ;;  %v2574_v47 = vrot.slane %v2572_v32, 4  ;;  %v553_v27 = vld [vmem:[#allocation2 + $0xc4] sm:$0x8] }
 0x116   : > { %3431 = vmatmul.bf16.vlgmr.msra.gmra.mxu3 %v2885_v26  ;;  %v7151_v36 = vld [vmem:[#allocation2 + $0x94] sm:$0xf0]   ;;  %v2239_v26 = vrot.slane %v2237_v10, 5  ;;  %v7004_v48 = vld [vmem:[#allocation2 + $0xac] sm:$0x8]  ;;  %v554_v34 = vsel %vm7542_vm2, 0, %v553_v27 }
 0x117   : > { %v7001_v39 = vor.u32 %v7151_v36, %v7000_v19  ;;  %v2580_v40 = vrot.slane %v2578_v35, 3  ;;  %v2583_v41 = vrot.slane %v2581_v28, 4  ;;  %v7749_v7 = vor.u32 %v2574_v47, %v2571_v46  ;;  %3453 = vmatpush.bf16.msrb.mxu3 %v6543_v24  ;;  %555 = vst [vmem:[#allocation2 + $0xc4] sm:$0x8] %v554_v34  ;;  %v6507_v24 = vld [vmem:[%s9144_s3 + $0x50] sm:$0xff] }
 0x118   : > { %v435_v45 = vpop.f32.mrf.mxu0  ;;  %v2928_v19 = vor.u32 %v2927_v21, %v2924_v20  ;;  %3779 = vmatpush.bf16.msrb.mxu1 %v6507_v24 }
 0x119   : > { %v436_v51 = vadd.f32 %v7598_v11, %v435_v45  ;;  %v2561_v53 = vshrl.u32 %v7001_v39, 16  ;;  %v2564_v54 = vshll.u32 %v7001_v39, 16  ;;  %v2584_v55 = vor.u32 %v2583_v41, %v2580_v40  ;;  %v7775_v40 = vld [vmem:[%s9143_s2] ss:$0 sm:$0xff] }
 0x11a   : > { %v2234_v11 = vshrl.u32 %v7688_v61, 16  ;;  %v593_v39 = vsel %vm7573_vm5, 0, %v592_v31 }
 0x11b   : > { %v496_v60 = vmax.f32 %v436_v51, 0.0  ;;  %v2563_v0 = vrot.slane %v2561_v53, 3  ;;  %v2566_v1 = vrot.slane %v2564_v54, 4  ;;  %594 = vst [vmem:[#allocation2 + $0x70] sm:$0x1] %v593_v39  ;;  %v1304_v54 = vrot.slane %v1302_v30, 3  ;;  %3454 = vmatpush.bf16.msrb.mxu3 %v6542_v43 }
 0x11c   : > { %3396 = vmatmul.bf16.gmra.mxu2 %v2584_v55  ;;  %v2236_v62 = vrot.slane %v2234_v11, 4  ;;  %v6539_v30 = vld [vmem:[%s9144_s3 + $0x150] sm:$0xff] }
 0x11d   : > { %v6611_v5 = vpack.c.bf16 %v496_v60, %v495_v59  ;;  %v2567_v6 = vor.u32 %v2566_v1, %v2563_v0  ;;  %v6541_v60 = vld [vmem:[%s9144_s3 + $0x160] sm:$0xff]  ;;  %v1307_v0 = vrot.slane %v1305_v37, 4 }
 0x11e   : > { %v2240_v38 = vor.u32 %v2239_v26, %v2236_v62  ;;  %v2245_v62 = vshll.u32 %v7707_v15, 16 }
 0x11f   : > { %6856 = vst [vmem:[#allocation2 + $0xb0] sm:$0xff] %v6611_v5   ;;  %v2576_v13 = vsel %vm1128_vm6, %v2567_v6, %v7749_v7  ;;  %v6749_v14 = vunpack.c.h.b16 %v6611_v5  ;;  %v2170_v16 = vshrl.u32 %v6611_v5, 16  ;;  %v2173_v17 = vshll.u32 %v6611_v5, 16  ;;  %3455 = vmatpush.bf16.msrb.mxu3 %v6541_v60 }
 0x120   : > { %v438_v18 = vpop.f32.mrf.mxu0  ;;  %3307 = vmatmul.bf16.gmra.mxu1 %v2576_v13  ;;  %v2965_v1 = vshrl.u32 %v2240_v38, 16  ;;  %v2968_v2 = vshll.u32 %v2240_v38, 16  ;;  %v1961_v13 = vld [vmem:[#allocation2 + $0x28] sm:$0x1] }
 0x121   : > { %v2086_v61 = vpack.c.b16 %v6749_v14, %v6749_v14  ;;  %v2172_v22 = vrot.slane %v2170_v16, 4  ;;  %v2175_v23 = vrot.slane %v2173_v17, 5  ;;  %v439_v41 = vadd.f32 %v7775_v40, %v438_v18 }
 0x122   : > { %v1308_v14 = vor.u32 %v1307_v0, %v1304_v54  ;;  %v2967_v16 = vrot.slane %v2965_v1, 3  ;;  %v2970_v17 = vrot.slane %v2968_v2, 4  ;;  %v2242_v18 = vshrl.u32 %v7707_v15, 16  ;;  %v7008_v15 = vld [vmem:[#allocation2 + $0xc4] sm:$0x8] }
 0x123   : > { %3708 = vmatmul.bf16.gmra.mxu0 %v1274_v25  ;;  %v2176_v29 = vor.u32 %v2175_v23, %v2172_v22  ;;  %v2612_v32 = vshrl.u32 %v2086_v61, 16  ;;  %v2615_v33 = vshll.u32 %v2086_v61, 16  ;;  %v497_v4 = vmax.f32 %v439_v41, 0.0  ;;  %v6540_v23 = vld [vmem:[%s9144_s3 + $0x158] sm:$0xff]  ;;  %v6537_v2 = vld [vmem:[%s9144_s3 + $0x140] sm:$0xff] }
 0x124   : > { %3456 = vmatpush.bf16.msrb.mxu3 %v6540_v23  ;;  %v1317_v31 = vsel %vm1128_vm6, %v1308_v14, %v7716_v56  ;;  %v6538_v56 = vld [vmem:[%s9144_s3 + $0x148] sm:$0xff] }
 0x125   : > { %v2621_v35 = vshrl.u32 %v2176_v29, 16  ;;  %v2624_v28 = vshll.u32 %v2176_v29, 16  ;;  %v2614_v51 = vrot.slane %v2612_v32, 3  ;;  %v2617_v53 = vrot.slane %v2615_v33, 4 }
 0x126   : > { %3436 = vmatmul.bf16.gmra.mxu3 %v2928_v19  ;;  %v7152_v36 = vld [vmem:[#allocation2 + $0xac] sm:$0xf0]   ;;  %v6937_v19 = vor.u32 %v7135_v42, %v6936_v12  ;;  %v2265_v32 = vunpack.c.l.b16 %v1961_v13  ;;  %v2971_v33 = vor.u32 %v2970_v17, %v2967_v16 }
 0x127   : > { %v7005_v45 = vor.u32 %v7152_v36, %v7004_v48  ;;  %v2623_v46 = vrot.slane %v2621_v35, 3  ;;  %v2626_v47 = vrot.slane %v2624_v28, 4  ;;  %v7784_v10 = vor.u32 %v2617_v53, %v2614_v51  ;;  %v556_v48 = vld [vmem:[#allocation2 + $0xdc] sm:$0x8] }
 0x128   : > { %v440_v50 = vpop.f32.mrf.mxu0  ;;  %v2244_v35 = vrot.slane %v2242_v18, 4  ;;  %v2247_v36 = vrot.slane %v2245_v62, 5  ;;  %v557_v37 = vsel %vm7542_vm2, 0, %v556_v48  ;;  %3457 = vmatpush.bf16.msrb.mxu3 %v6539_v30 }
 0x129   : > { %v441_v55 = vadd.f32 %v7775_v40, %v440_v50  ;;  %v2604_v44 = vshrl.u32 %v7005_v45, 16  ;;  %v2607_v57 = vshll.u32 %v7005_v45, 16  ;;  %v2627_v59 = vor.u32 %v2626_v47, %v2623_v46  ;;  %558 = vst [vmem:[#allocation2 + $0xdc] sm:$0x8] %v557_v37  ;;  %v559_v37 = vld [vmem:[#allocation2 + $0xf4] sm:$0x8] }
 0x12a   : > { %v1345_v45 = vshrl.u32 %v6937_v19, 16  ;;  %v1348_v46 = vshll.u32 %v6937_v19, 16  ;;  %v2281_v47 = vpack.c.b16 %v2265_v32, %v2265_v32  ;;  %v1962_v19 = vld [vmem:[#allocation2 + $0x40] sm:$0x1] }
 0x12b   : > { %v498_v5 = vmax.f32 %v441_v55, 0.0  ;;  %v2606_v6 = vrot.slane %v2604_v44, 3  ;;  %v2609_v8 = vrot.slane %v2607_v57, 4  ;;  %v2248_v57 = vor.u32 %v2247_v36, %v2244_v35 }
 0x12c   : > { %3401 = vmatmul.bf16.gmra.mxu2 %v2627_v59  ;;  %3458 = vmatpush.bf16.msrb.mxu3 %v6538_v56  ;;  %v1347_v3 = vrot.slane %v1345_v45, 3  ;;  %v7829_v56 = vld [vmem:[#allocation2 + $0x38] sm:$0xff]  ;;  %v745_v45 = vld [vmem:[#allocation2 + $0x40] sm:$0x1] }
 0x12d   : > { %v6616_v9 = vpack.c.bf16 %v498_v5, %v497_v4  ;;  %v2610_v11 = vor.u32 %v2609_v8, %v2606_v6  ;;  %v1350_v4 = vrot.slane %v1348_v46, 4  ;;  %v7811_v5 = vld [vmem:[#allocation2 + $0x20] sm:$0xff]  ;;  %v2298_v8 = vrot.slane %v2281_v47, 5 }
 0x12e   : > { %v7814_v6 = vrot.slane %v7811_v5, 5  ;;  %v3008_v14 = vshrl.u32 %v2248_v57, 16  ;;  %v3011_v16 = vshll.u32 %v2248_v57, 16 }
 0x12f   : > { %6857 = vst [vmem:[#allocation2 + $0xc8] sm:$0xff] %v6616_v9   ;;  %v2619_v20 = vsel %vm1128_vm6, %v2610_v11, %v7784_v10  ;;  %v6753_v21 = vunpack.c.h.b16 %v6616_v9  ;;  %v2178_v61 = vshrl.u32 %v6616_v9, 16  ;;  %v2181_v22 = vshll.u32 %v6616_v9, 16 }
 0x130   : > { %v443_v25 = vpop.f32.mrf.mxu0  ;;  %3312 = vmatmul.bf16.gmra.mxu1 %v2619_v20  ;;  %3459 = vmatpush.bf16.msrb.mxu3 %v6537_v2  ;;  %v1351_v20 = vor.u32 %v1350_v4, %v1347_v3  ;;  %v3013_v30 = vrot.slane %v3011_v16, 4  ;;  %v7012_v47 = vld [vmem:[#allocation2 + $0xdc] sm:$0x8] }
 0x131   : > { %v2088_v26 = vpack.c.b16 %v6753_v21, %v6753_v21  ;;  %v2180_v27 = vrot.slane %v2178_v61, 4  ;;  %v2183_v29 = vrot.slane %v2181_v22, 5  ;;  %v444_v49 = vadd.f32 %v7775_v40, %v443_v25  ;;  %v6940_v21 = vld [vmem:[#allocation2 + $0x94] sm:$0x8] }
 0x132   : > { %v2299_v61 = vsel %vm1079_vm7, %v7814_v6, %v2298_v8  ;;  %v2372_v22 = vshrl.u32 %v7814_v6, 16  ;;  %v1360_v35 = vsel %vm1128_vm6, %v1351_v20, %v7732_v58  ;;  %v1049_v8 = vunpack.c.l.b16 %v745_v45 }
 0x133   : > { %3713 = vmatmul.bf16.gmra.mxu0 %v1317_v31  ;;  %v2184_v34 = vor.u32 %v2183_v29, %v2180_v27  ;;  %v2655_v28 = vshrl.u32 %v2088_v26, 16  ;;  %v2658_v43 = vshll.u32 %v2088_v26, 16  ;;  %v499_v9 = vmax.f32 %v444_v49, 0.0  ;;  %v7136_v26 = vld [vmem:[#allocation2 + $0x94] sm:$0xf0]  }
 0x134   : > { %v3010_v29 = vrot.slane %v3008_v14, 3  ;;  %v2375_v31 = vshll.u32 %v7814_v6, 16 }
 0x135   : > { %v2664_v38 = vshrl.u32 %v2184_v34, 16  ;;  %v2667_v39 = vshll.u32 %v2184_v34, 16  ;;  %v2657_v55 = vrot.slane %v2655_v28, 3  ;;  %v2660_v44 = vrot.slane %v2658_v43, 4 }
 0x136   : > { %3441 = vmatmul.bf16.gmra.mxu3 %v2971_v33  ;;  %v7153_v41 = vld [vmem:[#allocation2 + $0xc4] sm:$0xf0]   ;;  %v2380_v34 = vshrl.u32 %v2299_v61, 16  ;;  %v2374_v28 = vrot.slane %v2372_v22, 3  ;;  %v2383_v43 = vshll.u32 %v2299_v61, 16  ;;  %v3014_v46 = vor.u32 %v3013_v30, %v3010_v29 }
 0x137   : > { %v7009_v50 = vor.u32 %v7153_v41, %v7008_v15  ;;  %v2666_v51 = vrot.slane %v2664_v38, 3  ;;  %v2669_v53 = vrot.slane %v2667_v39, 4  ;;  %v7816_v18 = vor.u32 %v2660_v44, %v2657_v55  ;;  %v6506_v38 = vld [vmem:[%s9144_s3 + $0x48] sm:$0xff] }
 0x138   : > { %v445_v54 = vpop.f32.mrf.mxu0  ;;  %v6941_v15 = vor.u32 %v7136_v26, %v6940_v21  ;;  %v2266_v39 = vunpack.c.l.b16 %v1962_v19  ;;  %v7832_v41 = vrot.slane %v7829_v56, 5  ;;  %v2377_v55 = vrot.slane %v2375_v31, 4  ;;  %3780 = vmatpush.bf16.msrb.mxu1 %v6506_v38 }
 0x139   : > { %v446_v59 = vadd.f32 %v7775_v40, %v445_v54  ;;  %v2647_v60 = vshrl.u32 %v7009_v50, 16  ;;  %v2650_v0 = vshll.u32 %v7009_v50, 16  ;;  %v2670_v1 = vor.u32 %v2669_v53, %v2666_v51  ;;  %v6520_v51 = vld [vmem:[%s9144_s3 + $0xb8] sm:$0xff] }
 0x13a   : > { %v560_v50 = vsel %vm7542_vm2, 0, %v559_v37  ;;  %v2382_v44 = vrot.slane %v2380_v34, 3  ;;  %3863 = vmatpush.bf16.msrb.mxu2 %v6520_v51  ;;  %v2415_v14 = vshrl.u32 %v7832_v41, 16  ;;  %v1065_v26 = vpack.c.b16 %v1049_v8, %v1049_v8  ;;  %v562_v51 = vld [vmem:[#allocation2 + $0x10c] sm:$0x8] }
 0x13b   : > { %v500_v11 = vmax.f32 %v446_v59, 0.0  ;;  %v2649_v12 = vrot.slane %v2647_v60, 3  ;;  %v2652_v13 = vrot.slane %v2650_v0, 4  ;;  %561 = vst [vmem:[#allocation2 + $0xf4] sm:$0x8] %v560_v50  ;;  %v1388_v60 = vshrl.u32 %v6941_v15, 16 }
 0x13c   : > { %3406 = vmatmul.bf16.gmra.mxu2 %v2670_v1  ;;  %v1391_v0 = vshll.u32 %v6941_v15, 16  ;;  %v2385_v1 = vrot.slane %v2383_v43, 4  ;;  %v2417_v15 = vrot.slane %v2415_v14, 3 }
 0x13d   : > { %v6621_v17 = vpack.c.bf16 %v500_v11, %v499_v9  ;;  %v2653_v42 = vor.u32 %v2652_v13, %v2649_v12  ;;  %v2282_v13 = vpack.c.b16 %v2266_v39, %v2266_v39  ;;  %v1390_v61 = vrot.slane %v1388_v60, 3 }
 0x13e   : > { %v1393_v22 = vrot.slane %v1391_v0, 4  ;;  %v2386_v29 = vor.u32 %v2385_v1, %v2382_v44  ;;  %v563_v0 = vsel %vm7542_vm2, 0, %v562_v51 }
 0x13f   : > { %6858 = vst [vmem:[#allocation2 + $0xe0] sm:$0xff] %v6621_v17   ;;  %v2662_v23 = vsel %vm1128_vm6, %v2653_v42, %v7816_v18  ;;  %v6757_v24 = vunpack.c.h.b16 %v6621_v17  ;;  %v2186_v25 = vshrl.u32 %v6621_v17, 16  ;;  %v2189_v62 = vshll.u32 %v6621_v17, 16 }
 0x140   : > { %v448_v27 = vpop.f32.mrf.mxu0  ;;  %3317 = vmatmul.bf16.gmra.mxu1 %v2662_v23  ;;  %v2418_v23 = vshll.u32 %v7832_v41, 16  ;;  %v2301_v30 = vrot.slane %v2282_v13, 5  ;;  %v1394_v34 = vor.u32 %v1393_v22, %v1390_v61  ;;  %564 = vst [vmem:[#allocation2 + $0x10c] sm:$0x8] %v563_v0 }
 0x141   : > { %v2090_v48 = vpack.c.b16 %v6757_v24, %v6757_v24  ;;  %v2188_v32 = vrot.slane %v2186_v25, 4  ;;  %v2191_v33 = vrot.slane %v2189_v62, 5  ;;  %v449_v57 = vadd.f32 %v7775_v40, %v448_v27 }
 0x142   : > { %v7843_v27 = vor.u32 %v2377_v55, %v2374_v28  ;;  %v2420_v43 = vrot.slane %v2418_v23, 4  ;;  %v7855_v50 = vsel %vm1079_vm7, %v7832_v41, %v2301_v30 }
 0x143   : > { %3718 = vmatmul.bf16.gmra.mxu0 %v1360_v35  ;;  %v2192_v36 = vor.u32 %v2191_v33, %v2188_v32  ;;  %v2698_v58 = vshrl.u32 %v2090_v48, 16  ;;  %v2701_v49 = vshll.u32 %v2090_v48, 16  ;;  %v501_v21 = vmax.f32 %v449_v57, 0.0  ;;  %v6944_v35 = vld [vmem:[#allocation2 + $0xac] sm:$0x8] }
 0x144   : > { %v1087_v33 = vrot.slane %v1065_v26, 5 }
 0x145   : > { %v2707_v53 = vshrl.u32 %v2192_v36, 16  ;;  %v2710_v54 = vshll.u32 %v2192_v36, 16  ;;  %v2700_v11 = vrot.slane %v2698_v58, 3  ;;  %v2703_v12 = vrot.slane %v2701_v49, 4  ;;  %v1963_v36 = vld [vmem:[#allocation2 + $0x58] sm:$0x1] }
 0x146   : > { %3446 = vmatmul.bf16.gmra.mxu3 %v3014_v46  ;;  %v7154_v59 = vld [vmem:[#allocation2 + $0xdc] sm:$0xf0]   ;;  %v7137_v46 = vld [vmem:[#allocation2 + $0xac] sm:$0xf0]   ;;  %v2387_v49 = vsel %vm1128_vm6, %v7843_v27, %v2386_v29  ;;  %v2267_v57 = vunpack.c.l.b16 %v1963_v36 }
 0x147   : > { %v7013_v2 = vor.u32 %v7154_v59, %v7012_v47  ;;  %v2709_v3 = vrot.slane %v2707_v53, 3  ;;  %v2712_v4 = vrot.slane %v2710_v54, 4  ;;  %v7845_v32 = vor.u32 %v2703_v12, %v2700_v11  ;;  %v7016_v11 = vld [vmem:[#allocation2 + $0xf4] sm:$0x8] }
 0x148   : > { %v450_v9 = vpop.f32.mrf.mxu0  ;;  %v1088_v53 = vsel %vm1079_vm7, %v7832_v41, %v1087_v33  ;;  %v1403_v59 = vsel %vm1128_vm6, %v1394_v34, %v7749_v7  ;;  %v6945_v60 = vor.u32 %v7137_v46, %v6944_v35  ;;  %v7866_v41 = vld [vmem:[#allocation2 + $0x50] sm:$0xff] }
 0x149   : > { %v451_v16 = vadd.f32 %v7775_v40, %v450_v9  ;;  %v2690_v17 = vshrl.u32 %v7013_v2, 16  ;;  %v2693_v42 = vshll.u32 %v7013_v2, 16  ;;  %v2713_v20 = vor.u32 %v2712_v4, %v2709_v3  ;;  %v746_v9 = vld [vmem:[#allocation2 + $0x58] sm:$0x1]  ;;  %v6519_v35 = vld [vmem:[%s9144_s3 + $0xb0] sm:$0xff] }
 0x14a   : > { %v1250_v1 = vshrl.u32 %v1088_v53, 16  ;;  %v7863_v3 = vor.u32 %v2420_v43, %v2417_v15  ;;  %v2423_v4 = vshrl.u32 %v7855_v50, 16  ;;  %v7869_v8 = vrot.slane %v7866_v41, 5  ;;  %v6505_v15 = vld [vmem:[%s9144_s3 + $0x40] sm:$0xff]  ;;  %3864 = vmatpush.bf16.msrb.mxu2 %v6519_v35 }
 0x14b   : > { %v502_v24 = vmax.f32 %v451_v16, 0.0  ;;  %v2692_v25 = vrot.slane %v2690_v17, 3  ;;  %v2695_v62 = vrot.slane %v2693_v42, 4  ;;  %v1253_v14 = vshll.u32 %v1088_v53, 16  ;;  %3781 = vmatpush.bf16.msrb.mxu1 %v6505_v15 }
 0x14c   : > { %3411 = vmatmul.bf16.gmra.mxu2 %v2713_v20  ;;  %v1252_v13 = vrot.slane %v1250_v1, 3  ;;  %v2426_v20 = vshll.u32 %v7855_v50, 16  ;;  %v1431_v22 = vshrl.u32 %v6945_v60, 16  ;;  %v1434_v23 = vshll.u32 %v6945_v60, 16 }
 0x14d   : > { %v6626_v31 = vpack.c.bf16 %v502_v24, %v501_v21  ;;  %v3283_v19 = vpop.f32.mrf.mxu1  ;;  %v2696_v48 = vor.u32 %v2695_v62, %v2692_v25  ;;  %v7872_v21 = vpack.c.b16 %v2267_v57, %v2267_v57  ;;  %v1255_v24 = vrot.slane %v1253_v14, 4 }
 0x14e   : > { %v3372_v38 = vpop.f32.mrf.mxu2  ;;  %v1050_v25 = vunpack.c.l.b16 %v746_v9  ;;  %v1436_v46 = vrot.slane %v1434_v23, 4  ;;  %v2428_v57 = vrot.slane %v2426_v20, 4  ;;  %v7138_v20 = vld [vmem:[#allocation2 + $0xc4] sm:$0xf0]  }
 0x14f   : > { %6859 = vst [vmem:[#allocation2 + $0xf8] sm:$0xff] %v6626_v31   ;;  %v2705_v37 = vsel %vm1128_vm6, %v2696_v48, %v7845_v32  ;;  %v6761_v28 = vunpack.c.h.b16 %v6626_v31  ;;  %v2194_v39 = vshrl.u32 %v6626_v31, 16  ;;  %v2197_v45 = vshll.u32 %v6626_v31, 16 }
 0x150   : > { %v453_v47 = vpop.f32.mrf.mxu0  ;;  %3322 = vmatmul.bf16.gmra.mxu1 %v2705_v37  ;;  %v7849_v58 = vadd.f32 %v3372_v38, %v3283_v19  ;;  %v1256_v43 = vor.u32 %v1255_v24, %v1252_v13  ;;  %v1066_v50 = vpack.c.b16 %v1050_v25, %v1050_v25  ;;  %v565_v24 = vld [vmem:[#allocation2 + $0x124] sm:$0x8] }
 0x151   : > { %v2092_v54 = vpack.c.b16 %v6761_v28, %v6761_v28  ;;  %v2196_v55 = vrot.slane %v2194_v39, 4  ;;  %v2199_v44 = vrot.slane %v2197_v45, 5  ;;  %v454_v62 = vadd.f32 %v7775_v40, %v453_v47  ;;  %v6518_v47 = vld [vmem:[%s9144_s3 + $0xa8] sm:$0xff] }
 0x152   : > { %v1433_v45 = vrot.slane %v1431_v22, 3  ;;  %3865 = vmatpush.bf16.msrb.mxu2 %v6518_v47  ;;  %v1090_v13 = vrot.slane %v1066_v50, 5  ;;  %v566_v35 = vsel %vm7542_vm2, 0, %v565_v24  ;;  %v598_v50 = vld [vmem:[#allocation2 + $0xa0] sm:$0x1] }
 0x153   : > { %3723 = vmatmul.bf16.gmra.mxu0 %v1403_v59  ;;  %v2200_v2 = vor.u32 %v2199_v44, %v2196_v55  ;;  %v2741_v7 = vshrl.u32 %v2092_v54, 16  ;;  %v2744_v12 = vshll.u32 %v2092_v54, 16  ;;  %v503_v51 = vmax.f32 %v454_v62, 0.0  ;;  %567 = vst [vmem:[#allocation2 + $0x124] sm:$0x8] %v566_v35 }
 0x154   : > { %v2425_v44 = vrot.slane %v2423_v4, 3  ;;  %v1437_v9 = vor.u32 %v1436_v46, %v1433_v45 }
 0x155   : > { %v3285_v16 = vpop.f32.mrf.mxu1  ;;  %v2750_v17 = vshrl.u32 %v2200_v2, 16  ;;  %v2753_v42 = vshll.u32 %v2200_v2, 16  ;;  %v2743_v33 = vrot.slane %v2741_v7, 3  ;;  %v2746_v34 = vrot.slane %v2744_v12, 4 }
 0x156   : > { %3460 = vmatmul.bf16.vlgmr.msrb.gmra.mxu3 %v2387_v49  ;;  %v7155_v61 = vld [vmem:[#allocation2 + $0xf4] sm:$0xf0]   ;;  %v3374_v26 = vpop.f32.mrf.mxu2  ;;  %v7891_v49 = vsel %vm1128_vm6, %v7863_v3, %v1256_v43  ;;  %v2458_v2 = vshrl.u32 %v7869_v8, 16  ;;  %v2304_v7 = vrot.slane %v7872_v21, 5  ;;  %v2461_v12 = vshll.u32 %v7869_v8, 16  ;;  %v6517_v21 = vld [vmem:[%s9144_s3 + $0xa0] sm:$0xff] }
 0x157   : > { %v7017_v29 = vor.u32 %v7155_v61, %v7016_v11  ;;  %v2752_v30 = vrot.slane %v2750_v17, 3  ;;  %v2755_v31 = vrot.slane %v2753_v42, 4  ;;  %v7875_v48 = vadd.f32 %v3374_v26, %v3285_v16  ;;  %v6948_v11 = vld [vmem:[#allocation2 + $0xc4] sm:$0x8]  ;;  %3866 = vmatpush.bf16.msrb.mxu2 %v6517_v21 }
 0x158   : > { %v455_v19 = vpop.f32.mrf.mxu0  ;;  %v7893_v1 = vor.u32 %v2746_v34, %v2743_v33  ;;  %v2429_v23 = vor.u32 %v2428_v57, %v2425_v44  ;;  %v6949_v33 = vor.u32 %v7138_v20, %v6948_v11  ;;  %v2305_v34 = vsel %vm1079_vm7, %v7869_v8, %v2304_v7 }
 0x159   : > { %v456_v36 = vadd.f32 %v7775_v40, %v455_v19  ;;  %v7884_v37 = vpop.f32.mrf.mxu3  ;;  %v2733_v38 = vshrl.u32 %v7017_v29, 16  ;;  %v2736_v28 = vshll.u32 %v7017_v29, 16  ;;  %v2756_v39 = vor.u32 %v2755_v31, %v2752_v30  ;;  %v1964_v31 = vld [vmem:[#allocation2 + $0x70] sm:$0x1] }
 0x15a   : > { %v7907_v30 = vrot.slane %v2458_v2, 3  ;;  %v1446_v19 = vsel %vm1128_vm6, %v1437_v9, %v7784_v10  ;;  %v2463_v43 = vrot.slane %v2461_v12, 4  ;;  %v2430_v52 = vsel %vm1128_vm6, %v7863_v3, %v2429_v23 }
 0x15b   : > { %v504_v53 = vmax.f32 %v456_v36, 0.0  ;;  %v2735_v54 = vrot.slane %v2733_v38, 3  ;;  %v2738_v55 = vrot.slane %v2736_v28, 4  ;;  %v6516_v36 = vld [vmem:[%s9144_s3 + $0x98] sm:$0xff]  ;;  %v7918_v38 = vld [vmem:[#allocation2 + $0x68] sm:$0xff]  ;;  %v1091_v28 = vsel %vm1079_vm7, %v7869_v8, %v1090_v13 }
 0x15c   : > { %3416 = vmatmul.bf16.gmra.mxu2 %v2756_v39  ;;  %v7921_v10 = vrot.slane %v7918_v38, 5  ;;  %v7020_v39 = vld [vmem:[#allocation2 + $0x10c] sm:$0x8]  ;;  %v2268_v47 = vunpack.c.l.b16 %v1964_v31  ;;  %v2469_v44 = vshll.u32 %v2305_v34, 16  ;;  %v599_v8 = vsel %vm7573_vm5, 0, %v598_v50 }
 0x15d   : > { %v6631_v59 = vpack.c.bf16 %v504_v53, %v503_v51  ;;  %v3288_v60 = vpop.f32.mrf.mxu1  ;;  %v2739_v0 = vor.u32 %v2738_v55, %v2735_v54  ;;  %v2466_v55 = vshrl.u32 %v2305_v34, 16  ;;  %3867 = vmatpush.bf16.msrb.mxu2 %v6516_v36  ;;  %600 = vst [vmem:[#allocation2 + $0xa0] sm:$0x1] %v599_v8  ;;  %v2464_v50 = vor.u32 %v2463_v43, %v7907_v30 }
 0x15e   : > { %v2471_v36 = vrot.slane %v2469_v44, 4 }
 0x15f   : > { %6860 = vst [vmem:[#allocation2 + $0x110] sm:$0xff] %v6631_v59   ;;  %v2748_v4 = vsel %vm1128_vm6, %v2739_v0, %v7893_v1  ;;  %v3377_v14 = vpop.f32.mrf.mxu2  ;;  %v6765_v16 = vunpack.c.h.b16 %v6631_v59  ;;  %v2202_v17 = vshrl.u32 %v6631_v59, 16  ;;  %v2205_v42 = vshll.u32 %v6631_v59, 16 }
 0x160   : > { %v458_v61 = vpop.f32.mrf.mxu0  ;;  %3327 = vmatmul.bf16.gmra.mxu1 %v2748_v4  ;;  %v7900_v22 = vadd.f32 %v3377_v14, %v3288_v60  ;;  %v1474_v59 = vshrl.u32 %v6949_v33, 16  ;;  %v1477_v60 = vshll.u32 %v6949_v33, 16  ;;  %v1293_v0 = vshrl.u32 %v1091_v28, 16 }
 0x161   : > { %v7905_v25 = vpop.f32.mrf.mxu3  ;;  %v2094_v62 = vpack.c.b16 %v6765_v16, %v6765_v16  ;;  %v2204_v26 = vrot.slane %v2202_v17, 4  ;;  %v2207_v29 = vrot.slane %v2205_v42, 5  ;;  %v459_v3 = vadd.f32 %v7775_v40, %v458_v61  ;;  %v6515_v17 = vld [vmem:[%s9144_s3 + $0x90] sm:$0xff]  ;;  %v6552_v42 = vld [vmem:[%s9144_s3 + $0x1b8] sm:$0xff] }
 0x162   : > { %v2284_v16 = vpack.c.b16 %v2268_v47, %v2268_v47  ;;  %3868 = vmatpush.bf16.msrb.mxu2 %v6515_v17  ;;  %5314 = vmatpush.bf16.msra.mxu3 %v6552_v42  ;;  %v1295_v31 = vrot.slane %v1293_v0, 3  ;;  %v7139_v0 = vld [vmem:[#allocation2 + $0xdc] sm:$0xf0]  }
 0x163   : > { %3728 = vmatmul.bf16.gmra.mxu0 %v1446_v19  ;;  %v2208_v15 = vor.u32 %v2207_v29, %v2204_v26  ;;  %v2784_v45 = vshrl.u32 %v2094_v62, 16  ;;  %v2787_v46 = vshll.u32 %v2094_v62, 16  ;;  %v1476_v62 = vrot.slane %v1474_v59, 3  ;;  %v6514_v29 = vld [vmem:[%s9144_s3 + $0x88] sm:$0xff] }
 0x164   : > { %v1479_v26 = vrot.slane %v1477_v60, 4  ;;  %v1296_v19 = vshll.u32 %v1091_v28, 16  ;;  %v505_v33 = vmax.f32 %v459_v3, 0.0  ;;  %v2501_v28 = vshrl.u32 %v7921_v10, 16 }
 0x165   : > { %v3290_v51 = vpop.f32.mrf.mxu1  ;;  %v2793_v53 = vshrl.u32 %v2208_v15, 16  ;;  %v2796_v54 = vshll.u32 %v2208_v15, 16  ;;  %v2786_v4 = vrot.slane %v2784_v45, 3  ;;  %v2789_v14 = vrot.slane %v2787_v46, 4 }
 0x166   : > { %3465 = vmatmul.bf16.gmra.mxu3 %v2430_v52  ;;  %v7156_v57 = vld [vmem:[#allocation2 + $0x10c] sm:$0xf0]   ;;  %v1298_v52 = vrot.slane %v1296_v19, 4  ;;  %3869 = vmatpush.bf16.msrb.mxu2 %v6514_v29  ;;  %v7024_v29 = vld [vmem:[#allocation2 + $0x124] sm:$0x8] }
 0x167   : > { %v3379_v2 = vpop.f32.mrf.mxu2  ;;  %v7021_v9 = vor.u32 %v7156_v57, %v7020_v39  ;;  %v2795_v11 = vrot.slane %v2793_v53, 3  ;;  %v2798_v7 = vrot.slane %v2796_v54, 4  ;;  %v7944_v47 = vor.u32 %v2789_v14, %v2786_v4  ;;  %v6952_v53 = vld [vmem:[#allocation2 + $0xdc] sm:$0x8] }
 0x168   : > { %v460_v12 = vpop.f32.mrf.mxu0  ;;  %v7930_v13 = vadd.f32 %v3379_v2, %v3290_v51  ;;  %v1480_v51 = vor.u32 %v1479_v26, %v1476_v62  ;;  %v2307_v54 = vrot.slane %v2284_v16, 5  ;;  %v1299_v57 = vor.u32 %v1298_v52, %v1295_v31  ;;  %v743_v62 = vld [vmem:[#allocation2 + $0x10] sm:$0x1] }
 0x169   : > { %v461_v20 = vadd.f32 %v7775_v40, %v460_v12  ;;  %v7939_v61 = vpop.f32.mrf.mxu3  ;;  %v2776_v23 = vshrl.u32 %v7021_v9, 16  ;;  %v2779_v21 = vshll.u32 %v7021_v9, 16  ;;  %v2799_v24 = vor.u32 %v2798_v7, %v2795_v11  ;;  %v6513_v9 = vld [vmem:[%s9144_s3 + $0x80] sm:$0xff]  ;;  %v6560_v11 = vld [vmem:[%s9144_s3 + $0x1f8] sm:$0xff] }
 0x16a   : > { %v2468_v40 = vrot.slane %v2466_v55, 3  ;;  %v2504_v2 = vshll.u32 %v7921_v10, 16  ;;  %v6568_v7 = vld [vmem:[%s9144_s3 + $0x238] sm:$0xff]  ;;  %v7967_v17 = vsel %vm1128_vm6, %v2464_v50, %v1299_v57  ;;  %v1489_v42 = vsel %vm1128_vm6, %v1480_v51, %v7816_v18  ;;  %3870 = vmatpush.bf16.msrb.mxu2 %v6513_v9  ;;  %5403 = vmatpush.bf16.msra.mxu0 %v6560_v11 }
 0x16b   : > { %v506_v34 = vmax.f32 %v461_v20, 0.0  ;;  %v2778_v35 = vrot.slane %v2776_v23, 3  ;;  %v2781_v15 = vrot.slane %v2779_v21, 4  ;;  %v6953_v20 = vor.u32 %v7139_v0, %v6952_v53  ;;  %5492 = vmatpush.bf16.msra.mxu1 %v6568_v7 }
 0x16c   : > { %3421 = vmatmul.bf16.gmra.mxu2 %v2799_v24  ;;  %v2472_v43 = vor.u32 %v2471_v36, %v2468_v40  ;;  %v2308_v23 = vsel %vm1079_vm7, %v7921_v10, %v2307_v54  ;;  %v7973_v24 = vrot.slane %v2501_v28, 3  ;;  %v1047_v40 = vunpack.c.l.b16 %v743_v62 }
 0x16d   : > { %v6636_v39 = vpack.c.bf16 %v506_v34, %v505_v33  ;;  %v3293_v45 = vpop.f32.mrf.mxu1  ;;  %v2782_v46 = vor.u32 %v2781_v15, %v2778_v35  ;;  %v2506_v33 = vrot.slane %v2504_v2, 4  ;;  %v2509_v15 = vshrl.u32 %v2308_v23, 16 }
 0x16e   : > { %v2473_v26 = vsel %vm1128_vm6, %v2464_v50, %v2472_v43  ;;  %v1517_v52 = vshrl.u32 %v6953_v20, 16  ;;  %v1063_v7 = vpack.c.b16 %v1047_v40, %v1047_v40 }
 0x16f   : > { %6861 = vst [vmem:[#allocation2 + $0x128] sm:$0xff] %v6636_v39   ;;  %v2791_v55 = vsel %vm1128_vm6, %v2782_v46, %v7944_v47  ;;  %v3382_v44 = vpop.f32.mrf.mxu2  ;;  %v6769_v59 = vunpack.c.h.b16 %v6636_v39  ;;  %v2210_v60 = vshrl.u32 %v6636_v39, 16  ;;  %v2213_v8 = vshll.u32 %v6636_v39, 16  ;;  %v7228_v46 = vld [vmem:[#allocation2 + $0x8] sm:$0xff]  }
 0x170   : > { %v7950_v3 = vpop.f32.mrf.mxu0  ;;  %3332 = vmatmul.bf16.gmra.mxu1 %v2791_v55  ;;  %v7952_v30 = vadd.f32 %v3382_v44, %v3293_v45  ;;  %v1520_v39 = vshll.u32 %v6953_v20, 16  ;;  %v2512_v45 = vshll.u32 %v2308_v23, 16  ;;  %v904_v51 = vshrl.u32 %v7228_v46, 16  ;;  %v1965_v55 = vld [vmem:[#allocation2 + $0x88] sm:$0x1] }
 0x171   : > { %v7964_v12 = vpop.f32.mrf.mxu3  ;;  %v2096_v4 = vpack.c.b16 %v6769_v59, %v6769_v59  ;;  %v2212_v14 = vrot.slane %v2210_v60, 4  ;;  %v2215_v16 = vrot.slane %v2213_v8, 5  ;;  %v907_v57 = vshll.u32 %v7228_v46, 16 }
 0x172   : > { %v1080_v0 = vrot.slane %v7228_v46, 5  ;;  %v2269_v20 = vunpack.c.l.b16 %v1965_v55  ;;  %v2514_v62 = vrot.slane %v2512_v45, 4 }
 0x173   : > { %3733 = vmatmul.bf16.gmra.mxu0 %v1489_v42  ;;  %v2216_v21 = vor.u32 %v2215_v16, %v2212_v14  ;;  %v2827_v31 = vshrl.u32 %v2096_v4, 16  ;;  %v2830_v19 = vshll.u32 %v2096_v4, 16  ;;  %v601_v4 = vld [vmem:[#allocation2 + $0xb8] sm:$0x1]  ;;  %v1519_v14 = vrot.slane %v1517_v52, 3 }
 0x174   : > { %v1522_v16 = vrot.slane %v1520_v39, 4  ;;  %v2511_v42 = vrot.slane %v2509_v15, 3  ;;  %v1156_v52 = vshrl.u32 %v1080_v0, 16  ;;  %v1159_v15 = vshll.u32 %v1080_v0, 16 }
 0x175   : > { %v3295_v34 = vpop.f32.mrf.mxu1  ;;  %v2836_v18 = vshrl.u32 %v2216_v21, 16  ;;  %v2839_v35 = vshll.u32 %v2216_v21, 16  ;;  %v2829_v60 = vrot.slane %v2827_v31, 3  ;;  %v2832_v8 = vrot.slane %v2830_v19, 4 }
 0x176   : > { %3470 = vmatmul.bf16.gmra.mxu3 %v2473_v26  ;;  %v7157_v36 = vld [vmem:[#allocation2 + $0x124] sm:$0xf0]   ;;  %v1081_v26 = vrot.slane %v1063_v7, 5  ;;  %v906_v31 = vrot.slane %v904_v51, 4  ;;  %v909_v19 = vrot.slane %v907_v57, 5  ;;  %v1523_v39 = vor.u32 %v1522_v16, %v1519_v14 }
 0x177   : > { %v3384_v53 = vpop.f32.mrf.mxu2  ;;  %v7025_v54 = vor.u32 %v7157_v36, %v7024_v29  ;;  %v2838_v28 = vrot.slane %v2836_v18, 3  ;;  %v2841_v50 = vrot.slane %v2839_v35, 4  ;;  %v7982_v29 = vor.u32 %v2832_v8, %v2829_v60 }
 0x178   : > { %v7976_v44 = vpop.f32.mrf.mxu0  ;;  %v7978_v59 = vadd.f32 %v3384_v53, %v3295_v34  ;;  %v744_v34 = vld [vmem:[#allocation2 + $0x28] sm:$0x1]  ;;  %v602_v18 = vsel %vm7573_vm5, 0, %v601_v4  ;;  %v1082_v36 = vsel %vm1079_vm7, %v1080_v0, %v1081_v26  ;;  %v2285_v53 = vpack.c.b16 %v2269_v20, %v2269_v20 }
 0x179   : > { %v7980_v43 = vpop.f32.mrf.mxu3  ;;  %v2819_v2 = vshrl.u32 %v7025_v54, 16  ;;  %v2822_v9 = vshll.u32 %v7025_v54, 16  ;;  %v2842_v11 = vor.u32 %v2841_v50, %v2838_v28  ;;  %603 = vst [vmem:[#allocation2 + $0xb8] sm:$0x1] %v602_v18  ;;  %v1164_v46 = vshrl.u32 %v1082_v36, 16 }
 0x17a   : > { %v1167_v45 = vshll.u32 %v1082_v36, 16  ;;  %v6956_v28 = vld [vmem:[#allocation2 + $0xf4] sm:$0x8]  ;;  %v7140_v50 = vld [vmem:[#allocation2 + $0xf4] sm:$0xf0]   ;;  %v1048_v57 = vunpack.c.l.b16 %v744_v34  ;;  %v7994_v8 = vor.u32 %v2506_v33, %v7973_v24  ;;  %v2515_v0 = vor.u32 %v2514_v62, %v2511_v42 }
 0x17b   : > { %v2821_v23 = vrot.slane %v2819_v2, 3  ;;  %v2824_v21 = vrot.slane %v2822_v9, 4  ;;  %v910_v2 = vor.u32 %v909_v19, %v906_v31  ;;  %v1161_v7 = vrot.slane %v1159_v15, 4 }
 0x17c   : > { %3426 = vmatmul.bf16.gmra.mxu2 %v2842_v11  ;;  %v1158_v11 = vrot.slane %v1156_v52, 3  ;;  %v1166_v4 = vrot.slane %v1164_v46, 3  ;;  %v1169_v14 = vrot.slane %v1167_v45, 4  ;;  %v1532_v16 = vsel %vm1128_vm6, %v1523_v39, %v7845_v32  ;;  %v1966_v39 = vld [vmem:[#allocation2 + $0xa0] sm:$0x1] }
 0x17d   : > { %v3298_v35 = vpop.f32.mrf.mxu1  ;;  %v2825_v40 = vor.u32 %v2824_v21, %v2821_v23  ;;  %v6957_v20 = vor.u32 %v7140_v50, %v6956_v28  ;;  %v8000_v23 = vld [vmem:[#allocation2 + $0x80] sm:$0xff]  ;;  %v2310_v26 = vrot.slane %v2285_v53, 5  ;;  %v1064_v24 = vpack.c.b16 %v1048_v57, %v1048_v57  ;;  %v6551_v28 = vld [vmem:[%s9144_s3 + $0x1b0] sm:$0xff] }
 0x17e   : > { %v8003_v21 = vrot.slane %v8000_v23, 5  ;;  %v1147_v33 = vshrl.u32 %v910_v2, 16  ;;  %v1150_v42 = vshll.u32 %v910_v2, 16  ;;  %v2516_v31 = vsel %vm1128_vm6, %v7994_v8, %v2515_v0  ;;  %5315 = vmatpush.bf16.msra.mxu3 %v6551_v28 }
 0x17f   : > { %v2834_v54 = vsel %vm1128_vm6, %v2825_v40, %v7982_v29  ;;  %v3387_v51 = vpop.f32.mrf.mxu2  ;;  %v1162_v19 = vor.u32 %v1161_v7, %v1158_v11  ;;  %v1170_v34 = vor.u32 %v1169_v14, %v1166_v4  ;;  %v1560_v18 = vshrl.u32 %v6957_v20, 16  ;;  %v604_v14 = vld [vmem:[#allocation2 + $0xd0] sm:$0x1] }
 0x180   : > { %v7989_v55 = vpop.f32.mrf.mxu0  ;;  %3337 = vmatmul.bf16.gmra.mxu1 %v2834_v54  ;;  %v7991_v60 = vadd.f32 %v3387_v51, %v3298_v35  ;;  %v1563_v32 = vshll.u32 %v6957_v20, 16  ;;  %v2311_v35 = vsel %vm1079_vm7, %v8003_v21, %v2310_v26  ;;  %v912_v36 = vshrl.u32 %v7811_v5, 16 }
 0x181   : > { %9156 = vst [vmem:[#allocation6_spill] sm:$0xff] %v7989_v55  ;;  %v7996_v9 = vpop.f32.mrf.mxu3  ;;  %v915_v52 = vshll.u32 %v7811_v5, 16  ;;  %v1084_v15 = vrot.slane %v1064_v24, 5  ;;  %v1149_v53 = vrot.slane %v1147_v33, 3  ;;  %v1152_v54 = vrot.slane %v1150_v42, 4 }
 0x182   : > { %v2544_v51 = vshrl.u32 %v8003_v21, 16  ;;  %v1171_v57 = vsel %vm1128_vm6, %v1162_v19, %v1170_v34  ;;  %v2547_v5 = vshll.u32 %v8003_v21, 16  ;;  %v2552_v0 = vshrl.u32 %v2311_v35, 16 }
 0x183   : > { %3738 = vmatmul.bf16.gmra.mxu0 %v1532_v16  ;;  %v2555_v2 = vshll.u32 %v2311_v35, 16  ;;  %v1562_v11 = vrot.slane %v1560_v18, 3  ;;  %v1565_v7 = vrot.slane %v1563_v32, 4  ;;  %v2270_v4 = vunpack.c.l.b16 %v1966_v39  ;;  %v7141_v39 = vld [vmem:[#allocation2 + $0x10c] sm:$0xf0]  }
 0x184   : > { %v605_v16 = vsel %vm7573_vm5, 0, %v604_v14  ;;  %v1153_v20 = vor.u32 %v1152_v54, %v1149_v53  ;;  %v914_v26 = vrot.slane %v912_v36, 4  ;;  %v917_v24 = vrot.slane %v915_v52, 5  ;;  %v6567_v52 = vld [vmem:[%s9144_s3 + $0x230] sm:$0xff] }
 0x185   : > { %v3300_v62 = vpop.f32.mrf.mxu1  ;;  %v1085_v33 = vsel %vm1079_vm7, %v7814_v6, %v1084_v15  ;;  %606 = vst [vmem:[#allocation2 + $0xd0] sm:$0x1] %v605_v16  ;;  %v2554_v19 = vrot.slane %v2552_v0, 3  ;;  %v2557_v34 = vrot.slane %v2555_v2, 4  ;;  %v1566_v18 = vor.u32 %v1565_v7, %v1562_v11  ;;  %v6559_v6 = vld [vmem:[%s9144_s3 + $0x1f0] sm:$0xff]  ;;  %v8043_v2 = vld [vmem:[#allocation2 + $0x98] sm:$0xff]  ;;  %5493 = vmatpush.bf16.msra.mxu1 %v6567_v52 }
 0x186   : > { %3475 = vmatmul.bf16.gmra.mxu3 %v2516_v31  ;;  %v2549_v31 = vrot.slane %v2547_v5, 4  ;;  %v2286_v32 = vpack.c.b16 %v2270_v4, %v2270_v4  ;;  %v1207_v28 = vshrl.u32 %v1085_v33, 16  ;;  %v1210_v14 = vshll.u32 %v1085_v33, 16  ;;  %5404 = vmatpush.bf16.msra.mxu0 %v6559_v6 }
 0x187   : > { %v3389_v40 = vpop.f32.mrf.mxu2  ;;  %v1575_v5 = vsel %vm1128_vm6, %v1566_v18, %v7893_v1  ;;  %v8046_v11 = vrot.slane %v8043_v2, 5  ;;  %v920_v18 = vshrl.u32 %v7829_v56, 16 }
 0x188   : > { %v8011_v46 = vpop.f32.mrf.mxu0  ;;  %v8013_v45 = vadd.f32 %v3389_v40, %v3300_v62  ;;  %v2546_v62 = vrot.slane %v2544_v51, 3  ;;  %v6960_v40 = vld [vmem:[#allocation2 + $0x10c] sm:$0x8]  ;;  %v2558_v51 = vor.u32 %v2557_v34, %v2554_v19  ;;  %v2313_v7 = vrot.slane %v2286_v32, 5 }
 0x189   : > { %9157 = vst [vmem:[#allocation7_spill] sm:$0xff] %v8011_v46  ;;  %v8019_v50 = vpop.f32.mrf.mxu3  ;;  %v6961_v0 = vor.u32 %v7141_v39, %v6960_v40  ;;  %v1209_v4 = vrot.slane %v1207_v28, 3  ;;  %v1212_v16 = vrot.slane %v1210_v14, 4  ;;  %v923_v32 = vshll.u32 %v7829_v56, 16  ;;  %v749_v14 = vld [vmem:[#allocation2 + $0xa0] sm:$0x1] }
 0x18a   : > { %v8039_v54 = vor.u32 %v2549_v31, %v2546_v62  ;;  %v2314_v62 = vsel %vm1079_vm7, %v8046_v11, %v2313_v7  ;;  %v1967_v31 = vld [vmem:[#allocation2 + $0xb8] sm:$0x1]  ;;  %v2587_v39 = vshrl.u32 %v8046_v11, 16  ;;  %v2590_v28 = vshll.u32 %v8046_v11, 16 }
 0x18b   : > { %v1603_v1 = vshrl.u32 %v6961_v0, 16  ;;  %v1213_v34 = vor.u32 %v1212_v16, %v1209_v4 }
 0x18c   : > { %3871 = vmatmul.bf16.vlgmr.msrb.gmra.mxu2 %v1171_v57  ;;  %v918_v57 = vor.u32 %v917_v24, %v914_v26  ;;  %v2559_v33 = vsel %vm1128_vm6, %v8039_v54, %v2558_v51  ;;  %v2595_v51 = vshrl.u32 %v2314_v62, 16 }
 0x18d   : > { %v3303_v42 = vpop.f32.mrf.mxu1  ;;  %v1605_v4 = vrot.slane %v1603_v1, 3  ;;  %v1214_v16 = vsel %vm1128_vm6, %v7843_v27, %v1213_v34 }
 0x18e   : > { %v1190_v26 = vshrl.u32 %v918_v57, 16  ;;  %v1193_v24 = vshll.u32 %v918_v57, 16  ;;  %v2598_v57 = vshll.u32 %v2314_v62, 16 }
 0x18f   : > { %v3392_v35 = vpop.f32.mrf.mxu2 }
 0x190   : > { %v8027_v53 = vpop.f32.mrf.mxu0  ;;  %3782 = vmatmul.bf16.vlgmr.msrb.gmra.mxu1 %v1153_v20  ;;  %v8029_v36 = vadd.f32 %v3392_v35, %v3303_v42  ;;  %v1606_v42 = vshll.u32 %v6961_v0, 16  ;;  %v1192_v52 = vrot.slane %v1190_v26, 3  ;;  %v1195_v7 = vrot.slane %v1193_v24, 4 }
 0x191   : > { %9158 = vst [vmem:[#allocation8_spill] sm:$0xff] %v8027_v53  ;;  %v8037_v15 = vpop.f32.mrf.mxu3  ;;  %v2592_v53 = vrot.slane %v2590_v28, 4  ;;  %v2597_v26 = vrot.slane %v2595_v51, 3 }
 0x192   : > { %v1608_v56 = vrot.slane %v1606_v42, 4 }
 0x193   : > { %3743 = vmatmul.bf16.gmra.mxu0 %v1575_v5  ;;  %v2271_v5 = vunpack.c.l.b16 %v1967_v31  ;;  %v1196_v31 = vor.u32 %v1195_v7, %v1192_v52 }
 0x194   : > { %v1609_v55 = vor.u32 %v1608_v56, %v1605_v4 }
 0x195   : > { %v3305_v20 = vpop.f32.mrf.mxu1  ;;  %v2287_v62 = vpack.c.b16 %v2271_v5, %v2271_v5 }
 0x196   : > { %3480 = vmatmul.bf16.gmra.mxu3 %v2559_v33  ;;  %v925_v33 = vrot.slane %v923_v32, 5  ;;  %v1618_v5 = vsel %vm1128_vm6, %v1609_v55, %v7944_v47  ;;  %v1968_v47 = vld [vmem:[#allocation2 + $0xd0] sm:$0x1] }
 0x197   : > { %v3394_v19 = vpop.f32.mrf.mxu2  ;;  %v2316_v52 = vrot.slane %v2287_v62, 5 }
 0x198   : > { %v8054_v35 = vpop.f32.mrf.mxu0  ;;  %v8056_v40 = vadd.f32 %v3394_v19, %v3305_v20  ;;  %v922_v20 = vrot.slane %v920_v18, 4  ;;  %v1053_v19 = vunpack.c.l.b16 %v749_v14  ;;  %v8069_v18 = vld [vmem:[#allocation2 + $0xb0] sm:$0xff] }
 0x199   : > { %9159 = vst [vmem:[#allocation9_spill] sm:$0xff] %v8054_v35  ;;  %v3432_v6 = vpop.f32.mrf.mxu3  ;;  %v2589_v35 = vrot.slane %v2587_v39, 3  ;;  %v8072_v32 = vrot.slane %v8069_v18, 5 }
 0x19a   : > { %9160 = vst [vmem:[#allocation10_spill] sm:$0xff] %v8056_v40  ;;  %v8061_v0 = vadd.f32 %v3432_v6, %v7884_v37  ;;  %v2600_v40 = vrot.slane %v2598_v57, 4  ;;  %v6964_v37 = vld [vmem:[#allocation2 + $0x124] sm:$0x8]  ;;  %v7142_v6 = vld [vmem:[#allocation2 + $0x124] sm:$0xf0]   ;;  %v926_v1 = vor.u32 %v925_v33, %v922_v20  ;;  %v1069_v42 = vpack.c.b16 %v1053_v19, %v1053_v19 }
 0x19b   : > { %v2593_v34 = vor.u32 %v2592_v53, %v2589_v35  ;;  %v6965_v14 = vor.u32 %v7142_v6, %v6964_v37  ;;  %v619_v35 = vld [vmem:[#allocation2 + $0x148] sm:$0x1]  ;;  %v622_v33 = vld [vmem:[#allocation2 + $0x160] sm:$0x1]  ;;  %v928_v6 = vshrl.u32 %v7866_v41, 16 }
 0x19c   : > { %9161 = vst [vmem:[#allocation11_spill] sm:$0xff] %v8061_v0  ;;  %3876 = vmatmul.bf16.gmra.mxu2 %v1214_v16  ;;  %v2601_v28 = vor.u32 %v2600_v40, %v2597_v26  ;;  %v1099_v51 = vrot.slane %v1069_v42, 5  ;;  %v1236_v7 = vshll.u32 %v926_v1, 16  ;;  %v620_v62 = vsel %vm7573_vm5, 0, %v619_v35 }
 0x19d   : > { %v3308_v46 = vpop.f32.mrf.mxu1  ;;  %v1646_v20 = vshrl.u32 %v6965_v14, 16  ;;  %v1649_v19 = vshll.u32 %v6965_v14, 16  ;;  %621 = vst [vmem:[#allocation2 + $0x148] sm:$0x1] %v620_v62  ;;  %v6550_v14 = vld [vmem:[%s9144_s3 + $0x1a8] sm:$0xff] }
 0x19e   : > { %v1100_v53 = vsel %vm1079_vm7, %v8046_v11, %v1099_v51  ;;  %v2602_v40 = vsel %vm1128_vm6, %v2593_v34, %v2601_v28  ;;  %v1238_v37 = vrot.slane %v1236_v7, 4  ;;  %v6879_v28 = vld [vmem:[#allocation2 + $0x140] sm:$0xff]   ;;  %v623_v51 = vsel %vm7573_vm5, 0, %v622_v33  ;;  %5316 = vmatpush.bf16.msra.mxu3 %v6550_v14  ;;  %v607_v14 = vld [vmem:[#allocation2 + $0xe8] sm:$0x1] }
 0x19f   : > { %v3397_v24 = vpop.f32.mrf.mxu2  ;;  %v1422_v4 = vshrl.u32 %v1100_v53, 16  ;;  %v1425_v56 = vshll.u32 %v1100_v53, 16  ;;  %v2272_v53 = vunpack.c.l.b16 %v1968_v47  ;;  %624 = vst [vmem:[#allocation2 + $0x160] sm:$0x1] %v623_v51  ;;  %v930_v33 = vrot.slane %v928_v6, 4 }
 0x1a0   : > { %v8065_v0 = vpop.f32.mrf.mxu0  ;;  %3787 = vmatmul.bf16.gmra.mxu1 %v1196_v31  ;;  %v8067_v27 = vadd.f32 %v3397_v24, %v3308_v46  ;;  %v1233_v46 = vshrl.u32 %v926_v1, 16  ;;  %v931_v24 = vshll.u32 %v7866_v41, 16  ;;  %v7143_v62 = vld [vmem:[#allocation2 + $0x13c] sm:$0xf0]   ;;  %v625_v6 = vld [vmem:[#allocation2 + $0x178] sm:$0x1] }
 0x1a1   : > { %9162 = vst [vmem:[#allocation12_spill] sm:$0xff] %v8065_v0  ;;  %v3434_v39 = vpop.f32.mrf.mxu3  ;;  %v1424_v55 = vrot.slane %v1422_v4, 3  ;;  %v1427_v26 = vrot.slane %v1425_v56, 4  ;;  %v1648_v4 = vrot.slane %v1646_v20, 3  ;;  %v1651_v56 = vrot.slane %v1649_v19, 4 }
 0x1a2   : > { %v8075_v57 = vadd.f32 %v3434_v39, %v7905_v25  ;;  %v2317_v25 = vsel %vm1079_vm7, %v8072_v32, %v2316_v52  ;;  %v1235_v31 = vrot.slane %v1233_v46, 3  ;;  %v2630_v39 = vshrl.u32 %v8072_v32, 16 }
 0x1a3   : > { %3748 = vmatmul.bf16.gmra.mxu0 %v1618_v5  ;;  %v1428_v52 = vor.u32 %v1427_v26, %v1424_v55  ;;  %v2633_v46 = vshll.u32 %v8072_v32, 16  ;;  %v2638_v41 = vshrl.u32 %v2317_v25, 16  ;;  %v2641_v7 = vshll.u32 %v2317_v25, 16  ;;  %v6968_v26 = vld [vmem:[#allocation2 + $0x13c] sm:$0x8] }
 0x1a4   : > { %9163 = vst [vmem:[#allocation13_spill] sm:$0xff] %v8075_v57  ;;  %v933_v55 = vrot.slane %v931_v24, 5  ;;  %v2632_v25 = vrot.slane %v2630_v39, 3  ;;  %v1652_v20 = vor.u32 %v1651_v56, %v1648_v4  ;;  %v2288_v19 = vpack.c.b16 %v2272_v53, %v2272_v53  ;;  %v6558_v39 = vld [vmem:[%s9144_s3 + $0x1e8] sm:$0xff] }
 0x1a5   : > { %v3310_v16 = vpop.f32.mrf.mxu1  ;;  %v2635_v47 = vrot.slane %v2633_v46, 4  ;;  %v2640_v51 = vrot.slane %v2638_v41, 3  ;;  %v2643_v57 = vrot.slane %v2641_v7, 4  ;;  %v8120_v4 = vld [vmem:[#allocation2 + $0xc8] sm:$0xff]  ;;  %5405 = vmatpush.bf16.msra.mxu0 %v6558_v39 }
 0x1a6   : > { %3485 = vmatmul.bf16.gmra.mxu3 %v2602_v40  ;;  %v6713_v40 = vunpack.c.h.b16 %v6879_v28  ;;  %v934_v53 = vor.u32 %v933_v55, %v930_v33 }
 0x1a7   : > { %v3399_v11 = vpop.f32.mrf.mxu2  ;;  %v8118_v41 = vor.u32 %v2635_v47, %v2632_v25  ;;  %v2644_v7 = vor.u32 %v2643_v57, %v2640_v51 }
 0x1a8   : > { %v8088_v1 = vpop.f32.mrf.mxu0  ;;  %v8090_v42 = vadd.f32 %v3399_v11, %v3310_v16  ;;  %v8103_v16 = vsel %vm1128_vm6, %v2593_v34, %v1428_v52  ;;  %v6969_v34 = vor.u32 %v7143_v62, %v6968_v26  ;;  %v882_v52 = vpack.c.b16 %v6713_v40, %v6713_v40 }
 0x1a9   : > { %9164 = vst [vmem:[#allocation14_spill] sm:$0xff] %v8088_v1  ;;  %v3437_v5 = vpop.f32.mrf.mxu3  ;;  %v1661_v40 = vsel %vm1128_vm6, %v1652_v20, %v7982_v29  ;;  %v2319_v26 = vrot.slane %v2288_v19, 5  ;;  %v626_v62 = vsel %vm7573_vm5, 0, %v625_v6  ;;  %v1276_v51 = vshrl.u32 %v934_v53, 16 }
 0x1aa   : > { %v8100_v35 = vadd.f32 %v3437_v5, %v7939_v61  ;;  %v747_v61 = vld [vmem:[#allocation2 + $0x70] sm:$0x1]  ;;  %v1239_v5 = vor.u32 %v1238_v37, %v1235_v31  ;;  %v6566_v31 = vld [vmem:[%s9144_s3 + $0x228] sm:$0xff]  ;;  %v1689_v57 = vshrl.u32 %v6969_v34, 16  ;;  %v1692_v33 = vshll.u32 %v6969_v34, 16 }
 0x1ab   : > { %v1051_v37 = vunpack.c.l.b16 %v747_v61  ;;  %5494 = vmatpush.bf16.msra.mxu1 %v6566_v31  ;;  %v1697_v55 = vshrl.u32 %v882_v52, 16  ;;  %627 = vst [vmem:[#allocation2 + $0x178] sm:$0x1] %v626_v62  ;;  %v1279_v29 = vshll.u32 %v934_v53, 16  ;;  %v939_v31 = vshll.u32 %v7918_v38, 16 }
 0x1ac   : > { %9165 = vst [vmem:[#allocation15_spill] sm:$0xff] %v8100_v35  ;;  %3881 = vmatmul.bf16.gmra.mxu2 %v7891_v49  ;;  %v608_v49 = vsel %vm7573_vm5, 0, %v607_v14  ;;  %v1691_v19 = vrot.slane %v1689_v57, 3  ;;  %v1694_v14 = vrot.slane %v1692_v33, 4  ;;  %v1278_v33 = vrot.slane %v1276_v51, 3 }
 0x1ad   : > { %v3313_v11 = vpop.f32.mrf.mxu1  ;;  %609 = vst [vmem:[#allocation2 + $0xe8] sm:$0x1] %v608_v49  ;;  %v1067_v25 = vpack.c.b16 %v1051_v37, %v1051_v37  ;;  %v1699_v34 = vrot.slane %v1697_v55, 3  ;;  %v6972_v37 = vld [vmem:[#allocation2 + $0x154] sm:$0x8]  ;;  %v1281_v55 = vrot.slane %v1279_v29, 4 }
 0x1af   : > { %v3402_v35 = vpop.f32.mrf.mxu2 }
 0x1b0   : > { %3792 = vmatmul.bf16.gmra.mxu1 %v1239_v5  ;;  %v8108_v24 = vadd.f32 %v3402_v35, %v3313_v11  ;;  %v8116_v28 = vpop.f32.mrf.mxu0  ;;  %v8123_v35 = vrot.slane %v8120_v4, 5  ;;  %v1700_v11 = vshll.u32 %v882_v52, 16  ;;  %v936_v5 = vshrl.u32 %v7918_v38, 16 }
 0x1b1   : > { %9166 = vst [vmem:[#allocation16_spill] sm:$0xff] %v8116_v28  ;;  %v3439_v46 = vpop.f32.mrf.mxu3 }
 0x1b2   : > { %v8126_v56 = vadd.f32 %v3439_v46, %v7964_v12  ;;  %v2645_v12 = vsel %vm1128_vm6, %v8118_v41, %v2644_v7  ;;  %v2320_v61 = vsel %vm1079_vm7, %v8123_v35, %v2319_v26  ;;  %v1702_v49 = vrot.slane %v1700_v11, 4  ;;  %v6880_v46 = vld [vmem:[#allocation2 + $0x158] sm:$0xff]  }
 0x1b3   : > { %3753 = vmatmul.bf16.gmra.mxu0 %v1661_v40  ;;  %v2673_v39 = vshrl.u32 %v8123_v35, 16  ;;  %v1093_v7 = vrot.slane %v1067_v25, 5  ;;  %v2676_v40 = vshll.u32 %v8123_v35, 16  ;;  %v2681_v26 = vshrl.u32 %v2320_v61, 16 }
 0x1b4   : > { %9167 = vst [vmem:[#allocation17_spill] sm:$0xff] %v8126_v56  ;;  %v1969_v52 = vld [vmem:[#allocation2 + $0xe8] sm:$0x1]  ;;  %v2684_v62 = vshll.u32 %v2320_v61, 16  ;;  %v1695_v56 = vor.u32 %v1694_v14, %v1691_v19  ;;  %v1703_v38 = vor.u32 %v1702_v49, %v1699_v34  ;;  %v938_v28 = vrot.slane %v936_v5, 4 }
 0x1b5   : > { %v3315_v47 = vpop.f32.mrf.mxu1  ;;  %v2273_v11 = vunpack.c.l.b16 %v1969_v52  ;;  %v6717_v1 = vunpack.c.h.b16 %v6880_v46  ;;  %v2675_v25 = vrot.slane %v2673_v39, 3  ;;  %v1094_v61 = vsel %vm1079_vm7, %v7921_v10, %v1093_v7  ;;  %v748_v52 = vld [vmem:[#allocation2 + $0x88] sm:$0x1]  ;;  %v610_v5 = vld [vmem:[#allocation2 + $0x100] sm:$0x1] }
 0x1b6   : > { %3490 = vmatmul.bf16.gmra.mxu3 %v2645_v12  ;;  %v7144_v12 = vld [vmem:[#allocation2 + $0x154] sm:$0xf0]   ;;  %v2683_v51 = vrot.slane %v2681_v26, 3  ;;  %v2686_v29 = vrot.slane %v2684_v62, 4  ;;  %v1282_v19 = vor.u32 %v1281_v55, %v1278_v33  ;;  %v1336_v49 = vshrl.u32 %v1094_v61, 16  ;;  %v6557_v46 = vld [vmem:[%s9144_s3 + $0x1e0] sm:$0xff] }
 0x1b7   : > { %v3404_v20 = vpop.f32.mrf.mxu2  ;;  %v6973_v0 = vor.u32 %v7144_v12, %v6972_v37  ;;  %v2289_v14 = vpack.c.b16 %v2273_v11, %v2273_v11  ;;  %v1339_v39 = vshll.u32 %v1094_v61, 16  ;;  %v1704_v10 = vsel %vm1128_vm6, %v1695_v56, %v1703_v38  ;;  %v8165_v55 = vld [vmem:[#allocation2 + $0xe0] sm:$0xff]  ;;  %5406 = vmatpush.bf16.msra.mxu0 %v6557_v46 }
 0x1b8   : > { %v8137_v6 = vadd.f32 %v3404_v20, %v3315_v47  ;;  %v628_v47 = vld [vmem:[#allocation2 + $0x190] sm:$0x1]  ;;  %v8145_v20 = vpop.f32.mrf.mxu0  ;;  %v1052_v7 = vunpack.c.l.b16 %v748_v52  ;;  %v8168_v56 = vrot.slane %v8165_v55, 5  ;;  %v1338_v61 = vrot.slane %v1336_v49, 3 }
 0x1b9   : > { %v3442_v53 = vpop.f32.mrf.mxu3  ;;  %9170 = vst [vmem:[#allocation20_spill] sm:$0xff] %v8145_v20  ;;  %v1732_v12 = vshrl.u32 %v6973_v0, 16  ;;  %v1735_v33 = vshll.u32 %v6973_v0, 16  ;;  %v2322_v11 = vrot.slane %v2289_v14, 5  ;;  %v947_v46 = vshll.u32 %v8000_v23, 16  ;;  %v7237_v20 = vld [vmem:[#allocation2 + $0x140] sm:$0xff] }
 0x1ba   : > { %9168 = vst [vmem:[#allocation18_spill] sm:$0xff] %v8137_v6  ;;  %v8143_v57 = vadd.f32 %v3442_v53, %v7980_v43  ;;  %v941_v6 = vrot.slane %v939_v31, 5  ;;  %v2678_v53 = vrot.slane %v2676_v40, 4  ;;  %v611_v31 = vsel %vm7573_vm5, 0, %v610_v5 }
 0x1bb   : > { %612 = vst [vmem:[#allocation2 + $0x100] sm:$0x1] %v611_v31  ;;  %v1734_v52 = vrot.slane %v1732_v12, 3  ;;  %v2323_v14 = vsel %vm1079_vm7, %v8168_v56, %v2322_v11  ;;  %v6549_v12 = vld [vmem:[%s9144_s3 + $0x1a0] sm:$0xff]  ;;  %v2716_v11 = vshrl.u32 %v8168_v56, 16 }
 0x1bc   : > { %9169 = vst [vmem:[#allocation19_spill] sm:$0xff] %v8143_v57  ;;  %3886 = vmatmul.bf16.gmra.mxu2 %v7967_v17  ;;  %v629_v57 = vsel %vm7573_vm5, 0, %v628_v47  ;;  %v884_v17 = vpack.c.b16 %v6717_v1, %v6717_v1  ;;  %v8160_v26 = vor.u32 %v2678_v53, %v2675_v25  ;;  %v2687_v1 = vor.u32 %v2686_v29, %v2683_v51  ;;  %v6881_v51 = vld [vmem:[#allocation2 + $0x170] sm:$0xff]  }
 0x1bd   : > { %v3318_v43 = vpop.f32.mrf.mxu1  ;;  %630 = vst [vmem:[#allocation2 + $0x190] sm:$0x1] %v629_v57  ;;  %v942_v62 = vor.u32 %v941_v6, %v938_v28  ;;  %v1341_v25 = vrot.slane %v1339_v39, 4  ;;  %v6556_v28 = vld [vmem:[%s9144_s3 + $0x1d8] sm:$0xff]  ;;  %v1068_v6 = vpack.c.b16 %v1052_v7, %v1052_v7  ;;  %v944_v39 = vshrl.u32 %v8000_v23, 16  ;;  %5317 = vmatpush.bf16.msra.mxu3 %v6549_v12 }
 0x1be   : > { %v1740_v47 = vshrl.u32 %v884_v17, 16  ;;  %v1743_v38 = vshll.u32 %v884_v17, 16  ;;  %5407 = vmatpush.bf16.msra.mxu0 %v6556_v28  ;;  %v6976_v7 = vld [vmem:[#allocation2 + $0x16c] sm:$0x8] }
 0x1bf   : > { %v3407_v34 = vpop.f32.mrf.mxu2  ;;  %v1319_v53 = vshrl.u32 %v942_v62, 16  ;;  %v1322_v29 = vshll.u32 %v942_v62, 16  ;;  %v1342_v49 = vor.u32 %v1341_v25, %v1338_v61  ;;  %v6555_v62 = vld [vmem:[%s9144_s3 + $0x1d0] sm:$0xff]  ;;  %v2727_v61 = vshll.u32 %v2323_v14, 16 }
 0x1c0   : > { %3797 = vmatmul.bf16.gmra.mxu1 %v1282_v19  ;;  %v8155_v37 = vadd.f32 %v3407_v34, %v3318_v43  ;;  %v2688_v43 = vsel %vm1128_vm6, %v8160_v26, %v2687_v1  ;;  %v1737_v19 = vrot.slane %v1735_v33, 4  ;;  %v1742_v34 = vrot.slane %v1740_v47, 3  ;;  %v7145_v25 = vld [vmem:[#allocation2 + $0x16c] sm:$0xf0]  }
 0x1c1   : > { %v3444_v40 = vpop.f32.mrf.mxu3  ;;  %v1745_v17 = vrot.slane %v1743_v38, 4  ;;  %v1096_v1 = vrot.slane %v1068_v6, 5  ;;  %v2719_v47 = vshll.u32 %v8168_v56, 16  ;;  %v2724_v38 = vshrl.u32 %v2323_v14, 16  ;;  %v8199_v14 = vld [vmem:[#allocation2 + $0x38] sm:$0xff]   ;;  %5318 = vmatpush.bf16.msra.mxu3 %v6548_v63 }
 0x1c2   : > { %v8163_v57 = vadd.f32 %v3444_v40, %v7996_v9  ;;  %v8173_v9 = vpop.f32.mrf.mxu0  ;;  %v1970_v31 = vld [vmem:[#allocation2 + $0x100] sm:$0x1]  ;;  %v6721_v40 = vunpack.c.h.b16 %v6881_v51  ;;  %v1321_v28 = vrot.slane %v1319_v53, 3  ;;  %v1324_v6 = vrot.slane %v1322_v29, 4  ;;  %5408 = vmatpush.bf16.msra.mxu0 %v6555_v62 }
 0x1c3   : > { %3758 = vmatmul.bf16.gmra.mxu0 %v1704_v10  ;;  %9172 = vst [vmem:[#allocation22_spill] sm:$0xff] %v8173_v9  ;;  %v1738_v51 = vor.u32 %v1737_v19, %v1734_v52  ;;  %v946_v9 = vrot.slane %v944_v39, 4  ;;  %v1097_v29 = vsel %vm1079_vm7, %v8003_v21, %v1096_v1  ;;  %v2718_v62 = vrot.slane %v2716_v11, 3  ;;  %v751_v21 = vld [vmem:[#allocation2 + $0xd0] sm:$0x1]  ;;  %v6553_v11 = vld [vmem:[%s9144_s3 + $0x1c0] sm:$0xff] }
 0x1c4   : > { %9171 = vst [vmem:[#allocation21_spill] sm:$0xff] %v8163_v57  ;;  %v1343_v57 = vsel %vm1128_vm6, %v7994_v8, %v1342_v49  ;;  %v8201_v53 = vpack.c.b16 %v6721_v40, %v6721_v40  ;;  %v2721_v12 = vrot.slane %v2719_v47, 4  ;;  %v2729_v52 = vrot.slane %v2727_v61, 4 }
 0x1c5   : > { %v3320_v0 = vpop.f32.mrf.mxu1  ;;  %v1325_v19 = vor.u32 %v1324_v6, %v1321_v28  ;;  %v1379_v39 = vshrl.u32 %v1097_v29, 16  ;;  %v955_v47 = vshll.u32 %v8043_v2, 16  ;;  %v1055_v61 = vunpack.c.l.b16 %v751_v21 }
 0x1c6   : > { %3495 = vmatmul.bf16.gmra.mxu3 %v2688_v43  ;;  %v6554_v43 = vld [vmem:[%s9144_s3 + $0x1c8] sm:$0xff]  ;;  %v8219_v28 = vor.u32 %v2721_v12, %v2718_v62 }
 0x1c7   : > { %v3409_v5 = vpop.f32.mrf.mxu2  ;;  %5409 = vmatpush.bf16.msra.mxu0 %v6554_v43  ;;  %v1783_v43 = vshrl.u32 %v8201_v53, 16 }
 0x1c8   : > { %v8180_v10 = vadd.f32 %v3409_v5, %v3320_v0  ;;  %v2274_v0 = vunpack.c.l.b16 %v1970_v31  ;;  %v1746_v5 = vor.u32 %v1745_v17, %v1742_v34 }
 0x1c9   : > { %v3447_v33 = vpop.f32.mrf.mxu3 }
 0x1ca   : > { %v8192_v23 = vadd.f32 %v3447_v33, %v8019_v50  ;;  %v949_v50 = vrot.slane %v947_v46, 5  ;;  %v6977_v33 = vor.u32 %v7145_v25, %v6976_v7  ;;  %v2290_v34 = vpack.c.b16 %v2274_v0, %v2274_v0  ;;  %v8206_v17 = vpop.f32.mrf.mxu0 }
 0x1cb   : > { %9174 = vst [vmem:[#allocation24_spill] sm:$0xff] %v8206_v17  ;;  %v1382_v46 = vshll.u32 %v1097_v29, 16  ;;  %v952_v7 = vshrl.u32 %v8043_v2, 16  ;;  %5410 = vmatpush.bf16.msra.mxu0 %v6553_v11  ;;  %v957_v11 = vrot.slane %v955_v47, 5 }
 0x1cc   : > { %9173 = vst [vmem:[#allocation23_spill] sm:$0xff] %v8192_v23  ;;  %3891 = vmatmul.bf16.gmra.mxu2 %v1343_v57  ;;  %v2726_v23 = vrot.slane %v2724_v38, 3  ;;  %v1747_v57 = vsel %vm1128_vm6, %v1738_v51, %v1746_v5  ;;  %v950_v1 = vor.u32 %v949_v50, %v946_v9  ;;  %v6565_v38 = vld [vmem:[%s9144_s3 + $0x220] sm:$0xff]  ;;  %v1775_v0 = vshrl.u32 %v6977_v33, 16  ;;  %v8225_v51 = vld [vmem:[#allocation2 + $0xf8] sm:$0xff] }
 0x1cd   : > { %v3323_v31 = vpop.f32.mrf.mxu1  ;;  %v8228_v5 = vrot.slane %v8225_v51, 5  ;;  %v2325_v2 = vrot.slane %v2290_v34, 5  ;;  %5495 = vmatpush.bf16.msra.mxu1 %v6565_v38  ;;  %v1071_v50 = vpack.c.b16 %v1055_v61, %v1055_v61  ;;  %v1778_v29 = vshll.u32 %v6977_v33, 16  ;;  %v613_v38 = vld [vmem:[#allocation2 + $0x118] sm:$0x1] }
 0x1ce   : > { %v2730_v6 = vor.u32 %v2729_v52, %v2726_v23  ;;  %v1384_v62 = vrot.slane %v1382_v46, 4  ;;  %v4165_v23 = vshll.u32 %v8199_v14, 16  ;;  %v1362_v12 = vshrl.u32 %v950_v1, 16 }
 0x1cf   : > { %v3412_v49 = vpop.f32.mrf.mxu2  ;;  %v1786_v52 = vshll.u32 %v8201_v53, 16  ;;  %v1785_v34 = vrot.slane %v1783_v43, 3  ;;  %v2326_v33 = vsel %vm1079_vm7, %v8228_v5, %v2325_v2 }
 0x1d0   : > { %3802 = vmatmul.bf16.gmra.mxu1 %v1325_v19  ;;  %v8210_v40 = vadd.f32 %v3412_v49, %v3323_v31  ;;  %v1381_v31 = vrot.slane %v1379_v39, 3  ;;  %v1105_v19 = vrot.slane %v1071_v50, 5  ;;  %v2731_v21 = vsel %vm1128_vm6, %v8219_v28, %v2730_v6 }
 0x1d1   : > { %v3449_v25 = vpop.f32.mrf.mxu3  ;;  %v614_v39 = vsel %vm7573_vm5, 0, %v613_v38  ;;  %v1788_v47 = vrot.slane %v1786_v52, 4  ;;  %v2762_v50 = vshll.u32 %v8228_v5, 16  ;;  %v2767_v38 = vshrl.u32 %v2326_v33, 16 }
 0x1d2   : > { %9175 = vst [vmem:[#allocation25_spill] sm:$0xff] %v8210_v40  ;;  %v8223_v9 = vadd.f32 %v3449_v25, %v8037_v15  ;;  %v954_v15 = vrot.slane %v952_v7, 4  ;;  %v1365_v25 = vshll.u32 %v950_v1, 16  ;;  %v1106_v53 = vsel %vm1079_vm7, %v8123_v35, %v1105_v19  ;;  %v8244_v2 = vpop.f32.mrf.mxu0 }
 0x1d3   : > { %3763 = vmatmul.bf16.gmra.mxu0 %v1747_v57  ;;  %v1777_v57 = vrot.slane %v1775_v0, 3  ;;  %v1780_v7 = vrot.slane %v1778_v29, 4  ;;  %v1385_v61 = vor.u32 %v1384_v62, %v1381_v31  ;;  %615 = vst [vmem:[#allocation2 + $0x118] sm:$0x1] %v614_v39  ;;  %v1508_v6 = vshrl.u32 %v1106_v53, 16 }
 0x1d4   : > { %9176 = vst [vmem:[#allocation26_spill] sm:$0xff] %v8223_v9  ;;  %v1511_v1 = vshll.u32 %v1106_v53, 16  ;;  %v2759_v0 = vshrl.u32 %v8228_v5, 16  ;;  %v2770_v8 = vshll.u32 %v2326_v33, 16  ;;  %v1364_v31 = vrot.slane %v1362_v12, 3 }
 0x1d5   : > { %v3325_v49 = vpop.f32.mrf.mxu1  ;;  %9178 = vst [vmem:[#allocation28_spill] sm:$0xff] %v8244_v2  ;;  %v1510_v9 = vrot.slane %v1508_v6, 3  ;;  %v1367_v62 = vrot.slane %v1365_v25, 4  ;;  %v1386_v19 = vsel %vm1128_vm6, %v8039_v54, %v1385_v61  ;;  %v9179_v52 = vshrl.u32 %v8199_v14, 16 }
 0x1d6   : > { %3500 = vmatmul.bf16.gmra.mxu3 %v2731_v21  ;;  %v1513_v35 = vrot.slane %v1511_v1, 4  ;;  %v4167_v39 = vrot.slane %v4165_v23, 5  ;;  %v1789_v2 = vor.u32 %v1788_v47, %v1785_v34  ;;  %v2761_v17 = vrot.slane %v2759_v0, 3 }
 0x1d7   : > { %v3414_v46 = vpop.f32.mrf.mxu2  ;;  %v958_v33 = vor.u32 %v957_v11, %v954_v15  ;;  %v2764_v1 = vrot.slane %v2762_v50, 4  ;;  %v1368_v54 = vor.u32 %v1367_v62, %v1364_v31 }
 0x1d8   : > { %v8240_v43 = vadd.f32 %v3414_v46, %v3325_v49  ;;  %v4164_v49 = vrot.slane %v9179_v52, 4  ;;  %v1514_v53 = vor.u32 %v1513_v35, %v1510_v9  ;;  %v1781_v46 = vor.u32 %v1780_v7, %v1777_v57  ;;  %v752_v9 = vld [vmem:[#allocation2 + $0xe8] sm:$0x1]  ;;  %v8265_v35 = vld [vmem:[#allocation2 + $0x110] sm:$0xff] }
 0x1d9   : > { %v3461_v21 = vpop.f32.mrf.mxu3  ;;  %v1056_v11 = vunpack.c.l.b16 %v752_v9  ;;  %v1405_v0 = vshrl.u32 %v958_v33, 16  ;;  %v8268_v31 = vrot.slane %v8265_v35, 5 }
 0x1da   : > { %9177 = vst [vmem:[#allocation27_spill] sm:$0xff] %v8240_v43  ;;  %v8247_v29 = vadd.f32 %v3461_v21, %v7849_v58  ;;  %v2769_v43 = vrot.slane %v2767_v38, 3  ;;  %v2772_v58 = vrot.slane %v2770_v8, 4  ;;  %v750_v21 = vld [vmem:[#allocation2 + $0xb8] sm:$0x1]  ;;  %v8255_v12 = vsel %vm1128_vm6, %v8160_v26, %v1514_v53  ;;  %v8270_v62 = vpop.f32.mrf.mxu0 }
 0x1db   : > { %v1971_v25 = vld [vmem:[#allocation2 + $0x118] sm:$0x1]  ;;  %v4168_v52 = vor.u32 %v4167_v39, %v4164_v49  ;;  %v1790_v34 = vsel %vm1128_vm6, %v1781_v46, %v1789_v2  ;;  %v1054_v15 = vunpack.c.l.b16 %v750_v21  ;;  %v8260_v8 = vor.u32 %v2764_v1, %v2761_v17  ;;  %9181 = vst [vmem:[#allocation30_spill] sm:$0xff] %v8270_v62 }
 0x1dc   : > { %3896 = vmatmul.bf16.gmra.mxu2 %v1386_v19  ;;  %v2275_v23 = vunpack.c.l.b16 %v1971_v25  ;;  %v2773_v47 = vor.u32 %v2772_v58, %v2769_v43  ;;  %v1408_v38 = vshll.u32 %v958_v33, 16  ;;  %v1072_v2 = vpack.c.b16 %v1056_v11, %v1056_v11 }
 0x1dd   : > { %v3328_v6 = vpop.f32.mrf.mxu1  ;;  %v1070_v49 = vpack.c.b16 %v1054_v15, %v1054_v15  ;;  %v4403_v53 = vshrl.u32 %v4168_v52, 16  ;;  %v1407_v46 = vrot.slane %v1405_v0, 3  ;;  %v4406_v21 = vshll.u32 %v4168_v52, 16 }
 0x1de   : > { %v2291_v26 = vpack.c.b16 %v2275_v23, %v2275_v23  ;;  %v1108_v17 = vrot.slane %v1072_v2, 5  ;;  %v2774_v43 = vsel %vm1128_vm6, %v8260_v8, %v2773_v47  ;;  %v1410_v33 = vrot.slane %v1408_v38, 4 }
 0x1df   : > { %v3417_v61 = vpop.f32.mrf.mxu2  ;;  %v963_v25 = vshll.u32 %v8069_v18, 16  ;;  %v1102_v15 = vrot.slane %v1070_v49, 5  ;;  %v4408_v49 = vrot.slane %v4406_v21, 4 }
 0x1e0   : > { %3807 = vmatmul.bf16.gmra.mxu1 %v1368_v54  ;;  %v8258_v57 = vadd.f32 %v3417_v61, %v3328_v6  ;;  %v2328_v19 = vrot.slane %v2291_v26, 5  ;;  %v960_v54 = vshrl.u32 %v8069_v18, 16  ;;  %v8280_v61 = vld [vmem:[#allocation2 + $0x50] sm:$0xff]   ;;  %v1109_v23 = vsel %vm1079_vm7, %v8168_v56, %v1108_v17 }
 0x1e1   : > { %v3463_v7 = vpop.f32.mrf.mxu3  ;;  %v1551_v52 = vshrl.u32 %v1109_v23, 16  ;;  %v1554_v0 = vshll.u32 %v1109_v23, 16  ;;  %v4170_v56 = vshrl.u32 %v8280_v61, 16  ;;  %v4173_v38 = vshll.u32 %v8280_v61, 16 }
 0x1e2   : > { %9180 = vst [vmem:[#allocation29_spill] sm:$0xff] %v8258_v57  ;;  %v8263_v50 = vadd.f32 %v3463_v7, %v7875_v48  ;;  %v616_v48 = vld [vmem:[#allocation2 + $0x130] sm:$0x1]  ;;  %v2329_v6 = vsel %vm1079_vm7, %v8268_v31, %v2328_v19  ;;  %v2805_v7 = vshll.u32 %v8268_v31, 16  ;;  %v4405_v19 = vrot.slane %v4403_v53, 3 }
 0x1e3   : > { %3768 = vmatmul.bf16.gmra.mxu0 %v1790_v34  ;;  %v617_v1 = vsel %vm7573_vm5, 0, %v616_v48  ;;  %v2802_v34 = vshrl.u32 %v8268_v31, 16  ;;  %v2810_v18 = vshrl.u32 %v2329_v6, 16  ;;  %v2813_v47 = vshll.u32 %v2329_v6, 16 }
 0x1e4   : > { %618 = vst [vmem:[#allocation2 + $0x130] sm:$0x1] %v617_v1  ;;  %v1553_v2 = vrot.slane %v1551_v52, 3  ;;  %v1556_v17 = vrot.slane %v1554_v0, 4  ;;  %v965_v48 = vrot.slane %v963_v25, 5  ;;  %v1103_v6 = vsel %vm1079_vm7, %v8072_v32, %v1102_v15  ;;  %v8299_v1 = vpop.f32.mrf.mxu0 }
 0x1e5   : > { %v3330_v39 = vpop.f32.mrf.mxu1  ;;  %9183 = vst [vmem:[#allocation32_spill] sm:$0xff] %v8299_v1  ;;  %v2812_v23 = vrot.slane %v2810_v18, 3  ;;  %v1411_v63 = vor.u32 %v1410_v33, %v1407_v46  ;;  %v4172_v52 = vrot.slane %v4170_v56, 4  ;;  %v4175_v53 = vrot.slane %v4173_v38, 5  ;;  %v753_v32 = vld [vmem:[#allocation2 + $0x100] sm:$0x1] }
 0x1e6   : > { %3505 = vmatmul.bf16.gmra.mxu3 %v2774_v43  ;;  %v962_v43 = vrot.slane %v960_v54, 4  ;;  %v1557_v62 = vor.u32 %v1556_v17, %v1553_v2  ;;  %v6564_v46 = vld [vmem:[%s9144_s3 + $0x218] sm:$0xff]  ;;  %v1057_v33 = vunpack.c.l.b16 %v753_v32  ;;  %v4409_v18 = vor.u32 %v4408_v49, %v4405_v19 }
 0x1e7   : > { %v3419_v58 = vpop.f32.mrf.mxu2  ;;  %5496 = vmatpush.bf16.msra.mxu1 %v6564_v46 }
 0x1e8   : > { %v8284_v9 = vadd.f32 %v3419_v58, %v3330_v39  ;;  %v2804_v39 = vrot.slane %v2802_v34, 3  ;;  %v2807_v58 = vrot.slane %v2805_v7, 4  ;;  %v8303_v54 = vsel %vm1128_vm6, %v8219_v28, %v1557_v62  ;;  %v8315_v62 = vld [vmem:[#allocation2 + $0x128] sm:$0xff] }
 0x1e9   : > { %v3466_v11 = vpop.f32.mrf.mxu3  ;;  %v966_v15 = vor.u32 %v965_v48, %v962_v43  ;;  %v4176_v28 = vor.u32 %v4175_v53, %v4172_v52  ;;  %v8318_v17 = vrot.slane %v8315_v62, 5  ;;  %v8320_v43 = vld [vmem:[#allocation2 + $0x68] sm:$0xff]   ;;  %v1073_v48 = vpack.c.b16 %v1057_v33, %v1057_v33 }
 0x1ea   : > { %9182 = vst [vmem:[#allocation31_spill] sm:$0xff] %v8284_v9  ;;  %v8292_v26 = vadd.f32 %v3466_v11, %v7900_v22  ;;  %v2815_v11 = vrot.slane %v2813_v47, 4  ;;  %v1465_v9 = vshrl.u32 %v1103_v6, 16  ;;  %v8310_v47 = vor.u32 %v2807_v58, %v2804_v39 }
 0x1eb   : > { %v1972_v21 = vld [vmem:[#allocation2 + $0x130] sm:$0x1]  ;;  %9185 = vst [vmem:[#allocation34_spill] sm:$0xff] %v8320_v43  ;;  %v1448_v39 = vshrl.u32 %v966_v15, 16  ;;  %v1111_v58 = vrot.slane %v1073_v48, 5  ;;  %v4446_v52 = vshrl.u32 %v4176_v28, 16 }
 0x1ec   : > { %3901 = vmatmul.bf16.gmra.mxu2 %v8103_v16  ;;  %v1468_v16 = vshll.u32 %v1103_v6, 16  ;;  %v2276_v34 = vunpack.c.l.b16 %v1972_v21  ;;  %v2816_v56 = vor.u32 %v2815_v11, %v2812_v23  ;;  %v1467_v6 = vrot.slane %v1465_v9, 3  ;;  %v8328_v9 = vpop.f32.mrf.mxu0 }
 0x1ed   : > { %v3333_v22 = vpop.f32.mrf.mxu1  ;;  %v4178_v11 = vshrl.u32 %v8320_v43, 16  ;;  %v4181_v21 = vshll.u32 %v8320_v43, 16  ;;  %9186 = vst [vmem:[#allocation35_spill] sm:$0xff] %v8328_v9  ;;  %v1112_v46 = vsel %vm1079_vm7, %v8228_v5, %v1111_v58  ;;  %v971_v5 = vshll.u32 %v8120_v4, 16 }
 0x1ee   : > { %v2292_v38 = vpack.c.b16 %v2276_v34, %v2276_v34  ;;  %v1470_v19 = vrot.slane %v1468_v16, 4  ;;  %v4449_v34 = vshll.u32 %v4176_v28, 16 }
 0x1ef   : > { %v3422_v0 = vpop.f32.mrf.mxu2  ;;  %v973_v43 = vrot.slane %v971_v5, 5 }
 0x1f0   : > { %3812 = vmatmul.bf16.gmra.mxu1 %v1411_v63  ;;  %v8305_v25 = vadd.f32 %v3422_v0, %v3333_v22  ;;  %v2331_v49 = vrot.slane %v2292_v38, 5  ;;  %v1973_v22 = vld [vmem:[#allocation2 + $0x148] sm:$0x1]  ;;  %v1451_v63 = vshll.u32 %v966_v15, 16  ;;  %v1471_v16 = vor.u32 %v1470_v19, %v1467_v6 }
 0x1f1   : > { %v3468_v7 = vpop.f32.mrf.mxu3  ;;  %v2277_v32 = vunpack.c.l.b16 %v1973_v22  ;;  %v2845_v15 = vshrl.u32 %v8318_v17, 16  ;;  %v968_v6 = vshrl.u32 %v8120_v4, 16  ;;  %v4183_v4 = vrot.slane %v4181_v21, 5 }
 0x1f2   : > { %9184 = vst [vmem:[#allocation33_spill] sm:$0xff] %v8305_v25  ;;  %v8313_v2 = vadd.f32 %v3468_v7, %v7930_v13  ;;  %v2817_v13 = vsel %vm1128_vm6, %v8310_v47, %v2816_v56  ;;  %v2332_v53 = vsel %vm1079_vm7, %v8318_v17, %v2331_v49  ;;  %v1450_v7 = vrot.slane %v1448_v39, 3 }
 0x1f3   : > { %5411 = vmatmul.bf16.vlgmr.msra.gmra.mxu0 %v4409_v18  ;;  %v2848_v18 = vshll.u32 %v8318_v17, 16  ;;  %v2853_v38 = vshrl.u32 %v2332_v53, 16  ;;  %v2856_v48 = vshll.u32 %v2332_v53, 16  ;;  %v1594_v49 = vshrl.u32 %v1112_v46, 16 }
 0x1f4   : > { %v1453_v28 = vrot.slane %v1451_v63, 4  ;;  %v1472_v19 = vsel %vm1128_vm6, %v8118_v41, %v1471_v16  ;;  %v4180_v39 = vrot.slane %v4178_v11, 4  ;;  %v2847_v53 = vrot.slane %v2845_v15, 3 }
 0x1f5   : > { %v3335_v23 = vpop.f32.mrf.mxu1  ;;  %v1596_v22 = vrot.slane %v1594_v49, 3  ;;  %v2850_v1 = vrot.slane %v2848_v18, 4  ;;  %v970_v57 = vrot.slane %v968_v6, 4  ;;  %v2333_v41 = vrot.slane %v7237_v20, 5 }
 0x1f6   : > { %3510 = vmatmul.bf16.gmra.mxu3 %v2817_v13  ;;  %v1597_v13 = vshll.u32 %v1112_v46, 16  ;;  %v1454_v25 = vor.u32 %v1453_v28, %v1450_v7  ;;  %v8352_v7 = vpop.f32.mrf.mxu0 }
 0x1f7   : > { %v3424_v0 = vpop.f32.mrf.mxu2  ;;  %v8354_v18 = vor.u32 %v2850_v1, %v2847_v53  ;;  %v2888_v49 = vshrl.u32 %v2333_v41, 16  ;;  %v2891_v1 = vshll.u32 %v2333_v41, 16 }
 0x1f8   : > { %v8332_v33 = vadd.f32 %v3424_v0, %v3335_v23  ;;  %v1599_v58 = vrot.slane %v1597_v13, 4  ;;  %v4448_v23 = vrot.slane %v4446_v52, 3  ;;  %v4451_v0 = vrot.slane %v4449_v34, 4  ;;  %v754_v52 = vld [vmem:[#allocation2 + $0x118] sm:$0x1] }
 0x1f9   : > { %v3471_v56 = vpop.f32.mrf.mxu3  ;;  %v6576_v34 = vld [vmem:[%s9146_s5 + $0x38] sm:$0xff] }
 0x1fa   : > { %9187 = vst [vmem:[#allocation36_spill] sm:$0xff] %v8332_v33  ;;  %v8337_v9 = vadd.f32 %v3471_v56, %v7952_v30  ;;  %v2293_v33 = vpack.c.b16 %v2277_v32, %v2277_v32  ;;  %v2855_v30 = vrot.slane %v2853_v38, 3  ;;  %v2858_v56 = vrot.slane %v2856_v48, 4  ;;  %5765 = vmatpush.bf16.msra.mxu2 %v6576_v34 }
 0x1fb   : > { %v1600_v63 = vor.u32 %v1599_v58, %v1596_v22  ;;  %v1058_v32 = vunpack.c.l.b16 %v754_v52  ;;  %v4452_v21 = vor.u32 %v4451_v0, %v4448_v23  ;;  %v974_v48 = vor.u32 %v973_v43, %v970_v57 }
 0x1fc   : > { %3906 = vmatmul.bf16.gmra.mxu2 %v1472_v19  ;;  %v2859_v20 = vor.u32 %v2858_v56, %v2855_v30  ;;  %v2334_v38 = vrot.slane %v2293_v33, 5  ;;  %v1974_v19 = vld [vmem:[#allocation2 + $0x160] sm:$0x1]  ;;  %v8364_v58 = vrot.slane %v2888_v49, 3  ;;  %v979_v52 = vshll.u32 %v8165_v55, 16 }
 0x1fd   : > { %v3338_v46 = vpop.f32.mrf.mxu1  ;;  %v8345_v11 = vsel %vm1128_vm6, %v8260_v8, %v1600_v63  ;;  %v1491_v33 = vshrl.u32 %v974_v48, 16  ;;  %v1494_v22 = vshll.u32 %v974_v48, 16  ;;  %v8368_v56 = vld [vmem:[#allocation2 + $0x80] sm:$0xff]   ;;  %v2278_v63 = vunpack.c.l.b16 %v1974_v19 }
 0x1fe   : > { %v2860_v6 = vsel %vm1128_vm6, %v8354_v18, %v2859_v20  ;;  %v2335_v5 = vsel %vm1079_vm7, %v2333_v41, %v2334_v38  ;;  %v2893_v38 = vrot.slane %v2891_v1, 4  ;;  %v8378_v48 = vpop.f32.mrf.mxu0  ;;  %v4189_v49 = vshll.u32 %v8368_v56, 16 }
 0x1ff   : > { %v3427_v40 = vpop.f32.mrf.mxu2  ;;  %v2899_v30 = vshll.u32 %v2335_v5, 16  ;;  %v1496_v20 = vrot.slane %v1494_v22, 4 }
 0x200   : > { %3817 = vmatmul.bf16.gmra.mxu1 %v1454_v25  ;;  %v8347_v16 = vadd.f32 %v3427_v40, %v3338_v46  ;;  %v4184_v25 = vor.u32 %v4183_v4, %v4180_v39  ;;  %v1074_v40 = vpack.c.b16 %v1058_v32, %v1058_v32  ;;  %v2896_v46 = vshrl.u32 %v2335_v5, 16  ;;  %v6547_v4 = vld [vmem:[%s9144_s3 + $0x190] sm:$0xff] }
 0x201   : > { %v3473_v15 = vpop.f32.mrf.mxu3  ;;  %5319 = vmatpush.bf16.msra.mxu3 %v6547_v4  ;;  %v2901_v19 = vrot.slane %v2899_v30, 4  ;;  %v755_v4 = vld [vmem:[#allocation2 + $0x130] sm:$0x1] }
 0x202   : > { %v8357_v8 = vadd.f32 %v3473_v15, %v7978_v59  ;;  %v1114_v13 = vrot.slane %v1074_v40, 5  ;;  %v4489_v59 = vshrl.u32 %v4184_v25, 16  ;;  %v4492_v39 = vshll.u32 %v4184_v25, 16 }
 0x203   : > { %5416 = vmatmul.bf16.gmra.mxu0 %v4452_v21  ;;  %v1493_v21 = vrot.slane %v1491_v33, 3  ;;  %v4186_v40 = vshrl.u32 %v8368_v56, 16  ;;  %v981_v33 = vrot.slane %v979_v52, 5  ;;  %v1059_v30 = vunpack.c.l.b16 %v755_v4 }
 0x204   : > { %v1115_v57 = vsel %vm1079_vm7, %v8268_v31, %v1114_v13  ;;  %v976_v31 = vshrl.u32 %v8165_v55, 16  ;;  %v4491_v25 = vrot.slane %v4489_v59, 3  ;;  %v3695_v55 = vadd.f32 %v7950_v3, %v8247_v29 }
 0x205   : > { %v3340_v28 = vpop.f32.mrf.mxu1  ;;  %v1637_v23 = vshrl.u32 %v1115_v57, 16  ;;  %v1640_v0 = vshll.u32 %v1115_v57, 16  ;;  %v1497_v57 = vor.u32 %v1496_v20, %v1493_v21  ;;  %v2894_v29 = vor.u32 %v2893_v38, %v8364_v58 }
 0x206   : > { %3515 = vmatmul.bf16.gmra.mxu3 %v2860_v6  ;;  %v2294_v6 = vpack.c.b16 %v2278_v63, %v2278_v63  ;;  %v978_v1 = vrot.slane %v976_v31, 4  ;;  %v3697_v58 = vadd.f32 %v7976_v44, %v8263_v50  ;;  %v8400_v38 = vpop.f32.mrf.mxu0 }
 0x207   : > { %v3429_v43 = vpop.f32.mrf.mxu2  ;;  %v1639_v34 = vrot.slane %v1637_v23, 3  ;;  %v1642_v32 = vrot.slane %v1640_v0, 4  ;;  %v4188_v23 = vrot.slane %v4186_v40, 4  ;;  %v4191_v0 = vrot.slane %v4189_v49, 5 }
 0x208   : > { %v8366_v53 = vadd.f32 %v3429_v43, %v3340_v28  ;;  %v4494_v28 = vrot.slane %v4492_v39, 4  ;;  %v982_v31 = vor.u32 %v981_v33, %v978_v1  ;;  %v2337_v52 = vrot.slane %v2294_v6, 5 }
 0x209   : > { %v3476_v41 = vpop.f32.mrf.mxu3  ;;  %v1643_v13 = vor.u32 %v1642_v32, %v1639_v34  ;;  %v1075_v32 = vpack.c.b16 %v1059_v30, %v1059_v30  ;;  %v4192_v21 = vor.u32 %v4191_v0, %v4188_v23  ;;  %v8408_v23 = vld [vmem:[#allocation2 + $0x98] sm:$0xff]  }
 0x20a   : > { %v8376_v15 = vadd.f32 %v3476_v41, %v7991_v60  ;;  %v2898_v60 = vrot.slane %v2896_v46, 3  ;;  %v6563_v46 = vld [vmem:[%s9144_s3 + $0x210] sm:$0xff]  ;;  %v4495_v63 = vor.u32 %v4494_v28, %v4491_v25  ;;  %v1534_v25 = vshrl.u32 %v982_v31, 16 }
 0x20b   : > { %v8387_v22 = vsel %vm1128_vm6, %v8310_v47, %v1643_v13  ;;  %5497 = vmatpush.bf16.msra.mxu1 %v6563_v46  ;;  %v1117_v20 = vrot.slane %v1075_v32, 5  ;;  %v9188_v32 = vld [vmem:[#allocation6_spill] sm:$0xff] }
 0x20c   : > { %3911 = vmatmul.bf16.gmra.mxu2 %v8255_v12  ;;  %v7238_v12 = vld [vmem:[#allocation2 + $0x158] sm:$0xff]  ;;  %v2902_v41 = vor.u32 %v2901_v19, %v2898_v60  ;;  %v4532_v19 = vshrl.u32 %v4192_v21, 16  ;;  %v1536_v4 = vrot.slane %v1534_v25, 3 }
 0x20d   : > { %v3783_v5 = vpop.f32.mrf.mxu1  ;;  %v2336_v39 = vrot.slane %v7238_v12, 5  ;;  %v1975_v60 = vld [vmem:[#allocation2 + $0x178] sm:$0x1]  ;;  %v1118_v6 = vsel %vm1079_vm7, %v8318_v17, %v1117_v20 }
 0x20e   : > { %v3784_v59 = vadd.f32 %v3783_v5, %v3695_v55  ;;  %v2903_v49 = vsel %vm1128_vm6, %v2894_v29, %v2902_v41  ;;  %v1680_v50 = vshrl.u32 %v1118_v6, 16  ;;  %v1683_v1 = vshll.u32 %v1118_v6, 16  ;;  %v8424_v6 = vpop.f32.mrf.mxu0 }
 0x20f   : > { %v3872_v43 = vpop.f32.mrf.mxu2  ;;  %v2338_v13 = vsel %vm1079_vm7, %v2336_v39, %v2337_v52  ;;  %v2931_v28 = vshrl.u32 %v2336_v39, 16  ;;  %v2934_v44 = vshll.u32 %v2336_v39, 16  ;;  %v2279_v29 = vunpack.c.l.b16 %v1975_v60 }
 0x210   : > { %3822 = vmatmul.bf16.gmra.mxu1 %v1497_v57  ;;  %v8389_v3 = vadd.f32 %v3872_v43, %v3784_v59  ;;  %v4535_v59 = vshll.u32 %v4192_v21, 16  ;;  %v2939_v57 = vshrl.u32 %v2338_v13, 16  ;;  %v2942_v43 = vshll.u32 %v2338_v13, 16 }
 0x211   : > { %v3478_v47 = vpop.f32.mrf.mxu3  ;;  %v1682_v12 = vrot.slane %v1680_v50, 3  ;;  %v1685_v46 = vrot.slane %v1683_v1, 4  ;;  %v984_v39 = vshrl.u32 %v8225_v51, 16  ;;  %v4194_v41 = vshrl.u32 %v8408_v23, 16 }
 0x212   : > { %v8396_v34 = vadd.f32 %v3478_v47, %v8013_v45  ;;  %v1537_v45 = vshll.u32 %v982_v31, 16  ;;  %v987_v47 = vshll.u32 %v8225_v51, 16  ;;  %v4197_v31 = vshll.u32 %v8408_v23, 16 }
 0x213   : > { %5421 = vmatmul.bf16.gmra.mxu0 %v4495_v63  ;;  %v2933_v63 = vrot.slane %v2931_v28, 3  ;;  %v1686_v52 = vor.u32 %v1685_v46, %v1682_v12  ;;  %v3700_v21 = vadd.f32 %v9188_v32, %v8292_v26  ;;  %v4537_v20 = vrot.slane %v4535_v59, 4 }
 0x214   : > { %v1539_v17 = vrot.slane %v1537_v45, 4  ;;  %v2944_v25 = vrot.slane %v2942_v43, 4  ;;  %v2295_v13 = vpack.c.b16 %v2279_v29, %v2279_v29  ;;  %v986_v28 = vrot.slane %v984_v39, 4 }
 0x215   : > { %v3785_v40 = vpop.f32.mrf.mxu1  ;;  %v8422_v51 = vsel %vm1128_vm6, %v8354_v18, %v1686_v52  ;;  %v989_v60 = vrot.slane %v987_v47, 5 }
 0x216   : > { %v3786_v55 = vadd.f32 %v3785_v40, %v3697_v58  ;;  %3520 = vmatmul.bf16.gmra.mxu3 %v2903_v49  ;;  %v4534_v58 = vrot.slane %v4532_v19, 3  ;;  %v2941_v49 = vrot.slane %v2939_v57, 3  ;;  %v1540_v45 = vor.u32 %v1539_v17, %v1536_v4  ;;  %v9189_v57 = vld [vmem:[#allocation10_spill] sm:$0xff]  ;;  %v9190_v17 = vld [vmem:[#allocation7_spill] sm:$0xff] }
 0x217   : > { %v3874_v5 = vpop.f32.mrf.mxu2  ;;  %v7239_v4 = vld [vmem:[#allocation2 + $0x170] sm:$0xff]  ;;  %v2340_v12 = vrot.slane %v2295_v13, 5  ;;  %v3702_v39 = vadd.f32 %v9190_v17, %v8313_v2  ;;  %v6546_v2 = vld [vmem:[%s9144_s3 + $0x188] sm:$0xff]  ;;  %v8443_v13 = vpop.f32.mrf.mxu0 }
 0x218   : > { %v8406_v33 = vadd.f32 %v3874_v5, %v3786_v55  ;;  %v4196_v5 = vrot.slane %v4194_v41, 4  ;;  %v4538_v1 = vor.u32 %v4537_v20, %v4534_v58  ;;  %v2945_v59 = vor.u32 %v2944_v25, %v2941_v49  ;;  %5320 = vmatpush.bf16.msra.mxu3 %v6546_v2 }
 0x219   : > { %v3481_v0 = vpop.f32.mrf.mxu3  ;;  %v2339_v29 = vrot.slane %v7239_v4, 5 }
 0x21a   : > { %v8411_v30 = vadd.f32 %v3481_v0, %v8029_v36  ;;  %v2936_v36 = vrot.slane %v2934_v44, 4  ;;  %v6575_v44 = vld [vmem:[%s9146_s5 + $0x30] sm:$0xff]  ;;  %v990_v0 = vor.u32 %v989_v60, %v986_v28  ;;  %v992_v60 = vshrl.u32 %v8265_v35, 16 }
 0x21b   : > { %5766 = vmatpush.bf16.msra.mxu2 %v6575_v44  ;;  %v2341_v32 = vsel %vm1079_vm7, %v2339_v29, %v2340_v12  ;;  %v2974_v20 = vshrl.u32 %v2339_v29, 16 }
 0x21c   : > { %3916 = vmatmul.bf16.gmra.mxu2 %v8303_v54  ;;  %v4199_v54 = vrot.slane %v4197_v31, 5  ;;  %v2937_v18 = vor.u32 %v2936_v36, %v2933_v63  ;;  %v1577_v63 = vshrl.u32 %v990_v0, 16  ;;  %v1580_v52 = vshll.u32 %v990_v0, 16  ;;  %v9191_v0 = vld [vmem:[#allocation8_spill] sm:$0xff] }
 0x21d   : > { %v3788_v40 = vpop.f32.mrf.mxu1  ;;  %v2977_v36 = vshll.u32 %v2339_v29, 16  ;;  %v2985_v28 = vshll.u32 %v2341_v32, 16  ;;  %v3705_v4 = vadd.f32 %v9191_v0, %v8337_v9 }
 0x21e   : > { %v3789_v55 = vadd.f32 %v3788_v40, %v3700_v21  ;;  %v4200_v46 = vor.u32 %v4199_v54, %v4196_v5  ;;  %v2946_v41 = vsel %vm1128_vm6, %v2937_v18, %v2945_v59  ;;  %v1976_v40 = vld [vmem:[#allocation2 + $0x190] sm:$0x1]  ;;  %v1579_v44 = vrot.slane %v1577_v63, 3 }
 0x21f   : > { %v3877_v26 = vpop.f32.mrf.mxu2  ;;  %v8447_v5 = vld [vmem:[#allocation2 + $0xb0] sm:$0xff]   ;;  %v2976_v59 = vrot.slane %v2974_v20, 3  ;;  %v2987_v17 = vrot.slane %v2985_v28, 4 }
 0x220   : > { %3827 = vmatmul.bf16.gmra.mxu1 %v1540_v45  ;;  %v8426_v19 = vadd.f32 %v3877_v26, %v3789_v55  ;;  %v4575_v58 = vshrl.u32 %v4200_v46, 16  ;;  %v4578_v25 = vshll.u32 %v4200_v46, 16  ;;  %v2982_v45 = vshrl.u32 %v2341_v32, 16 }
 0x221   : > { %v3483_v50 = vpop.f32.mrf.mxu3  ;;  %v995_v26 = vshll.u32 %v8265_v35, 16  ;;  %v4202_v35 = vshrl.u32 %v8447_v5, 16  ;;  %v4205_v12 = vshll.u32 %v8447_v5, 16 }
 0x222   : > { %v8432_v43 = vadd.f32 %v3483_v50, %v9189_v57  ;;  %v1582_v50 = vrot.slane %v1580_v52, 4  ;;  %v4577_v18 = vrot.slane %v4575_v58, 3  ;;  %v2979_v57 = vrot.slane %v2977_v36, 4 }
 0x223   : > { %5426 = vmatmul.bf16.gmra.mxu0 %v4538_v1  ;;  %v2280_v1 = vunpack.c.l.b16 %v1976_v40  ;;  %v4580_v29 = vrot.slane %v4578_v25, 4  ;;  %v4204_v9 = vrot.slane %v4202_v35, 4 }
 0x224   : > { %v2980_v36 = vor.u32 %v2979_v57, %v2976_v59 }
 0x225   : > { %v3790_v47 = vpop.f32.mrf.mxu1  ;;  %v2296_v63 = vpack.c.b16 %v2280_v1, %v2280_v1  ;;  %v4581_v20 = vor.u32 %v4580_v29, %v4577_v18 }
 0x226   : > { %v3791_v31 = vadd.f32 %v3790_v47, %v3702_v39  ;;  %3525 = vmatmul.bf16.gmra.mxu3 %v2946_v41  ;;  %v994_v39 = vrot.slane %v992_v60, 4  ;;  %v997_v47 = vrot.slane %v995_v26, 5  ;;  %v8465_v60 = vpop.f32.mrf.mxu0  ;;  %v6545_v26 = vld [vmem:[%s9144_s3 + $0x180] sm:$0xff] }
 0x227   : > { %v3879_v21 = vpop.f32.mrf.mxu2  ;;  %v2343_v28 = vrot.slane %v2296_v63, 5  ;;  %5321 = vmatpush.bf16.msra.mxu3 %v6545_v26 }
 0x228   : > { %v8438_v49 = vadd.f32 %v3879_v21, %v3791_v31  ;;  %v1583_v31 = vor.u32 %v1582_v50, %v1579_v44  ;;  %v4207_v21 = vrot.slane %v4205_v12, 5  ;;  %v998_v25 = vor.u32 %v997_v47, %v994_v39  ;;  %v9193_v44 = vld [vmem:[#allocation9_spill] sm:$0xff] }
 0x229   : > { %v3486_v55 = vpop.f32.mrf.mxu3  ;;  %v3707_v50 = vadd.f32 %v9193_v44, %v8357_v8  ;;  %v756_v44 = vld [vmem:[#allocation2 + $0x148] sm:$0x1] }
 0x22a   : > { %v8450_v54 = vadd.f32 %v3486_v55, %v8067_v27  ;;  %v2984_v27 = vrot.slane %v2982_v45, 3  ;;  %v7240_v55 = vld [vmem:[#allocation2 + $0x188] sm:$0xff]  ;;  %v4208_v1 = vor.u32 %v4207_v21, %v4204_v9  ;;  %v1623_v0 = vshll.u32 %v998_v25, 16 }
 0x22b   : > { %v2342_v45 = vrot.slane %v7240_v55, 5  ;;  %v1003_v9 = vshll.u32 %v8315_v62, 16  ;;  %v8481_v21 = vld [vmem:[#allocation2 + $0xc8] sm:$0xff]  }
 0x22c   : > { %3921 = vmatmul.bf16.gmra.mxu2 %v8345_v11  ;;  %v6562_v11 = vld [vmem:[%s9144_s3 + $0x208] sm:$0xff]  ;;  %v2988_v40 = vor.u32 %v2987_v17, %v2984_v27  ;;  %v4621_v27 = vshll.u32 %v4208_v1, 16  ;;  %v1625_v63 = vrot.slane %v1623_v0, 4  ;;  %v4210_v26 = vshrl.u32 %v8481_v21, 16 }
 0x22d   : > { %v3793_v46 = vpop.f32.mrf.mxu1  ;;  %5498 = vmatpush.bf16.msra.mxu1 %v6562_v11  ;;  %v3017_v35 = vshrl.u32 %v2342_v45, 16  ;;  %v3020_v17 = vshll.u32 %v2342_v45, 16  ;;  %v6574_v0 = vld [vmem:[%s9146_s5 + $0x28] sm:$0xff] }
 0x22e   : > { %v3794_v41 = vadd.f32 %v3793_v46, %v3705_v4  ;;  %v2989_v59 = vsel %vm1128_vm6, %v2980_v36, %v2988_v40  ;;  %v2344_v4 = vsel %vm1079_vm7, %v2342_v45, %v2343_v28  ;;  %v4618_v46 = vshrl.u32 %v4208_v1, 16  ;;  %v8486_v55 = vpop.f32.mrf.mxu0  ;;  %5767 = vmatpush.bf16.msra.mxu2 %v6574_v0 }
 0x22f   : > { %v3882_v52 = vpop.f32.mrf.mxu2  ;;  %v3025_v47 = vshrl.u32 %v2344_v4, 16  ;;  %v3019_v11 = vrot.slane %v3017_v35, 3  ;;  %v4623_v40 = vrot.slane %v4621_v27, 4  ;;  %v4212_v27 = vrot.slane %v4210_v26, 4 }
 0x230   : > { %3832 = vmatmul.bf16.gmra.mxu1 %v1583_v31  ;;  %v8457_v32 = vadd.f32 %v3882_v52, %v3794_v41  ;;  %v3028_v41 = vshll.u32 %v2344_v4, 16  ;;  %v1000_v52 = vshrl.u32 %v8315_v62, 16  ;;  %v4620_v36 = vrot.slane %v4618_v46, 3 }
 0x231   : > { %v3488_v58 = vpop.f32.mrf.mxu3  ;;  %v3027_v45 = vrot.slane %v3025_v47, 3  ;;  %v4213_v62 = vshll.u32 %v8481_v21, 16  ;;  %v1060_v4 = vunpack.c.l.b16 %v756_v44 }
 0x232   : > { %9192 = vst [vmem:[#allocation6_spill] sm:$0xff] %v8457_v32  ;;  %v8463_v2 = vadd.f32 %v3488_v58, %v8090_v42  ;;  %v1620_v42 = vshrl.u32 %v998_v25, 16  ;;  %v9195_v58 = vld [vmem:[#allocation12_spill] sm:$0xff]  ;;  %v3022_v25 = vrot.slane %v3020_v17, 4  ;;  %v3030_v28 = vrot.slane %v3028_v41, 4 }
 0x233   : > { %5431 = vmatmul.bf16.gmra.mxu0 %v4581_v20  ;;  %v3710_v20 = vadd.f32 %v9195_v58, %v8376_v15  ;;  %v4215_v17 = vrot.slane %v4213_v62, 5  ;;  %v7044_v41 = vld [vmem:[#allocation2 + $0x34] sm:$0x8] }
 0x234   : > { %v1622_v8 = vrot.slane %v1620_v42, 3  ;;  %v4624_v42 = vor.u32 %v4623_v40, %v4620_v36  ;;  %v3023_v35 = vor.u32 %v3022_v25, %v3019_v11  ;;  %v3031_v46 = vor.u32 %v3030_v28, %v3027_v45  ;;  %v9198_v58 = vld [vmem:[#allocation14_spill] sm:$0xff] }
 0x235   : > { %v3795_v18 = vpop.f32.mrf.mxu1  ;;  %v1076_v40 = vpack.c.b16 %v1060_v4, %v1060_v4 }
 0x236   : > { %v3796_v57 = vadd.f32 %v3795_v18, %v3707_v50  ;;  %3530 = vmatmul.bf16.gmra.mxu3 %v2989_v59  ;;  %v1626_v1 = vor.u32 %v1625_v63, %v1622_v8  ;;  %v1002_v18 = vrot.slane %v1000_v52, 4  ;;  %v1005_v59 = vrot.slane %v1003_v9, 5  ;;  %v7241_v52 = vld [vmem:[#allocation2 + $0x140] sm:$0xff]   ;;  %v8502_v44 = vpop.f32.mrf.mxu0 }
 0x237   : > { %v3884_v29 = vpop.f32.mrf.mxu2  ;;  %v1008_v9 = vshrl.u32 %v7241_v52, 16  ;;  %v1011_v36 = vshll.u32 %v7241_v52, 16  ;;  %v3032_v25 = vsel %vm1128_vm6, %v3023_v35, %v3031_v46 }
 0x238   : > { %v8474_v12 = vadd.f32 %v3884_v29, %v3796_v57  ;;  %v1006_v47 = vor.u32 %v1005_v59, %v1002_v18 }
 0x239   : > { %v3491_v39 = vpop.f32.mrf.mxu3  ;;  %v1010_v59 = vrot.slane %v1008_v9, 4 }
 0x23a   : > { %9194 = vst [vmem:[#allocation10_spill] sm:$0xff] %v8474_v12  ;;  %v8477_v31 = vadd.f32 %v3491_v39, %v8108_v24  ;;  %v9197_v39 = vld [vmem:[#allocation18_spill] sm:$0xff]  ;;  %v1663_v26 = vshrl.u32 %v1006_v47, 16  ;;  %v1666_v62 = vshll.u32 %v1006_v47, 16  ;;  %v8509_v47 = vld [vmem:[#allocation2 + $0xe0] sm:$0xff]  }
 0x23c   : > { %3926 = vmatmul.bf16.gmra.mxu2 %v8387_v22  ;;  %v6789_v22 = vunpack.c.h.b16 %v8199_v14  ;;  %v7162_v14 = vld [vmem:[#allocation2 + $0x34] sm:$0xf0]  }
 0x23d   : > { %v3798_v24 = vpop.f32.mrf.mxu1  ;;  %v7045_v45 = vor.u32 %v7162_v14, %v7044_v41  ;;  %v9200_v14 = vld [vmem:[#allocation16_spill] sm:$0xff] }
 0x23e   : > { %v3799_v50 = vadd.f32 %v3798_v24, %v3710_v20  ;;  %v4114_v63 = vpack.c.b16 %v6789_v22, %v6789_v22  ;;  %v3712_v20 = vadd.f32 %v9198_v58, %v8396_v34  ;;  %v4216_v24 = vor.u32 %v4215_v17, %v4212_v27 }
 0x23f   : > { %v3887_v15 = vpop.f32.mrf.mxu2  ;;  %v1013_v34 = vrot.slane %v1011_v36, 5  ;;  %v1119_v22 = vrot.slane %v7241_v52, 5  ;;  %v4386_v35 = vshrl.u32 %v7045_v45, 16  ;;  %v1665_v27 = vrot.slane %v1663_v26, 3 }
 0x240   : > { %3837 = vmatmul.bf16.gmra.mxu1 %v1626_v1  ;;  %v8491_v57 = vadd.f32 %v3887_v15, %v3799_v50  ;;  %v4394_v1 = vshrl.u32 %v4114_v63, 16  ;;  %v4397_v18 = vshll.u32 %v4114_v63, 16  ;;  %v4661_v4 = vshrl.u32 %v4216_v24, 16 }
 0x241   : > { %v3493_v29 = vpop.f32.mrf.mxu3  ;;  %v1668_v17 = vrot.slane %v1666_v62, 4  ;;  %v3715_v63 = vadd.f32 %v9200_v14, %v8411_v30  ;;  %v1014_v9 = vor.u32 %v1013_v34, %v1010_v59  ;;  %v7048_v62 = vld [vmem:[#allocation2 + $0x4c] sm:$0x8]  ;;  %v7163_v59 = vld [vmem:[#allocation2 + $0x4c] sm:$0xf0]  }
 0x242   : > { %9196 = vst [vmem:[#allocation7_spill] sm:$0xff] %v8491_v57  ;;  %v8497_v8 = vadd.f32 %v3493_v29, %v9197_v39  ;;  %v4664_v29 = vshll.u32 %v4216_v24, 16  ;;  %v4389_v39 = vshll.u32 %v7045_v45, 16  ;;  %v4396_v41 = vrot.slane %v4394_v1, 3 }
 0x243   : > { %5436 = vmatmul.bf16.gmra.mxu0 %v4624_v42  ;;  %v1120_v42 = vrot.slane %v1076_v40, 5  ;;  %v4399_v52 = vrot.slane %v4397_v18, 4  ;;  %v4663_v36 = vrot.slane %v4661_v4, 3  ;;  %v1669_v45 = vor.u32 %v1668_v17, %v1665_v27  ;;  %v6561_v4 = vld [vmem:[%s9144_s3 + $0x200] sm:$0xff] }
 0x244   : > { %v4666_v40 = vrot.slane %v4664_v29, 4  ;;  %v4391_v26 = vrot.slane %v4389_v39, 4  ;;  %v1706_v39 = vshrl.u32 %v1014_v9, 16  ;;  %5499 = vmatpush.bf16.msra.mxu1 %v6561_v4 }
 0x245   : > { %v3800_v11 = vpop.f32.mrf.mxu1  ;;  %v1121_v58 = vsel %vm1079_vm7, %v1119_v22, %v1120_v42  ;;  %v4400_v42 = vor.u32 %v4399_v52, %v4396_v41  ;;  %v7049_v41 = vor.u32 %v7163_v59, %v7048_v62 }
 0x246   : > { %v3801_v28 = vadd.f32 %v3800_v11, %v3712_v20  ;;  %3535 = vmatmul.bf16.gmra.mxu3 %v3032_v25  ;;  %v4221_v11 = vshll.u32 %v8509_v47, 16  ;;  %v757_v25 = vld [vmem:[#allocation2 + $0x160] sm:$0x1]  ;;  %v1723_v1 = vshrl.u32 %v1121_v58, 16  ;;  %v1726_v18 = vshll.u32 %v1121_v58, 16 }
 0x247   : > { %v3889_v50 = vpop.f32.mrf.mxu2  ;;  %v1061_v29 = vunpack.c.l.b16 %v757_v25  ;;  %v4667_v17 = vor.u32 %v4666_v40, %v4663_v36  ;;  %v9202_v25 = vld [vmem:[#allocation20_spill] sm:$0xff] }
 0x248   : > { %v8504_v15 = vadd.f32 %v3889_v50, %v3801_v28  ;;  %v4388_v28 = vrot.slane %v4386_v35, 3  ;;  %v1715_v50 = vshrl.u32 %v1119_v22, 16  ;;  %v8523_v35 = vpop.f32.mrf.mxu0  ;;  %v4223_v14 = vrot.slane %v4221_v11, 5 }
 0x249   : > { %v3496_v0 = vpop.f32.mrf.mxu3  ;;  %v1077_v36 = vpack.c.b16 %v1061_v29, %v1061_v29  ;;  %v1708_v11 = vrot.slane %v1706_v39, 3 }
 0x24a   : > { %9199 = vst [vmem:[#allocation8_spill] sm:$0xff] %v8504_v15  ;;  %v8507_v46 = vadd.f32 %v3496_v0, %v8155_v37  ;;  %v4218_v37 = vshrl.u32 %v8509_v47, 16  ;;  %v6793_v0 = vunpack.c.h.b16 %v8280_v61  ;;  %v4392_v58 = vor.u32 %v4391_v26, %v4388_v28  ;;  %v7242_v28 = vld [vmem:[#allocation2 + $0x158] sm:$0xff]   ;;  %v9210_v15 = vld [vmem:[#allocation24_spill] sm:$0xff] }
 0x24b   : > { %v1717_v61 = vrot.slane %v1715_v50, 3  ;;  %v1016_v26 = vshrl.u32 %v7242_v28, 16  ;;  %v1019_v62 = vshll.u32 %v7242_v28, 16  ;;  %v1122_v4 = vrot.slane %v7242_v28, 5 }
 0x24c   : > { %3931 = vmatmul.bf16.gmra.mxu2 %v8422_v51  ;;  %v1718_v51 = vshll.u32 %v1119_v22, 16  ;;  %v4220_v22 = vrot.slane %v4218_v37, 4  ;;  %v4401_v37 = vsel %vm1128_vm6, %v4392_v58, %v4400_v42  ;;  %v1123_v29 = vrot.slane %v1077_v36, 5 }
 0x24d   : > { %v3803_v20 = vpop.f32.mrf.mxu1  ;;  %v1018_v58 = vrot.slane %v1016_v26, 4 }
 0x24e   : > { %v3804_v24 = vadd.f32 %v3803_v20, %v3715_v63  ;;  %v1709_v20 = vshll.u32 %v1014_v9, 16  ;;  %v1720_v52 = vrot.slane %v1718_v51, 4 }
 0x24f   : > { %v3892_v30 = vpop.f32.mrf.mxu2 }
 0x250   : > { %3842 = vmatmul.bf16.gmra.mxu1 %v1669_v45  ;;  %v8517_v34 = vadd.f32 %v3892_v30, %v3804_v24  ;;  %v1725_v24 = vrot.slane %v1723_v1, 3  ;;  %v1728_v45 = vrot.slane %v1726_v18, 4  ;;  %v3717_v30 = vadd.f32 %v9202_v25, %v8432_v43  ;;  %v8538_v25 = vld [vmem:[#allocation2 + $0xf8] sm:$0xff]  }
 0x251   : > { %v3498_v27 = vpop.f32.mrf.mxu3  ;;  %v1711_v9 = vrot.slane %v1709_v20, 4  ;;  %v1721_v51 = vor.u32 %v1720_v52, %v1717_v61  ;;  %v4429_v18 = vshrl.u32 %v7049_v41, 16  ;;  %v4432_v43 = vshll.u32 %v7049_v41, 16 }
 0x252   : > { %9201 = vst [vmem:[#allocation9_spill] sm:$0xff] %v8517_v34  ;;  %v8526_v63 = vadd.f32 %v3498_v27, %v8180_v10  ;;  %v4116_v34 = vpack.c.b16 %v6793_v0, %v6793_v0  ;;  %v4224_v10 = vor.u32 %v4223_v14, %v4220_v22  ;;  %v1729_v1 = vor.u32 %v1728_v45, %v1725_v24  ;;  %v9205_v22 = vld [vmem:[#allocation25_spill] sm:$0xff] }
 0x253   : > { %5441 = vmatmul.bf16.gmra.mxu0 %v4667_v17  ;;  %v1021_v20 = vrot.slane %v1019_v62, 5  ;;  %v1712_v61 = vor.u32 %v1711_v9, %v1708_v11  ;;  %v4431_v41 = vrot.slane %v4429_v18, 3  ;;  %v4434_v24 = vrot.slane %v4432_v43, 4  ;;  %v758_v11 = vld [vmem:[#allocation2 + $0x178] sm:$0x1] }
 0x254   : > { %v4437_v59 = vshrl.u32 %v4116_v34, 16  ;;  %v4440_v0 = vshll.u32 %v4116_v34, 16  ;;  %v4704_v17 = vshrl.u32 %v4224_v10, 16  ;;  %v4707_v39 = vshll.u32 %v4224_v10, 16  ;;  %v9206_v34 = vld [vmem:[#allocation22_spill] sm:$0xff] }
 0x255   : > { %v3805_v40 = vpop.f32.mrf.mxu1  ;;  %v1730_v52 = vsel %vm1128_vm6, %v1721_v51, %v1729_v1  ;;  %v3720_v45 = vadd.f32 %v9206_v34, %v8450_v54  ;;  %v4226_v62 = vshrl.u32 %v8538_v25, 16  ;;  %v1022_v51 = vor.u32 %v1021_v20, %v1018_v58  ;;  %v6573_v34 = vld [vmem:[%s9146_s5 + $0x20] sm:$0xff] }
 0x256   : > { %v8531_v27 = vadd.f32 %v3805_v40, %v3717_v30  ;;  %5322 = vmatmul.bf16.vlgmr.msra.gmra.mxu3 %v4401_v37  ;;  %v8540_v30 = vpop.f32.mrf.mxu0  ;;  %v4439_v36 = vrot.slane %v4437_v59, 3  ;;  %v4442_v40 = vrot.slane %v4440_v0, 4  ;;  %v1124_v37 = vsel %vm1079_vm7, %v1122_v4, %v1123_v29  ;;  %v7052_v29 = vld [vmem:[#allocation2 + $0x64] sm:$0x8]  ;;  %5768 = vmatpush.bf16.msra.mxu2 %v6573_v34 }
 0x257   : > { %v8533_v50 = vpop.f32.mrf.mxu2  ;;  %v4706_v28 = vrot.slane %v4704_v17, 3  ;;  %v4709_v26 = vrot.slane %v4707_v39, 4  ;;  %v1758_v1 = vshrl.u32 %v1122_v4, 16  ;;  %v1761_v18 = vshll.u32 %v1122_v4, 16  ;;  %v9208_v17 = vld [vmem:[#allocation34_spill] sm:$0xff] }
 0x258   : > { %9203 = vst [vmem:[#allocation12_spill] sm:$0xff] %v8531_v27  ;;  %v1769_v54 = vshll.u32 %v1124_v37, 16  ;;  %v4435_v0 = vor.u32 %v4434_v24, %v4431_v41  ;;  %v6797_v39 = vunpack.c.h.b16 %v9208_v17  ;;  %v4443_v20 = vor.u32 %v4442_v40, %v4439_v36  ;;  %v9209_v27 = vld [vmem:[#allocation27_spill] sm:$0xff] }
 0x259   : > { %9204 = vst [vmem:[#allocation18_spill] sm:$0xff] %v8533_v50  ;;  %v3501_v42 = vpop.f32.mrf.mxu3  ;;  %v1062_v50 = vunpack.c.l.b16 %v758_v11  ;;  %v4710_v58 = vor.u32 %v4709_v26, %v4706_v28  ;;  %v4228_v4 = vrot.slane %v4226_v62, 4  ;;  %v1763_v41 = vrot.slane %v1761_v18, 4 }
 0x25a   : > { %v8536_v14 = vadd.f32 %v3501_v42, %v9205_v22  ;;  %v4229_v42 = vshll.u32 %v8538_v25, 16  ;;  %v1766_v22 = vshrl.u32 %v1124_v37, 16  ;;  %v1752_v24 = vshll.u32 %v1022_v51, 16 }
 0x25b   : > { %v1771_v17 = vrot.slane %v1769_v54, 4  ;;  %v3722_v11 = vadd.f32 %v9210_v15, %v8463_v2  ;;  %v4118_v57 = vpack.c.b16 %v6797_v39, %v6797_v39  ;;  %v1078_v28 = vpack.c.b16 %v1062_v50, %v1062_v50  ;;  %v7243_v50 = vld [vmem:[#allocation2 + $0x170] sm:$0xff]  }
 0x25c   : > { %3936 = vmatmul.bf16.gmra.mxu2 %v1730_v52  ;;  %v7164_v52 = vld [vmem:[#allocation2 + $0x64] sm:$0xf0]   ;;  %v1754_v18 = vrot.slane %v1752_v24, 4 }
 0x25d   : > { %v3808_v10 = vpop.f32.mrf.mxu1  ;;  %v4480_v2 = vshrl.u32 %v4118_v57, 16  ;;  %v4483_v15 = vshll.u32 %v4118_v57, 16  ;;  %v1126_v39 = vrot.slane %v1078_v28, 5  ;;  %v9214_v57 = vld [vmem:[#allocation28_spill] sm:$0xff] }
 0x25e   : > { %v3809_v9 = vadd.f32 %v3808_v10, %v3720_v45  ;;  %v4231_v10 = vrot.slane %v4229_v42, 5  ;;  %v8559_v36 = vpop.f32.mrf.mxu0 }
 0x25f   : > { %v3897_v43 = vpop.f32.mrf.mxu2 }
 0x260   : > { %3847 = vmatmul.bf16.gmra.mxu1 %v1712_v61  ;;  %v8548_v59 = vadd.f32 %v3897_v43, %v3809_v9  ;;  %v1749_v61 = vshrl.u32 %v1022_v51, 16  ;;  %v1760_v9 = vrot.slane %v1758_v1, 3  ;;  %v1768_v43 = vrot.slane %v1766_v22, 3 }
 0x261   : > { %v3503_v45 = vpop.f32.mrf.mxu3  ;;  %v4232_v26 = vor.u32 %v4231_v10, %v4228_v4  ;;  %v1024_v4 = vshrl.u32 %v7243_v50, 16  ;;  %v1027_v10 = vshll.u32 %v7243_v50, 16 }
 0x262   : > { %9207 = vst [vmem:[#allocation14_spill] sm:$0xff] %v8548_v59  ;;  %v8555_v37 = vadd.f32 %v3503_v45, %v9209_v27  ;;  %v7053_v59 = vor.u32 %v7164_v52, %v7052_v29  ;;  %v4444_v27 = vsel %vm1128_vm6, %v4435_v0, %v4443_v20  ;;  %v1751_v42 = vrot.slane %v1749_v61, 3  ;;  %v8569_v61 = vld [vmem:[#allocation2 + $0x110] sm:$0xff]  }
 0x263   : > { %5446 = vmatmul.bf16.gmra.mxu0 %v4710_v58  ;;  %v1764_v1 = vor.u32 %v1763_v41, %v1760_v9  ;;  %v1772_v22 = vor.u32 %v1771_v17, %v1768_v43  ;;  %v1125_v52 = vrot.slane %v7243_v50, 5  ;;  %v4747_v45 = vshrl.u32 %v4232_v26, 16  ;;  %v9213_v58 = vld [vmem:[#allocation29_spill] sm:$0xff] }
 0x264   : > { %v4472_v54 = vshrl.u32 %v7053_v59, 16  ;;  %v4475_v29 = vshll.u32 %v7053_v59, 16  ;;  %v4750_v0 = vshll.u32 %v4232_v26, 16  ;;  %v1755_v9 = vor.u32 %v1754_v18, %v1751_v42 }
 0x265   : > { %v3810_v40 = vpop.f32.mrf.mxu1  ;;  %v1773_v41 = vsel %vm1128_vm6, %v1764_v1, %v1772_v22  ;;  %v3725_v43 = vadd.f32 %v9214_v57, %v8477_v31  ;;  %v4482_v17 = vrot.slane %v4480_v2, 3  ;;  %v1127_v28 = vsel %vm1079_vm7, %v1125_v52, %v1126_v39 }
 0x266   : > { %v8562_v62 = vadd.f32 %v3810_v40, %v3722_v11  ;;  %5327 = vmatmul.bf16.gmra.mxu3 %v4444_v27  ;;  %v4474_v24 = vrot.slane %v4472_v54, 3  ;;  %v4477_v59 = vrot.slane %v4475_v29, 4  ;;  %v4485_v11 = vrot.slane %v4483_v15, 4  ;;  %v8577_v54 = vpop.f32.mrf.mxu0 }
 0x267   : > { %v8564_v51 = vpop.f32.mrf.mxu2  ;;  %v4749_v27 = vrot.slane %v4747_v45, 3  ;;  %v4752_v26 = vrot.slane %v4750_v0, 4  ;;  %v4234_v50 = vshrl.u32 %v8569_v61, 16  ;;  %v1026_v18 = vrot.slane %v1024_v4, 4  ;;  %v9215_v4 = vld [vmem:[#allocation31_spill] sm:$0xff] }
 0x268   : > { %9211 = vst [vmem:[#allocation16_spill] sm:$0xff] %v8562_v62  ;;  %v1029_v1 = vrot.slane %v1027_v10, 5  ;;  %v1801_v22 = vshrl.u32 %v1125_v52, 16  ;;  %v1804_v31 = vshll.u32 %v1125_v52, 16  ;;  %v1812_v2 = vshll.u32 %v1127_v28, 16 }
 0x269   : > { %9212 = vst [vmem:[#allocation20_spill] sm:$0xff] %v8564_v51  ;;  %v3506_v34 = vpop.f32.mrf.mxu3  ;;  %v6801_v15 = vunpack.c.h.b16 %v8368_v56  ;;  %v4753_v0 = vor.u32 %v4752_v26, %v4749_v27  ;;  %v4236_v57 = vrot.slane %v4234_v50, 4  ;;  %v7165_v27 = vld [vmem:[#allocation2 + $0x7c] sm:$0xf0]  }
 0x26a   : > { %v8567_v20 = vadd.f32 %v3506_v34, %v9213_v58  ;;  %v4237_v34 = vshll.u32 %v8569_v61, 16  ;;  %v1809_v58 = vshrl.u32 %v1127_v28, 16  ;;  %v1030_v62 = vor.u32 %v1029_v1, %v1026_v18 }
 0x26b   : > { %v1803_v12 = vrot.slane %v1801_v22, 3  ;;  %v1806_v52 = vrot.slane %v1804_v31, 4  ;;  %v1814_v32 = vrot.slane %v1812_v2, 4  ;;  %v4120_v56 = vpack.c.b16 %v6801_v15, %v6801_v15 }
 0x26c   : > { %3941 = vmatmul.bf16.gmra.mxu2 %v1773_v41  ;;  %v4486_v41 = vor.u32 %v4485_v11, %v4482_v17  ;;  %v4239_v51 = vrot.slane %v4237_v34, 5  ;;  %v1811_v28 = vrot.slane %v1809_v58, 3 }
 0x26d   : > { %v3813_v40 = vpop.f32.mrf.mxu1  ;;  %v1807_v1 = vor.u32 %v1806_v52, %v1803_v12  ;;  %v4523_v58 = vshrl.u32 %v4120_v56, 16  ;;  %v4526_v2 = vshll.u32 %v4120_v56, 16 }
 0x26e   : > { %v3814_v42 = vadd.f32 %v3813_v40, %v3725_v43  ;;  %v4001_v43 = vld [vmem:[#allocation2 + $0x40] sm:$0x1]  ;;  %v4478_v40 = vor.u32 %v4477_v59, %v4474_v24  ;;  %v4240_v50 = vor.u32 %v4239_v51, %v4236_v57  ;;  %v1792_v24 = vshrl.u32 %v1030_v62, 16  ;;  %v8592_v15 = vpop.f32.mrf.mxu0 }
 0x26f   : > { %v3902_v29 = vpop.f32.mrf.mxu2  ;;  %v4305_v17 = vunpack.c.l.b16 %v4001_v43  ;;  %v1795_v59 = vshll.u32 %v1030_v62, 16  ;;  %v1815_v22 = vor.u32 %v1814_v32, %v1811_v28  ;;  %v4525_v52 = vrot.slane %v4523_v58, 3  ;;  %v9219_v28 = vld [vmem:[#allocation32_spill] sm:$0xff] }
 0x270   : > { %3852 = vmatmul.bf16.gmra.mxu1 %v1755_v9  ;;  %v8580_v39 = vadd.f32 %v3902_v29, %v3814_v42  ;;  %v9216_v9 = vld [vmem:[#allocation30_spill] sm:$0xff]  ;;  %v7056_v29 = vld [vmem:[#allocation2 + $0x7c] sm:$0x8]  ;;  %v4487_v26 = vsel %vm1128_vm6, %v4478_v40, %v4486_v41  ;;  %v4793_v43 = vshll.u32 %v4240_v50, 16  ;;  %v9218_v41 = vld [vmem:[#allocation33_spill] sm:$0xff]  ;;  %v1794_v57 = vrot.slane %v1792_v24, 3 }
 0x271   : > { %v3508_v45 = vpop.f32.mrf.mxu3  ;;  %v3727_v42 = vadd.f32 %v9216_v9, %v8497_v8  ;;  %v7057_v31 = vor.u32 %v7165_v27, %v7056_v29  ;;  %v4321_v8 = vpack.c.b16 %v4305_v17, %v4305_v17  ;;  %v8597_v40 = vld [vmem:[#allocation2 + $0x128] sm:$0xff]   ;;  %v1816_v62 = vsel %vm1128_vm6, %v1807_v1, %v1815_v22 }
 0x272   : > { %v8583_v10 = vadd.f32 %v3508_v45, %v9215_v4  ;;  %v1797_v4 = vrot.slane %v1795_v59, 4  ;;  %v3730_v56 = vadd.f32 %v9219_v28, %v8507_v46  ;;  %v4528_v9 = vrot.slane %v4526_v2, 4 }
 0x273   : > { %5451 = vmatmul.bf16.gmra.mxu0 %v4753_v0  ;;  %v4790_v0 = vshrl.u32 %v4240_v50, 16  ;;  %v4515_v12 = vshrl.u32 %v7057_v31, 16  ;;  %v4518_v32 = vshll.u32 %v7057_v31, 16  ;;  %v4338_v27 = vrot.slane %v4321_v8, 5  ;;  %v6572_v8 = vld [vmem:[%s9146_s5 + $0x18] sm:$0xff] }
 0x274   : > { %v4242_v50 = vshrl.u32 %v8597_v40, 16  ;;  %v4245_v24 = vshll.u32 %v8597_v40, 16  ;;  %v1798_v1 = vor.u32 %v1797_v4, %v1794_v57  ;;  %v4529_v46 = vor.u32 %v4528_v9, %v4525_v52  ;;  %v4002_v57 = vld [vmem:[#allocation2 + $0x58] sm:$0x1]  ;;  %v9221_v4 = vld [vmem:[#allocation36_spill] sm:$0xff]  ;;  %5769 = vmatpush.bf16.msra.mxu2 %v6572_v8 }
 0x275   : > { %v3815_v11 = vpop.f32.mrf.mxu1  ;;  %v4517_v31 = vrot.slane %v4515_v12, 3  ;;  %v4520_v58 = vrot.slane %v4518_v32, 4  ;;  %v6805_v28 = vunpack.c.h.b16 %v8408_v23 }
 0x276   : > { %v8588_v34 = vadd.f32 %v3815_v11, %v3727_v42  ;;  %5332 = vmatmul.bf16.gmra.mxu3 %v4487_v26  ;;  %v7244_v42 = vld [vmem:[#allocation2 + $0x38] sm:$0xff]   ;;  %v4792_v11 = vrot.slane %v4790_v0, 3  ;;  %v4795_v26 = vrot.slane %v4793_v43, 4 }
 0x277   : > { %v8590_v18 = vpop.f32.mrf.mxu2  ;;  %v4337_v29 = vrot.slane %v7244_v42, 5  ;;  %v4521_v52 = vor.u32 %v4520_v58, %v4517_v31 }
 0x278   : > { %9217 = vst [vmem:[#allocation25_spill] sm:$0xff] %v8590_v18  ;;  %v4796_v43 = vor.u32 %v4795_v26, %v4792_v11  ;;  %v7060_v26 = vld [vmem:[#allocation2 + $0x94] sm:$0x8] }
 0x279   : > { %v3511_v45 = vpop.f32.mrf.mxu3  ;;  %v4339_v2 = vsel %vm1079_vm7, %v4337_v29, %v4338_v27  ;;  %v4412_v32 = vshrl.u32 %v4337_v29, 16  ;;  %v4415_v9 = vshll.u32 %v4337_v29, 16 }
 0x27a   : > { %v8595_v51 = vadd.f32 %v3511_v45, %v9218_v41  ;;  %v4244_v41 = vrot.slane %v4242_v50, 4  ;;  %v4420_v42 = vshrl.u32 %v4339_v2, 16  ;;  %v4423_v27 = vshll.u32 %v4339_v2, 16  ;;  %v7166_v50 = vld [vmem:[#allocation2 + $0x94] sm:$0xf0]  }
 0x27b   : > { %v4414_v8 = vrot.slane %v4412_v32, 3  ;;  %v4417_v29 = vrot.slane %v4415_v9, 4  ;;  %v7061_v2 = vor.u32 %v7166_v50, %v7060_v26  ;;  %v3735_v9 = vadd.f32 %v8352_v7, %v8536_v14 }
 0x27c   : > { %3946 = vmatmul.bf16.gmra.mxu2 %v1816_v62  ;;  %v4247_v62 = vrot.slane %v4245_v24, 5  ;;  %v4306_v24 = vunpack.c.l.b16 %v4002_v57  ;;  %v4422_v31 = vrot.slane %v4420_v42, 3  ;;  %v4425_v58 = vrot.slane %v4423_v27, 4 }
 0x27d   : > { %v3818_v17 = vpop.f32.mrf.mxu1  ;;  %v4558_v32 = vshrl.u32 %v7061_v2, 16 }
 0x27e   : > { %v3819_v59 = vadd.f32 %v3818_v17, %v3730_v56  ;;  %v8614_v56 = vpop.f32.mrf.mxu0  ;;  %v9222_v17 = vld [vmem:[#allocation35_spill] sm:$0xff] }
 0x27f   : > { %v3907_v22 = vpop.f32.mrf.mxu2  ;;  %v3732_v11 = vadd.f32 %v9222_v17, %v8526_v63 }
 0x280   : > { %3857 = vmatmul.bf16.gmra.mxu1 %v1798_v1  ;;  %v8604_v45 = vadd.f32 %v3907_v22, %v3819_v59  ;;  %v4530_v59 = vsel %vm1128_vm6, %v4521_v52, %v4529_v46  ;;  %v4248_v1 = vor.u32 %v4247_v62, %v4244_v41  ;;  %v4122_v22 = vpack.c.b16 %v6805_v28, %v6805_v28  ;;  %v7245_v41 = vld [vmem:[#allocation2 + $0x50] sm:$0xff]  }
 0x281   : > { %v3513_v0 = vpop.f32.mrf.mxu3  ;;  %v4340_v62 = vrot.slane %v7245_v41, 5  ;;  %v4418_v28 = vor.u32 %v4417_v29, %v4414_v8  ;;  %v4426_v52 = vor.u32 %v4425_v58, %v4422_v31  ;;  %v4560_v58 = vrot.slane %v4558_v32, 3 }
 0x282   : > { %9220 = vst [vmem:[#allocation22_spill] sm:$0xff] %v8604_v45  ;;  %v8612_v12 = vadd.f32 %v3513_v0, %v9221_v4  ;;  %v4322_v4 = vpack.c.b16 %v4306_v24, %v4306_v24  ;;  %v4833_v17 = vshrl.u32 %v4248_v1, 16  ;;  %v4836_v45 = vshll.u32 %v4248_v1, 16 }
 0x283   : > { %5456 = vmatmul.bf16.gmra.mxu0 %v4796_v43  ;;  %v4566_v57 = vshrl.u32 %v4122_v22, 16  ;;  %v4569_v18 = vshll.u32 %v4122_v22, 16  ;;  %v4427_v29 = vsel %vm1128_vm6, %v4418_v28, %v4426_v52  ;;  %v4458_v28 = vshll.u32 %v4340_v62, 16 }
 0x284   : > { %v4341_v42 = vrot.slane %v4322_v4, 5  ;;  %v4835_v24 = vrot.slane %v4833_v17, 3  ;;  %v4003_v17 = vld [vmem:[#allocation2 + $0x70] sm:$0x1] }
 0x285   : > { %v3820_v23 = vpop.f32.mrf.mxu1  ;;  %v4568_v1 = vrot.slane %v4566_v57, 3  ;;  %v4571_v22 = vrot.slane %v4569_v18, 4  ;;  %v4455_v57 = vshrl.u32 %v4340_v62, 16 }
 0x286   : > { %v8619_v0 = vadd.f32 %v3820_v23, %v3732_v11  ;;  %5337 = vmatmul.bf16.gmra.mxu3 %v4530_v59  ;;  %v4561_v11 = vshll.u32 %v7061_v2, 16  ;;  %v8626_v23 = vld [vmem:[#allocation2 + $0x140] sm:$0xff]   ;;  %v8632_v50 = vpop.f32.mrf.mxu0  ;;  %v4838_v59 = vrot.slane %v4836_v45, 4  ;;  %v4342_v14 = vsel %vm1079_vm7, %v4340_v62, %v4341_v42 }
 0x287   : > { %v8621_v43 = vpop.f32.mrf.mxu2  ;;  %v4250_v27 = vshrl.u32 %v8626_v23, 16  ;;  %v4253_v26 = vshll.u32 %v8626_v23, 16  ;;  %v6809_v45 = vunpack.c.h.b16 %v8447_v5  ;;  %v4463_v32 = vshrl.u32 %v4342_v14, 16 }
 0x288   : > { %9223 = vst [vmem:[#allocation34_spill] sm:$0xff] %v8619_v0  ;;  %v4563_v2 = vrot.slane %v4561_v11, 4  ;;  %v4572_v0 = vor.u32 %v4571_v22, %v4568_v1  ;;  %v4466_v11 = vshll.u32 %v4342_v14, 16  ;;  %v4460_v62 = vrot.slane %v4458_v28, 4  ;;  %v7246_v28 = vld [vmem:[#allocation2 + $0x68] sm:$0xff]  }
 0x289   : > { %9224 = vst [vmem:[#allocation27_spill] sm:$0xff] %v8621_v43  ;;  %v3516_v63 = vpop.f32.mrf.mxu3  ;;  %v4252_v4 = vrot.slane %v4250_v27, 4  ;;  %v4839_v43 = vor.u32 %v4838_v59, %v4835_v24  ;;  %v7064_v27 = vld [vmem:[#allocation2 + $0xac] sm:$0x8]  ;;  %v4124_v59 = vpack.c.b16 %v6809_v45, %v6809_v45 }
 0x28a   : > { %v8624_v46 = vadd.f32 %v3516_v63, %v8347_v16  ;;  %v4255_v63 = vrot.slane %v4253_v26, 5  ;;  %v4564_v52 = vor.u32 %v4563_v2, %v4560_v58  ;;  %v7167_v26 = vld [vmem:[#allocation2 + $0xac] sm:$0xf0]  }
 0x28b   : > { %v4609_v14 = vshrl.u32 %v4124_v59, 16 }
 0x28c   : > { %v4256_v42 = vor.u32 %v4255_v63, %v4252_v4  ;;  %v4573_v5 = vsel %vm1128_vm6, %v4564_v52, %v4572_v0  ;;  %v4612_v4 = vshll.u32 %v4124_v59, 16  ;;  %v9226_v0 = vld [vmem:[#allocation11_spill] sm:$0xff]  ;;  %v4343_v52 = vrot.slane %v7246_v28, 5 }
 0x28d   : > { %v3823_v16 = vpop.f32.mrf.mxu1 }
 0x28e   : > { %v3824_v8 = vadd.f32 %v3823_v16, %v3735_v9  ;;  %v3737_v9 = vadd.f32 %v8378_v48, %v8555_v37  ;;  %v4307_v16 = vunpack.c.l.b16 %v4003_v17  ;;  %v7065_v48 = vor.u32 %v7167_v26, %v7064_v27 }
 0x28f   : > { %v3912_v31 = vpop.f32.mrf.mxu2  ;;  %v4876_v37 = vshrl.u32 %v4256_v42, 16  ;;  %v4498_v28 = vshrl.u32 %v4343_v52, 16 }
 0x290   : > { %5500 = vmatmul.bf16.vlgmr.msra.gmra.mxu1 %v4427_v29  ;;  %v8635_v7 = vadd.f32 %v3912_v31, %v3824_v8  ;;  %v4465_v8 = vrot.slane %v4463_v32, 3  ;;  %v4468_v29 = vrot.slane %v4466_v11, 4  ;;  %v4879_v31 = vshll.u32 %v4256_v42, 16  ;;  %v8656_v42 = vld [vmem:[#allocation2 + $0x158] sm:$0xff]  }
 0x291   : > { %v3518_v41 = vpop.f32.mrf.mxu3  ;;  %v4323_v58 = vpack.c.b16 %v4307_v16, %v4307_v16  ;;  %v4601_v17 = vshrl.u32 %v7065_v48, 16  ;;  %v3740_v32 = vadd.f32 %v8400_v38, %v8567_v20  ;;  %v4878_v11 = vrot.slane %v4876_v37, 3 }
 0x292   : > { %v8640_v18 = vadd.f32 %v3518_v41, %v8366_v53  ;;  %v4457_v53 = vrot.slane %v4455_v57, 3  ;;  %v4469_v45 = vor.u32 %v4468_v29, %v4465_v8  ;;  %v4604_v57 = vshll.u32 %v7065_v48, 16 }
 0x293   : > { %5461 = vmatmul.bf16.gmra.mxu0 %v4839_v43  ;;  %v8647_v43 = vpop.f32.mrf.mxu0  ;;  %v4344_v27 = vrot.slane %v4323_v58, 5  ;;  %v4611_v16 = vrot.slane %v4609_v14, 3  ;;  %v4261_v59 = vshll.u32 %v8656_v42, 16  ;;  %v4603_v29 = vrot.slane %v4601_v17, 3  ;;  %v9228_v17 = vld [vmem:[#allocation13_spill] sm:$0xff] }
 0x294   : > { %v4461_v41 = vor.u32 %v4460_v62, %v4457_v53  ;;  %v4606_v48 = vrot.slane %v4604_v57, 4 }
 0x295   : > { %v3825_v24 = vpop.f32.mrf.mxu1  ;;  %v4345_v37 = vsel %vm1079_vm7, %v4343_v52, %v4344_v27 }
 0x296   : > { %v8645_v1 = vadd.f32 %v3825_v24, %v3737_v9  ;;  %5342 = vmatmul.bf16.gmra.mxu3 %v4573_v5  ;;  %v4881_v9 = vrot.slane %v4879_v31, 4  ;;  %v4614_v24 = vrot.slane %v4612_v4, 4  ;;  %v4258_v5 = vshrl.u32 %v8656_v42, 16  ;;  %v6571_v31 = vld [vmem:[%s9146_s5 + $0x10] sm:$0xff] }
 0x297   : > { %v8649_v22 = vpop.f32.mrf.mxu2  ;;  %v4470_v62 = vsel %vm1128_vm6, %v4461_v41, %v4469_v45  ;;  %v6813_v41 = vunpack.c.h.b16 %v8481_v21  ;;  %v4004_v45 = vld [vmem:[#allocation2 + $0x88] sm:$0x1]  ;;  %5770 = vmatpush.bf16.msra.mxu2 %v6571_v31  ;;  %v4509_v27 = vshll.u32 %v4345_v37, 16 }
 0x298   : > { %9225 = vst [vmem:[#allocation24_spill] sm:$0xff] %v8649_v22  ;;  %v4882_v38 = vor.u32 %v4881_v9, %v4878_v11  ;;  %v4615_v14 = vor.u32 %v4614_v24, %v4611_v16  ;;  %v4260_v4 = vrot.slane %v4258_v5, 4  ;;  %v4607_v11 = vor.u32 %v4606_v48, %v4603_v29  ;;  %v7168_v16 = vld [vmem:[#allocation2 + $0xc4] sm:$0xf0]   ;;  %v9231_v22 = vld [vmem:[#allocation15_spill] sm:$0xff] }
 0x299   : > { %v3521_v2 = vpop.f32.mrf.mxu3  ;;  %v4506_v9 = vshrl.u32 %v4345_v37, 16  ;;  %v4308_v24 = vunpack.c.l.b16 %v4004_v45  ;;  %v4511_v48 = vrot.slane %v4509_v27, 4  ;;  %v3745_v27 = vadd.f32 %v8443_v13, %v8595_v51 }
 0x29a   : > { %v8652_v63 = vadd.f32 %v3521_v2, %v9226_v0  ;;  %v4263_v0 = vrot.slane %v4261_v59, 5  ;;  %v4616_v21 = vsel %vm1128_vm6, %v4607_v11, %v4615_v14  ;;  %v7247_v11 = vld [vmem:[#allocation2 + $0x80] sm:$0xff]  }
 0x29b   : > { %v8667_v58 = vpop.f32.mrf.mxu0  ;;  %v4508_v29 = vrot.slane %v4506_v9, 3  ;;  %v8685_v9 = vld [vmem:[#allocation2 + $0x170] sm:$0xff]  }
 0x29c   : > { %v4264_v59 = vor.u32 %v4263_v0, %v4260_v4 }
 0x29d   : > { %v3828_v26 = vpop.f32.mrf.mxu1 }
 0x29e   : > { %v3829_v53 = vadd.f32 %v3828_v26, %v3740_v32  ;;  %v4501_v32 = vshll.u32 %v4343_v52, 16  ;;  %v3742_v26 = vadd.f32 %v8424_v6, %v8583_v10  ;;  %v4500_v52 = vrot.slane %v4498_v28, 3 }
 0x29f   : > { %v3917_v8 = vpop.f32.mrf.mxu2  ;;  %v4919_v10 = vshrl.u32 %v4264_v59, 16 }
 0x2a0   : > { %5505 = vmatmul.bf16.gmra.mxu1 %v4470_v62  ;;  %v8661_v20 = vadd.f32 %v3917_v8, %v3829_v53  ;;  %v7068_v53 = vld [vmem:[#allocation2 + $0xc4] sm:$0x8]  ;;  %v4126_v62 = vpack.c.b16 %v6813_v41, %v6813_v41  ;;  %v4503_v31 = vrot.slane %v4501_v32, 4  ;;  %v4512_v41 = vor.u32 %v4511_v48, %v4508_v29 }
 0x2a1   : > { %v3523_v2 = vpop.f32.mrf.mxu3  ;;  %v7069_v37 = vor.u32 %v7168_v16, %v7068_v53  ;;  %v4266_v16 = vshrl.u32 %v8685_v9, 16 }
 0x2a2   : > { %9227 = vst [vmem:[#allocation29_spill] sm:$0xff] %v8661_v20  ;;  %v8671_v57 = vadd.f32 %v3523_v2, %v9228_v17  ;;  %v4324_v2 = vpack.c.b16 %v4308_v24, %v4308_v24  ;;  %v4922_v17 = vshll.u32 %v4264_v59, 16  ;;  %v4652_v45 = vshrl.u32 %v4126_v62, 16 }
 0x2a3   : > { %5466 = vmatmul.bf16.gmra.mxu0 %v4882_v38  ;;  %v4655_v20 = vshll.u32 %v4126_v62, 16  ;;  %v4504_v4 = vor.u32 %v4503_v31, %v4500_v52  ;;  %v8683_v0 = vpop.f32.mrf.mxu0  ;;  %v4644_v28 = vshrl.u32 %v7069_v37, 16  ;;  %v4647_v32 = vshll.u32 %v7069_v37, 16 }
 0x2a4   : > { %v4347_v53 = vrot.slane %v4324_v2, 5  ;;  %v4269_v24 = vshll.u32 %v8685_v9, 16  ;;  %v4654_v59 = vrot.slane %v4652_v45, 3  ;;  %v4268_v51 = vrot.slane %v4266_v16, 4 }
 0x2a5   : > { %v3830_v5 = vpop.f32.mrf.mxu1  ;;  %v4657_v62 = vrot.slane %v4655_v20, 4  ;;  %v4513_v31 = vsel %vm1128_vm6, %v4504_v4, %v4512_v41  ;;  %v4646_v48 = vrot.slane %v4644_v28, 3  ;;  %v4649_v37 = vrot.slane %v4647_v32, 4  ;;  %v9232_v20 = vld [vmem:[#allocation17_spill] sm:$0xff] }
 0x2a6   : > { %v8676_v8 = vadd.f32 %v3830_v5, %v3742_v26  ;;  %5347 = vmatmul.bf16.gmra.mxu3 %v4616_v21  ;;  %v4346_v26 = vrot.slane %v7247_v11, 5  ;;  %v4921_v5 = vrot.slane %v4919_v10, 3  ;;  %v4924_v21 = vrot.slane %v4922_v17, 4  ;;  %v4005_v17 = vld [vmem:[#allocation2 + $0xa0] sm:$0x1] }
 0x2a7   : > { %v8678_v38 = vpop.f32.mrf.mxu2  ;;  %v4271_v2 = vrot.slane %v4269_v24, 5  ;;  %v6817_v10 = vunpack.c.h.b16 %v8509_v47  ;;  %v4650_v28 = vor.u32 %v4649_v37, %v4646_v48  ;;  %v7072_v24 = vld [vmem:[#allocation2 + $0xdc] sm:$0x8] }
 0x2a8   : > { %9229 = vst [vmem:[#allocation28_spill] sm:$0xff] %v8676_v8  ;;  %v4348_v13 = vsel %vm1079_vm7, %v4346_v26, %v4347_v53  ;;  %v4658_v8 = vor.u32 %v4657_v62, %v4654_v59  ;;  %v4541_v4 = vshrl.u32 %v4346_v26, 16  ;;  %v4544_v41 = vshll.u32 %v4346_v26, 16 }
 0x2a9   : > { %9230 = vst [vmem:[#allocation31_spill] sm:$0xff] %v8678_v38  ;;  %v3526_v6 = vpop.f32.mrf.mxu3  ;;  %v4925_v38 = vor.u32 %v4924_v21, %v4921_v5  ;;  %v4549_v32 = vshrl.u32 %v4348_v13, 16  ;;  %v3747_v53 = vadd.f32 %v8465_v60, %v8612_v12  ;;  %v4272_v16 = vor.u32 %v4271_v2, %v4268_v51 }
 0x2aa   : > { %v8681_v14 = vadd.f32 %v3526_v6, %v9231_v22  ;;  %v4309_v5 = vunpack.c.l.b16 %v4005_v17  ;;  %v4659_v59 = vsel %vm1128_vm6, %v4650_v28, %v4658_v8  ;;  %v4128_v62 = vpack.c.b16 %v6817_v10, %v6817_v10  ;;  %v9234_v17 = vld [vmem:[#allocation19_spill] sm:$0xff] }
 0x2ab   : > { %v8701_v21 = vpop.f32.mrf.mxu0  ;;  %v4546_v26 = vrot.slane %v4544_v41, 4  ;;  %v4962_v12 = vshrl.u32 %v4272_v16, 16  ;;  %v4965_v37 = vshll.u32 %v4272_v16, 16  ;;  %v8713_v16 = vld [vmem:[#allocation2 + $0x188] sm:$0xff]  }
 0x2ac   : > { %v4695_v2 = vshrl.u32 %v4128_v62, 16 }
 0x2ad   : > { %v3833_v22 = vpop.f32.mrf.mxu1 }
 0x2ae   : > { %v3834_v52 = vadd.f32 %v3833_v22, %v3745_v27  ;;  %v4552_v27 = vshll.u32 %v4348_v13, 16  ;;  %v7169_v22 = vld [vmem:[#allocation2 + $0xdc] sm:$0xf0]   ;;  %v4325_v13 = vpack.c.b16 %v4309_v5, %v4309_v5 }
 0x2af   : > { %v3922_v29 = vpop.f32.mrf.mxu2  ;;  %v7073_v60 = vor.u32 %v7169_v22, %v7072_v24  ;;  %v4967_v24 = vrot.slane %v4965_v37, 4 }
 0x2b0   : > { %5510 = vmatmul.bf16.gmra.mxu1 %v4513_v31  ;;  %v8692_v6 = vadd.f32 %v3922_v29, %v3834_v52  ;;  %v4551_v29 = vrot.slane %v4549_v32, 3  ;;  %v4554_v48 = vrot.slane %v4552_v27, 4  ;;  %v3750_v32 = vadd.f32 %v8486_v55, %v8624_v46 }
 0x2b1   : > { %v3528_v11 = vpop.f32.mrf.mxu3  ;;  %v4687_v28 = vshrl.u32 %v7073_v60, 16  ;;  %v4964_v27 = vrot.slane %v4962_v12, 3  ;;  %v4350_v22 = vrot.slane %v4325_v13, 5  ;;  %v6570_v13 = vld [vmem:[%s9146_s5 + $0x8] sm:$0xff] }
 0x2b2   : > { %v8697_v45 = vadd.f32 %v3528_v11, %v9232_v20  ;;  %v4698_v11 = vshll.u32 %v4128_v62, 16  ;;  %v4555_v10 = vor.u32 %v4554_v48, %v4551_v29  ;;  %v4274_v62 = vshrl.u32 %v8713_v16, 16  ;;  %5771 = vmatpush.bf16.msra.mxu2 %v6570_v13 }
 0x2b3   : > { %5471 = vmatmul.bf16.gmra.mxu0 %v4925_v38  ;;  %v4543_v38 = vrot.slane %v4541_v4, 3  ;;  %v7248_v4 = vld [vmem:[#allocation2 + $0x98] sm:$0xff]   ;;  %v8717_v29 = vpop.f32.mrf.mxu0  ;;  %v4968_v46 = vor.u32 %v4967_v24, %v4964_v27 }
 0x2b4   : > { %v4349_v41 = vrot.slane %v7248_v4, 5 }
 0x2b5   : > { %v3835_v47 = vpop.f32.mrf.mxu1  ;;  %v4547_v8 = vor.u32 %v4546_v26, %v4543_v38  ;;  %v4277_v38 = vshll.u32 %v8713_v16, 16 }
 0x2b6   : > { %v8704_v52 = vadd.f32 %v3835_v47, %v3747_v53  ;;  %5352 = vmatmul.bf16.gmra.mxu3 %v4659_v59  ;;  %v4690_v53 = vshll.u32 %v7073_v60, 16  ;;  %v4697_v47 = vrot.slane %v4695_v2, 3  ;;  %v4700_v59 = vrot.slane %v4698_v11, 4 }
 0x2b7   : > { %v8706_v31 = vpop.f32.mrf.mxu2  ;;  %v4556_v48 = vsel %vm1128_vm6, %v4547_v8, %v4555_v10  ;;  %v4351_v37 = vsel %vm1079_vm7, %v4349_v41, %v4350_v22  ;;  %v4279_v4 = vrot.slane %v4277_v38, 5  ;;  %v4006_v8 = vld [vmem:[#allocation2 + $0xb8] sm:$0x1]  ;;  %v9236_v10 = vld [vmem:[#allocation21_spill] sm:$0xff]  ;;  %v4587_v24 = vshll.u32 %v4349_v41, 16 }
 0x2b8   : > { %9233 = vst [vmem:[#allocation30_spill] sm:$0xff] %v8706_v31  ;;  %v4692_v55 = vrot.slane %v4690_v53, 4  ;;  %v4701_v11 = vor.u32 %v4700_v59, %v4697_v47  ;;  %v4584_v53 = vshrl.u32 %v4349_v41, 16  ;;  %v4592_v22 = vshrl.u32 %v4351_v37, 16  ;;  %v7170_v47 = vld [vmem:[#allocation2 + $0xf4] sm:$0xf0]  }
 0x2b9   : > { %v3531_v51 = vpop.f32.mrf.mxu3  ;;  %v4310_v59 = vunpack.c.l.b16 %v4006_v8  ;;  %v4589_v41 = vrot.slane %v4587_v24, 4  ;;  %v3755_v24 = vadd.f32 %v8523_v35, %v8652_v63 }
 0x2ba   : > { %v8709_v20 = vadd.f32 %v3531_v51, %v9234_v17  ;;  %v4689_v51 = vrot.slane %v4687_v28, 3  ;;  %v4276_v17 = vrot.slane %v4274_v62, 4  ;;  %v4586_v13 = vrot.slane %v4584_v53, 3 }
 0x2bc   : > { %v4693_v27 = vor.u32 %v4692_v55, %v4689_v51  ;;  %v4280_v38 = vor.u32 %v4279_v4, %v4276_v17  ;;  %v4594_v51 = vrot.slane %v4592_v22, 3  ;;  %v9238_v17 = vld [vmem:[#allocation23_spill] sm:$0xff]  ;;  %v7249_v22 = vld [vmem:[#allocation2 + $0xb0] sm:$0xff]  }
 0x2bd   : > { %v3838_v5 = vpop.f32.mrf.mxu1 }
 0x2be   : > { %v3839_v26 = vadd.f32 %v3838_v5, %v3750_v32  ;;  %v6821_v32 = vunpack.c.h.b16 %v8538_v25  ;;  %v4595_v5 = vshll.u32 %v4351_v37, 16  ;;  %v4702_v25 = vsel %vm1128_vm6, %v4693_v27, %v4701_v11 }
 0x2bf   : > { %v3927_v60 = vpop.f32.mrf.mxu2  ;;  %v5005_v8 = vshrl.u32 %v4280_v38, 16 }
 0x2c0   : > { %5515 = vmatmul.bf16.gmra.mxu1 %v4556_v48  ;;  %v8720_v12 = vadd.f32 %v3927_v60, %v3839_v26  ;;  %v3752_v26 = vadd.f32 %v8502_v44, %v8640_v18  ;;  %v7076_v48 = vld [vmem:[#allocation2 + $0xf4] sm:$0x8]  ;;  %v4130_v60 = vpack.c.b16 %v6821_v32, %v6821_v32  ;;  %v4597_v55 = vrot.slane %v4595_v5, 4  ;;  %v8737_v44 = vpop.f32.mrf.mxu0 }
 0x2c1   : > { %v3533_v2 = vpop.f32.mrf.mxu3  ;;  %v7077_v37 = vor.u32 %v7170_v47, %v7076_v48  ;;  %v4590_v32 = vor.u32 %v4589_v41, %v4586_v13  ;;  %v4352_v5 = vrot.slane %v7249_v22, 5  ;;  %v7171_v22 = vld [vmem:[#allocation2 + $0x10c] sm:$0xf0]  }
 0x2c2   : > { %9235 = vst [vmem:[#allocation33_spill] sm:$0xff] %v8720_v12  ;;  %v8728_v28 = vadd.f32 %v3533_v2, %v9236_v10  ;;  %v4326_v10 = vpack.c.b16 %v4310_v59, %v4310_v59  ;;  %v5008_v12 = vshll.u32 %v4280_v38, 16  ;;  %v4738_v31 = vshrl.u32 %v4130_v60, 16 }
 0x2c3   : > { %5476 = vmatmul.bf16.gmra.mxu0 %v4968_v46  ;;  %v4741_v11 = vshll.u32 %v4130_v60, 16  ;;  %v4598_v27 = vor.u32 %v4597_v55, %v4594_v51  ;;  %v4730_v53 = vshrl.u32 %v7077_v37, 16  ;;  %v5007_v59 = vrot.slane %v5005_v8, 3 }
 0x2c4   : > { %v4353_v48 = vrot.slane %v4326_v10, 5  ;;  %v4007_v10 = vld [vmem:[#allocation2 + $0xd0] sm:$0x1]  ;;  %v4627_v8 = vshrl.u32 %v4352_v5, 16 }
 0x2c5   : > { %v3840_v62 = vpop.f32.mrf.mxu1  ;;  %v4743_v38 = vrot.slane %v4741_v11, 4  ;;  %v4599_v60 = vsel %vm1128_vm6, %v4590_v32, %v4598_v27  ;;  %v4630_v27 = vshll.u32 %v4352_v5, 16 }
 0x2c6   : > { %v8733_v2 = vadd.f32 %v3840_v62, %v3752_v26  ;;  %5357 = vmatmul.bf16.gmra.mxu3 %v4702_v25  ;;  %v4733_v26 = vshll.u32 %v7077_v37, 16  ;;  %v5010_v62 = vrot.slane %v5008_v12, 4  ;;  %v4740_v25 = vrot.slane %v4738_v31, 3  ;;  %v9239_v12 = vld [vmem:[#allocation26_spill] sm:$0xff] }
 0x2c7   : > { %v8735_v46 = vpop.f32.mrf.mxu2  ;;  %v4354_v51 = vsel %vm1079_vm7, %v4352_v5, %v4353_v48  ;;  %v6825_v37 = vunpack.c.h.b16 %v8569_v61  ;;  %v4311_v48 = vunpack.c.l.b16 %v4007_v10 }
 0x2c8   : > { %9237 = vst [vmem:[#allocation32_spill] sm:$0xff] %v8735_v46  ;;  %v4735_v13 = vrot.slane %v4733_v26, 4  ;;  %v5011_v63 = vor.u32 %v5010_v62, %v5007_v59  ;;  %v4744_v55 = vor.u32 %v4743_v38, %v4740_v25  ;;  %v8752_v11 = vpop.f32.mrf.mxu0  ;;  %v3757_v26 = vadd.f32 %v8540_v30, %v8671_v57 }
 0x2c9   : > { %v3536_v18 = vpop.f32.mrf.mxu3  ;;  %v4132_v59 = vpack.c.b16 %v6825_v37, %v6825_v37  ;;  %v4629_v25 = vrot.slane %v4627_v8, 3  ;;  %v3760_v37 = vadd.f32 %v8559_v36, %v8681_v14  ;;  %v6569_v36 = vld [vmem:[%s9146_s5] sm:$0xff] }
 0x2ca   : > { %v8740_v4 = vadd.f32 %v3536_v18, %v9238_v17  ;;  %v4732_v17 = vrot.slane %v4730_v53, 3  ;;  %v4635_v53 = vshrl.u32 %v4354_v51, 16  ;;  %5772 = vmatpush.bf16.msra.mxu2 %v6569_v36 }
 0x2cb   : > { %v4781_v30 = vshrl.u32 %v4132_v59, 16  ;;  %v4784_v57 = vshll.u32 %v4132_v59, 16 }
 0x2cc   : > { %v4736_v32 = vor.u32 %v4735_v13, %v4732_v17  ;;  %v4637_v5 = vrot.slane %v4635_v53, 3  ;;  %v4327_v13 = vpack.c.b16 %v4311_v48, %v4311_v48 }
 0x2cd   : > { %v3843_v47 = vpop.f32.mrf.mxu1  ;;  %v4786_v53 = vrot.slane %v4784_v57, 4 }
 0x2ce   : > { %v3844_v46 = vadd.f32 %v3843_v47, %v3755_v24  ;;  %v7080_v24 = vld [vmem:[#allocation2 + $0x10c] sm:$0x8]  ;;  %v4745_v61 = vsel %vm1128_vm6, %v4736_v32, %v4744_v55  ;;  %v4356_v32 = vrot.slane %v4327_v13, 5 }
 0x2cf   : > { %v3932_v18 = vpop.f32.mrf.mxu2  ;;  %v7081_v17 = vor.u32 %v7171_v22, %v7080_v24 }
 0x2d0   : > { %5520 = vmatmul.bf16.gmra.mxu1 %v4599_v60  ;;  %v8745_v41 = vadd.f32 %v3932_v18, %v3844_v46  ;;  %v4638_v46 = vshll.u32 %v4354_v51, 16  ;;  %v4632_v60 = vrot.slane %v4630_v27, 4  ;;  %v4783_v27 = vrot.slane %v4781_v30, 3 }
 0x2d1   : > { %v3538_v35 = vpop.f32.mrf.mxu3  ;;  %v4773_v10 = vshrl.u32 %v7081_v17, 16  ;;  %v4776_v55 = vshll.u32 %v7081_v17, 16 }
 0x2d2   : > { %v8750_v31 = vadd.f32 %v3538_v35, %v9239_v12  ;;  %v4640_v18 = vrot.slane %v4638_v46, 4  ;;  %v4633_v35 = vor.u32 %v4632_v60, %v4629_v25  ;;  %v7250_v12 = vld [vmem:[#allocation2 + $0xc8] sm:$0xff]   ;;  %v4787_v25 = vor.u32 %v4786_v53, %v4783_v27 }
 0x2d3   : > { %5481 = vmatmul.bf16.gmra.mxu0 %v5011_v63  ;;  %v4355_v8 = vrot.slane %v7250_v12, 5  ;;  %v4775_v48 = vrot.slane %v4773_v10, 3  ;;  %v6829_v60 = vunpack.c.h.b16 %v8597_v40  ;;  %v7172_v10 = vld [vmem:[#allocation2 + $0x124] sm:$0xf0]  }
 0x2d4   : > { %v4641_v63 = vor.u32 %v4640_v18, %v4637_v5  ;;  %v4008_v5 = vld [vmem:[#allocation2 + $0xe8] sm:$0x1] }
 0x2d5   : > { %v3845_v47 = vpop.f32.mrf.mxu1  ;;  %v4357_v59 = vsel %vm1079_vm7, %v4355_v8, %v4356_v32  ;;  %v4670_v18 = vshrl.u32 %v4355_v8, 16  ;;  %v4673_v13 = vshll.u32 %v4355_v8, 16  ;;  %v4134_v32 = vpack.c.b16 %v6829_v60, %v6829_v60 }
 0x2d6   : > { %v8757_v62 = vadd.f32 %v3845_v47, %v3757_v26  ;;  %5362 = vmatmul.bf16.gmra.mxu3 %v4745_v61  ;;  %v4642_v24 = vsel %vm1128_vm6, %v4633_v35, %v4641_v63  ;;  %v4778_v47 = vrot.slane %v4776_v55, 4  ;;  %v4678_v30 = vshrl.u32 %v4357_v59, 16  ;;  %v7084_v63 = vld [vmem:[#allocation2 + $0x124] sm:$0x8] }
 0x2d7   : > { %v8759_v38 = vpop.f32.mrf.mxu2  ;;  %v4681_v57 = vshll.u32 %v4357_v59, 16  ;;  %v3762_v35 = vadd.f32 %v8577_v54, %v8697_v45  ;;  %v4312_v55 = vunpack.c.l.b16 %v4008_v5  ;;  %v4672_v40 = vrot.slane %v4670_v18, 3  ;;  %v7251_v5 = vld [vmem:[#allocation2 + $0xe0] sm:$0xff]  }
 0x2d8   : > { %v4779_v17 = vor.u32 %v4778_v47, %v4775_v48  ;;  %v4675_v53 = vrot.slane %v4673_v13, 4  ;;  %v4680_v8 = vrot.slane %v4678_v30, 3  ;;  %v4824_v54 = vshrl.u32 %v4134_v32, 16 }
 0x2d9   : > { %v8761_v51 = vpop.f32.mrf.mxu3  ;;  %v4827_v45 = vshll.u32 %v4134_v32, 16  ;;  %v3765_v60 = vadd.f32 %v8592_v15, %v8709_v20  ;;  %v4358_v18 = vrot.slane %v7251_v5, 5  ;;  %v6833_v20 = vunpack.c.h.b16 %v8626_v23 }
 0x2da   : > { %v4788_v12 = vsel %vm1128_vm6, %v4779_v17, %v4787_v25  ;;  %v4676_v47 = vor.u32 %v4675_v53, %v4672_v40  ;;  %v4826_v13 = vrot.slane %v4824_v54, 3  ;;  %v4009_v53 = vld [vmem:[#allocation2 + $0x100] sm:$0x1] }
 0x2db   : > { %v4829_v30 = vrot.slane %v4827_v45, 4  ;;  %v4716_v54 = vshll.u32 %v4358_v18, 16 }
 0x2dd   : > { %v3848_v26 = vpop.f32.mrf.mxu1  ;;  %v4830_v15 = vor.u32 %v4829_v30, %v4826_v13  ;;  %v4718_v30 = vrot.slane %v4716_v54, 4 }
 0x2de   : > { %v3849_v46 = vadd.f32 %v3848_v26, %v3760_v37 }
 0x2df   : > { %v3937_v22 = vpop.f32.mrf.mxu2 }
 0x2e0   : > { %5525 = vmatmul.bf16.gmra.mxu1 %v4642_v24  ;;  %v8766_v61 = vadd.f32 %v3937_v22, %v3849_v46  ;;  %v4683_v46 = vrot.slane %v4681_v57, 4  ;;  %v7085_v24 = vor.u32 %v7172_v10, %v7084_v63  ;;  %v4328_v22 = vpack.c.b16 %v4312_v55, %v4312_v55 }
 0x2e1   : > { %v8772_v14 = vpop.f32.mrf.mxu3 }
 0x2e2   : > { %v4684_v59 = vor.u32 %v4683_v46, %v4680_v8  ;;  %v4816_v36 = vshrl.u32 %v7085_v24, 16  ;;  %v4819_v25 = vshll.u32 %v7085_v24, 16  ;;  %v4359_v17 = vrot.slane %v4328_v22, 5  ;;  %v7088_v46 = vld [vmem:[#allocation2 + $0x13c] sm:$0x8] }
 0x2e3   : > { %v4713_v8 = vshrl.u32 %v4358_v18, 16  ;;  %v7173_v24 = vld [vmem:[#allocation2 + $0x13c] sm:$0xf0]  }
 0x2e4   : > { %v4685_v63 = vsel %vm1128_vm6, %v4676_v47, %v4684_v59  ;;  %v4818_v55 = vrot.slane %v4816_v36, 3  ;;  %v4360_v32 = vsel %vm1079_vm7, %v4358_v18, %v4359_v17  ;;  %v3767_v59 = vadd.f32 %v8614_v56, %v8728_v28 }
 0x2e5   : > { %v3850_v37 = vpop.f32.mrf.mxu1  ;;  %v4721_v45 = vshrl.u32 %v4360_v32, 16  ;;  %v4724_v47 = vshll.u32 %v4360_v32, 16  ;;  %v4313_v36 = vunpack.c.l.b16 %v4009_v53  ;;  %v7089_v5 = vor.u32 %v7173_v24, %v7088_v46  ;;  %v7252_v53 = vld [vmem:[#allocation2 + $0xf8] sm:$0xff]  }
 0x2e6   : > { %v8778_v26 = vadd.f32 %v3850_v37, %v3762_v35  ;;  %5367 = vmatmul.bf16.gmra.mxu3 %v4788_v12  ;;  %v4821_v37 = vrot.slane %v4819_v25, 4  ;;  %v4136_v17 = vpack.c.b16 %v6833_v20, %v6833_v20  ;;  %v4715_v13 = vrot.slane %v4713_v8, 3 }
 0x2e7   : > { %v8780_v27 = vpop.f32.mrf.mxu2  ;;  %v4726_v18 = vrot.slane %v4724_v47, 4  ;;  %v4862_v56 = vshll.u32 %v7089_v5, 16  ;;  %v3770_v20 = vadd.f32 %v8632_v50, %v8740_v4  ;;  %v4361_v46 = vrot.slane %v7252_v53, 5 }
 0x2e8   : > { %v4822_v22 = vor.u32 %v4821_v37, %v4818_v55  ;;  %v4859_v55 = vshrl.u32 %v7089_v5, 16  ;;  %v4867_v28 = vshrl.u32 %v4136_v17, 16  ;;  %v4870_v37 = vshll.u32 %v4136_v17, 16 }
 0x2e9   : > { %v8782_v48 = vpop.f32.mrf.mxu3  ;;  %v4719_v32 = vor.u32 %v4718_v30, %v4715_v13  ;;  %v4864_v54 = vrot.slane %v4862_v56, 4  ;;  %v6837_v13 = vunpack.c.h.b16 %v8656_v42  ;;  %v4010_v30 = vld [vmem:[#allocation2 + $0x118] sm:$0x1] }
 0x2ea   : > { %v4861_v8 = vrot.slane %v4859_v55, 3  ;;  %v4872_v47 = vrot.slane %v4870_v37, 4  ;;  %v4759_v55 = vshll.u32 %v4361_v46, 16  ;;  %v3772_v37 = vadd.f32 %v8647_v43, %v8750_v31 }
 0x2ec   : > { %v4865_v50 = vor.u32 %v4864_v54, %v4861_v8  ;;  %v4761_v8 = vrot.slane %v4759_v55, 4 }
 0x2ed   : > { %v3853_v35 = vpop.f32.mrf.mxu1 }
 0x2ee   : > { %v3854_v57 = vadd.f32 %v3853_v35, %v3765_v60  ;;  %v4831_v60 = vsel %vm1128_vm6, %v4822_v22, %v4830_v15 }
 0x2ef   : > { %v3942_v10 = vpop.f32.mrf.mxu2 }
 0x2f0   : > { %5530 = vmatmul.bf16.gmra.mxu1 %v4685_v63  ;;  %v8787_v12 = vadd.f32 %v3942_v10, %v3854_v57  ;;  %v4723_v57 = vrot.slane %v4721_v45, 3  ;;  %v4329_v63 = vpack.c.b16 %v4313_v36, %v4313_v36  ;;  %v4869_v45 = vrot.slane %v4867_v28, 3 }
 0x2f1   : > { %v8790_v40 = vpop.f32.mrf.mxu3 }
 0x2f2   : > { %v4727_v15 = vor.u32 %v4726_v18, %v4723_v57  ;;  %v4362_v24 = vrot.slane %v4329_v63, 5  ;;  %v4873_v4 = vor.u32 %v4872_v47, %v4869_v45  ;;  %v7092_v57 = vld [vmem:[#allocation2 + $0x154] sm:$0x8]  ;;  %v7174_v18 = vld [vmem:[#allocation2 + $0x154] sm:$0xf0]   ;;  %v4756_v63 = vshrl.u32 %v4361_v46, 16  ;;  %v8816_v47 = vpop.f32.mrf.mxu0 }
 0x2f3   : > { %v7093_v53 = vor.u32 %v7174_v18, %v7092_v57 }
 0x2f4   : > { %v4728_v36 = vsel %vm1128_vm6, %v4719_v32, %v4727_v15  ;;  %v4363_v5 = vsel %vm1079_vm7, %v4361_v46, %v4362_v24  ;;  %v4314_v32 = vunpack.c.l.b16 %v4010_v30  ;;  %v4138_v24 = vpack.c.b16 %v6837_v13, %v6837_v13 }
 0x2f5   : > { %v3855_v25 = vpop.f32.mrf.mxu1  ;;  %v4764_v56 = vshrl.u32 %v4363_v5, 16  ;;  %v4767_v28 = vshll.u32 %v4363_v5, 16  ;;  %v4758_v42 = vrot.slane %v4756_v63, 3  ;;  %v4905_v43 = vshll.u32 %v7093_v53, 16 }
 0x2f6   : > { %v8796_v35 = vadd.f32 %v3855_v25, %v3767_v59  ;;  %5372 = vmatmul.bf16.gmra.mxu3 %v4831_v60  ;;  %v4330_v46 = vpack.c.b16 %v4314_v32, %v4314_v32  ;;  %v4910_v31 = vshrl.u32 %v4138_v24, 16 }
 0x2f7   : > { %v8798_v23 = vpop.f32.mrf.mxu2  ;;  %v4766_v54 = vrot.slane %v4764_v56, 3  ;;  %v4769_v45 = vrot.slane %v4767_v28, 4  ;;  %v4762_v5 = vor.u32 %v4761_v8, %v4758_v42  ;;  %v4907_v63 = vrot.slane %v4905_v43, 4  ;;  %v4011_v42 = vld [vmem:[#allocation2 + $0x130] sm:$0x1] }
 0x2f8   : > { %v4365_v30 = vrot.slane %v4330_v46, 5  ;;  %v4912_v55 = vrot.slane %v4910_v31, 3  ;;  %v5413_v28 = vadd.f32 %v8667_v58, %v8761_v51  ;;  %v5415_v31 = vadd.f32 %v8683_v0, %v8772_v14 }
 0x2f9   : > { %v8800_v10 = vpop.f32.mrf.mxu3 }
 0x2fa   : > { %v8825_v8 = vpop.f32.mrf.mxu0 }
 0x2fd   : > { %v3858_v22 = vpop.f32.mrf.mxu1 }
 0x2fe   : > { %v3859_v59 = vadd.f32 %v3858_v22, %v3770_v20  ;;  %v4874_v20 = vsel %vm1128_vm6, %v4865_v50, %v4873_v4  ;;  %v4770_v50 = vor.u32 %v4769_v45, %v4766_v54  ;;  %v7253_v4 = vld [vmem:[#allocation2 + $0x110] sm:$0xff]   ;;  %v7096_v54 = vld [vmem:[#allocation2 + $0x16c] sm:$0x8] }
 0x2ff   : > { %v3947_v25 = vpop.f32.mrf.mxu2  ;;  %v4364_v13 = vrot.slane %v7253_v4, 5  ;;  %v7175_v45 = vld [vmem:[#allocation2 + $0x16c] sm:$0xf0]  }
 0x300   : > { %5535 = vmatmul.bf16.gmra.mxu1 %v4728_v36  ;;  %v8805_v60 = vadd.f32 %v3947_v25, %v3859_v59  ;;  %v4902_v36 = vshrl.u32 %v7093_v53, 16  ;;  %v4913_v25 = vshll.u32 %v4138_v24, 16  ;;  %v6841_v24 = vunpack.c.h.b16 %v8685_v9 }
 0x301   : > { %v8808_v17 = vpop.f32.mrf.mxu3  ;;  %v4802_v43 = vshll.u32 %v4364_v13, 16 }
 0x302   : > { %v4904_v18 = vrot.slane %v4902_v36, 3  ;;  %v4915_v56 = vrot.slane %v4913_v25, 4  ;;  %v4799_v36 = vshrl.u32 %v4364_v13, 16 }
 0x304   : > { %v4916_v53 = vor.u32 %v4915_v56, %v4912_v55  ;;  %v4804_v55 = vrot.slane %v4802_v43, 4 }
 0x305   : > { %v3860_v15 = vpop.f32.mrf.mxu1 }
 0x306   : > { %v8814_v22 = vadd.f32 %v3860_v15, %v3772_v37  ;;  %5377 = vmatmul.bf16.gmra.mxu3 %v4874_v20  ;;  %v4771_v37 = vsel %vm1128_vm6, %v4762_v5, %v4770_v50  ;;  %v4366_v15 = vsel %vm1079_vm7, %v4364_v13, %v4365_v30  ;;  %v4908_v20 = vor.u32 %v4907_v63, %v4904_v18  ;;  %v8835_v5 = vld [vmem:[%s9145_s4] ss:$0 sm:$0xff] }
 0x307   : > { %v4807_v58 = vshrl.u32 %v4366_v15, 16  ;;  %v4810_v51 = vshll.u32 %v4366_v15, 16  ;;  %v4315_v50 = vunpack.c.l.b16 %v4011_v42  ;;  %v4140_v18 = vpack.c.b16 %v6841_v24, %v6841_v24  ;;  %v8841_v24 = vpop.f32.mrf.mxu0 }
 0x308   : > { %9240 = vst [vmem:[#allocation36_spill] sm:$0xff] %v8814_v22  ;;  %v4917_v30 = vsel %vm1128_vm6, %v4908_v20, %v4916_v53  ;;  %v4801_v13 = vrot.slane %v4799_v36, 3  ;;  %v7254_v36 = vld [vmem:[#allocation2 + $0x128] sm:$0xff]  }
 0x309   : > { %v8818_v59 = vpop.f32.mrf.mxu3  ;;  %v4809_v56 = vrot.slane %v4807_v58, 3  ;;  %v4331_v14 = vpack.c.b16 %v4315_v50, %v4315_v50  ;;  %v4953_v15 = vshrl.u32 %v4140_v18, 16  ;;  %v4956_v42 = vshll.u32 %v4140_v18, 16 }
 0x30a   : > { %v4805_v20 = vor.u32 %v4804_v55, %v4801_v13  ;;  %v4367_v43 = vrot.slane %v7254_v36, 5 }
 0x30b   : > { %v4368_v58 = vrot.slane %v4331_v14, 5  ;;  %v4955_v50 = vrot.slane %v4953_v15, 3 }
 0x30c   : > { %v4842_v14 = vshrl.u32 %v4367_v43, 16 }
 0x30d   : > { %v5501_v57 = vpop.f32.mrf.mxu1 }
 0x30e   : > { %v5502_v32 = vadd.f32 %v5501_v57, %v5413_v28  ;;  %v7097_v57 = vor.u32 %v7175_v45, %v7096_v54  ;;  %v4812_v28 = vrot.slane %v4810_v51, 4 }
 0x30f   : > { %v8854_v36 = vpop.f32.mrf.mxu0 }
 0x310   : > { %5540 = vmatmul.bf16.gmra.mxu1 %v4771_v37  ;;  %v5581_v25 = vadd.f32 %v5502_v32, %v8389_v3  ;;  %v4945_v37 = vshrl.u32 %v7097_v57, 16  ;;  %v4948_v32 = vshll.u32 %v7097_v57, 16  ;;  %v4813_v53 = vor.u32 %v4812_v28, %v4809_v56  ;;  %v4012_v28 = vld [vmem:[#allocation2 + $0x148] sm:$0x1] }
 0x311   : > { %v8827_v46 = vpop.f32.mrf.mxu3  ;;  %v6845_v56 = vunpack.c.h.b16 %v8713_v16 }
 0x312   : > { %v5617_v0 = vadd.f32 %v8835_v5, %v5581_v25  ;;  %v4950_v25 = vrot.slane %v4948_v32, 4  ;;  %v4814_v18 = vsel %vm1128_vm6, %v4805_v20, %v4813_v53 }
 0x314   : > { %v5649_v54 = vmax.f32 %v5617_v0, 0.0  ;;  %v7100_v0 = vld [vmem:[#allocation2 + $0x184] sm:$0x8] }
 0x315   : > { %v5503_v4 = vpop.f32.mrf.mxu1 }
 0x316   : > { %v5504_v63 = vadd.f32 %v5503_v4, %v5415_v31  ;;  %5382 = vmatmul.bf16.gmra.mxu3 %v4917_v30  ;;  %v4958_v4 = vrot.slane %v4956_v42, 4  ;;  %v5418_v30 = vadd.f32 %v8701_v21, %v8782_v48  ;;  %v5420_v21 = vadd.f32 %v8717_v29, %v8790_v40 }
 0x317   : > { %v4316_v42 = vunpack.c.l.b16 %v4012_v28  ;;  %v7255_v28 = vld [vmem:[#allocation2 + $0x140] sm:$0xff]  }
 0x318   : > { %v5582_v3 = vadd.f32 %v5504_v63, %v8406_v33  ;;  %v4947_v33 = vrot.slane %v4945_v37, 3  ;;  %v4959_v55 = vor.u32 %v4958_v4, %v4955_v50  ;;  %v4845_v37 = vshll.u32 %v4367_v43, 16 }
 0x319   : > { %v8843_v51 = vpop.f32.mrf.mxu3  ;;  %v4332_v40 = vpack.c.b16 %v4316_v42, %v4316_v42 }
 0x31a   : > { %v5618_v22 = vadd.f32 %v8835_v5, %v5582_v3  ;;  %v4951_v13 = vor.u32 %v4950_v25, %v4947_v33  ;;  %v7176_v3 = vld [vmem:[#allocation2 + $0x184] sm:$0xf0]   ;;  %v4847_v33 = vrot.slane %v4845_v37, 4 }
 0x31c   : > { %v5650_v45 = vmax.f32 %v5618_v22, 0.0  ;;  %v4369_v22 = vsel %vm1079_vm7, %v4367_v43, %v4368_v58  ;;  %v4960_v53 = vsel %vm1128_vm6, %v4951_v13, %v4959_v55  ;;  %v4844_v43 = vrot.slane %v4842_v14, 3 }
 0x31d   : > { %v5506_v31 = vpop.f32.mrf.mxu1  ;;  %v4850_v32 = vshrl.u32 %v4369_v22, 16  ;;  %v4853_v15 = vshll.u32 %v4369_v22, 16 }
 0x31e   : > { %v5681_v57 = vpack.c.bf16 %v5650_v45, %v5649_v54  ;;  %v5507_v63 = vadd.f32 %v5506_v31, %v5418_v30  ;;  %v7101_v54 = vor.u32 %v7176_v3, %v7100_v0  ;;  %v4142_v45 = vpack.c.b16 %v6845_v56, %v6845_v56 }
 0x31f   : > { %v4852_v25 = vrot.slane %v4850_v32, 3  ;;  %v4855_v50 = vrot.slane %v4853_v15, 4  ;;  %v4848_v22 = vor.u32 %v4847_v33, %v4844_v43  ;;  %v4370_v0 = vrot.slane %v7255_v28, 5  ;;  %v4013_v33 = vld [vmem:[#allocation2 + $0x160] sm:$0x1]  ;;  %v9242_v28 = vld [vmem:[#allocation10_spill] sm:$0xff] }
 0x320   : > { %5545 = vmatmul.bf16.gmra.mxu1 %v4814_v18  ;;  %5773 = vmatmul.bf16.vlgmr.msra.gmra.mxu2 %v5681_v57  ;;  %v5583_v48 = vadd.f32 %v5507_v63, %v8426_v19  ;;  %v4988_v4 = vshrl.u32 %v7101_v54, 16  ;;  %v4991_v30 = vshll.u32 %v7101_v54, 16  ;;  %v4996_v57 = vshrl.u32 %v4142_v45, 16 }
 0x321   : > { %v8856_v31 = vpop.f32.mrf.mxu3  ;;  %v4999_v18 = vshll.u32 %v4142_v45, 16  ;;  %v4856_v13 = vor.u32 %v4855_v50, %v4852_v25  ;;  %v4371_v3 = vrot.slane %v4332_v40, 5  ;;  %v4885_v25 = vshrl.u32 %v4370_v0, 16 }
 0x322   : > { %v5619_v29 = vadd.f32 %v8835_v5, %v5583_v48  ;;  %v4990_v37 = vrot.slane %v4988_v4, 3  ;;  %v4993_v32 = vrot.slane %v4991_v30, 4  ;;  %v4998_v15 = vrot.slane %v4996_v57, 3 }
 0x323   : > { %v4857_v42 = vsel %vm1128_vm6, %v4848_v22, %v4856_v13  ;;  %v4372_v54 = vsel %vm1079_vm7, %v4370_v0, %v4371_v3  ;;  %v4888_v50 = vshll.u32 %v4370_v0, 16  ;;  %v4317_v4 = vunpack.c.l.b16 %v4013_v33 }
 0x324   : > { %v5651_v55 = vmax.f32 %v5619_v29, 0.0  ;;  %v4893_v29 = vshrl.u32 %v4372_v54, 16 }
 0x325   : > { %v5508_v20 = vpop.f32.mrf.mxu1  ;;  %v4890_v22 = vrot.slane %v4888_v50, 4  ;;  %v4333_v3 = vpack.c.b16 %v4317_v4, %v4317_v4  ;;  %v4014_v50 = vld [vmem:[#allocation2 + $0x178] sm:$0x1] }
 0x326   : > { %v5509_v58 = vadd.f32 %v5508_v20, %v5420_v21  ;;  %5387 = vmatmul.bf16.gmra.mxu3 %v4960_v53  ;;  %v5001_v21 = vrot.slane %v4999_v18, 4  ;;  %v8864_v20 = vpop.f32.mrf.mxu0  ;;  %v4895_v13 = vrot.slane %v4893_v29, 3 }
 0x328   : > { %v5584_v19 = vadd.f32 %v5509_v58, %v8438_v49  ;;  %v5423_v49 = vadd.f32 %v8737_v44, %v8800_v10  ;;  %v4994_v58 = vor.u32 %v4993_v32, %v4990_v37  ;;  %v5002_v43 = vor.u32 %v5001_v21, %v4998_v15  ;;  %v9241_v10 = vld [vmem:[#allocation6_spill] sm:$0xff] }
 0x329   : > { %v8867_v45 = vpop.f32.mrf.mxu3  ;;  %v5425_v44 = vadd.f32 %v8752_v11, %v8808_v17 }
 0x32a   : > { %v5620_v63 = vadd.f32 %v8835_v5, %v5584_v19  ;;  %v4896_v19 = vshll.u32 %v4372_v54, 16  ;;  %v5003_v57 = vsel %vm1128_vm6, %v4994_v58, %v5002_v43  ;;  %v5428_v54 = vadd.f32 %v8816_v47, %v8818_v59  ;;  %v9243_v47 = vld [vmem:[#allocation7_spill] sm:$0xff] }
 0x32c   : > { %v5652_v56 = vmax.f32 %v5620_v63, 0.0  ;;  %v4887_v63 = vrot.slane %v4885_v25, 3 }
 0x32d   : > { %v5511_v14 = vpop.f32.mrf.mxu1 }
 0x32e   : > { %v5682_v48 = vpack.c.bf16 %v5652_v56, %v5651_v55  ;;  %v5512_v53 = vadd.f32 %v5511_v14, %v5423_v49  ;;  %v4898_v55 = vrot.slane %v4896_v19, 4  ;;  %v8875_v14 = vpop.f32.mrf.mxu0  ;;  %v4891_v37 = vor.u32 %v4890_v22, %v4887_v63  ;;  %v7256_v49 = vld [vmem:[#allocation2 + $0x158] sm:$0xff]  }
 0x330   : > { %5550 = vmatmul.bf16.gmra.mxu1 %v4857_v42  ;;  %5778 = vmatmul.bf16.gmra.mxu2 %v5682_v48  ;;  %v5585_v40 = vadd.f32 %v5512_v53, %v9241_v10  ;;  %v4899_v32 = vor.u32 %v4898_v55, %v4895_v13  ;;  %v4373_v48 = vrot.slane %v7256_v49, 5  ;;  %v4374_v42 = vrot.slane %v4333_v3, 5  ;;  %v9244_v3 = vld [vmem:[#allocation8_spill] sm:$0xff] }
 0x331   : > { %v8878_v17 = vpop.f32.mrf.mxu3 }
 0x332   : > { %v5621_v56 = vadd.f32 %v8835_v5, %v5585_v40  ;;  %v4900_v43 = vsel %vm1128_vm6, %v4891_v37, %v4899_v32  ;;  %v4375_v25 = vsel %vm1079_vm7, %v4373_v48, %v4374_v42  ;;  %v4928_v29 = vshrl.u32 %v4373_v48, 16 }
 0x333   : > { %v4931_v19 = vshll.u32 %v4373_v48, 16  ;;  %v4939_v10 = vshll.u32 %v4375_v25, 16  ;;  %v4318_v40 = vunpack.c.l.b16 %v4014_v50 }
 0x334   : > { %v5653_v15 = vmax.f32 %v5621_v56, 0.0  ;;  %v4930_v22 = vrot.slane %v4928_v29, 3 }
 0x335   : > { %v5513_v30 = vpop.f32.mrf.mxu1  ;;  %v4933_v13 = vrot.slane %v4931_v19, 4  ;;  %v4941_v56 = vrot.slane %v4939_v10, 4 }
 0x336   : > { %v5514_v18 = vadd.f32 %v5513_v30, %v5425_v44  ;;  %5392 = vmatmul.bf16.gmra.mxu3 %v5003_v57  ;;  %v4936_v44 = vshrl.u32 %v4375_v25, 16  ;;  %v8884_v4 = vpop.f32.mrf.mxu0  ;;  %v5430_v30 = vadd.f32 %v8825_v8, %v8827_v46  ;;  %v4376_v8 = vrot.slane %v8685_v9, 5 }
 0x337   : > { %v4934_v32 = vor.u32 %v4933_v13, %v4930_v22 }
 0x338   : > { %v5586_v0 = vadd.f32 %v5514_v18, %v9242_v28  ;;  %v4938_v55 = vrot.slane %v4936_v44, 3  ;;  %v4334_v28 = vpack.c.b16 %v4318_v40, %v4318_v40  ;;  %v4971_v29 = vshrl.u32 %v4376_v8, 16 }
 0x339   : > { %v8889_v57 = vpop.f32.mrf.mxu3  ;;  %v4974_v19 = vshll.u32 %v4376_v8, 16  ;;  %v5435_v40 = vadd.f32 %v8854_v36, %v8856_v31 }
 0x33a   : > { %v5622_v11 = vadd.f32 %v8835_v5, %v5586_v0  ;;  %v4377_v46 = vrot.slane %v4334_v28, 5 }
 0x33c   : > { %v5654_v21 = vmax.f32 %v5622_v11, 0.0  ;;  %v4378_v25 = vsel %vm1079_vm7, %v4376_v8, %v4377_v46 }
 0x33d   : > { %v5516_v53 = vpop.f32.mrf.mxu1  ;;  %v4979_v44 = vshrl.u32 %v4378_v25, 16  ;;  %v4982_v10 = vshll.u32 %v4378_v25, 16 }
 0x33e   : > { %v5683_v58 = vpack.c.bf16 %v5654_v21, %v5653_v15  ;;  %v5517_v33 = vadd.f32 %v5516_v53, %v5428_v54  ;;  %v4942_v15 = vor.u32 %v4941_v56, %v4938_v55  ;;  %v8895_v42 = vpop.f32.mrf.mxu0  ;;  %v5433_v53 = vadd.f32 %v8841_v24, %v8843_v51  ;;  %v9245_v24 = vld [vmem:[#allocation9_spill] sm:$0xff] }
 0x340   : > { %5555 = vmatmul.bf16.gmra.mxu1 %v4900_v43  ;;  %5783 = vmatmul.bf16.gmra.mxu2 %v5683_v58  ;;  %v5587_v59 = vadd.f32 %v5517_v33, %v9243_v47  ;;  %v4015_v58 = vld [vmem:[#allocation2 + $0x190] sm:$0x1]  ;;  %v4943_v33 = vsel %vm1128_vm6, %v4934_v32, %v4942_v15  ;;  %v8906_v47 = vld [vmem:[#allocation2 + $0x1a0] sm:$0xff]   ;;  %v4984_v32 = vrot.slane %v4982_v10, 4 }
 0x341   : > { %v8899_v43 = vpop.f32.mrf.mxu3  ;;  %v4319_v9 = vunpack.c.l.b16 %v4015_v58  ;;  %v6849_v55 = vunpack.c.h.b16 %v8906_v47 }
 0x342   : > { %v5623_v0 = vadd.f32 %v8835_v5, %v5587_v59  ;;  %v7177_v59 = vld [vmem:[#allocation2 + $0x19c] sm:$0xf0]  }
 0x343   : > { %v4335_v28 = vpack.c.b16 %v4319_v9, %v4319_v9  ;;  %v4144_v36 = vpack.c.b16 %v6849_v55, %v6849_v55 }
 0x344   : > { %v5655_v21 = vmax.f32 %v5623_v0, 0.0 }
 0x345   : > { %v5518_v18 = vpop.f32.mrf.mxu1  ;;  %v5042_v58 = vshll.u32 %v4144_v36, 16  ;;  %v4380_v9 = vrot.slane %v4335_v28, 5 }
 0x346   : > { %v5519_v63 = vadd.f32 %v5518_v18, %v5430_v30  ;;  %v7104_v30 = vld [vmem:[#allocation2 + $0x19c] sm:$0x8]  ;;  %v9246_v18 = vld [vmem:[#allocation12_spill] sm:$0xff]  ;;  %v8911_v8 = vpop.f32.mrf.mxu0 }
 0x347   : > { %v7105_v56 = vor.u32 %v7177_v59, %v7104_v30  ;;  %v5044_v10 = vrot.slane %v5042_v58, 4  ;;  %v4285_v30 = vshll.u32 %v8906_v47, 16  ;;  %v4016_v58 = vld [vmem:[#allocation2 + $0x1a8] sm:$0x1] }
 0x348   : > { %v5588_v11 = vadd.f32 %v5519_v63, %v9244_v3  ;;  %v9247_v63 = vld [vmem:[#allocation18_spill] sm:$0xff]  ;;  %v4973_v3 = vrot.slane %v4971_v29, 3 }
 0x349   : > { %v3895_v22 = vadd.f32 %v9247_v63, %v9246_v18  ;;  %v5031_v31 = vshrl.u32 %v7105_v56, 16  ;;  %v5034_v15 = vshll.u32 %v7105_v56, 16  ;;  %v5438_v63 = vadd.f32 %v8864_v20, %v8867_v45 }
 0x34a   : > { %v5624_v37 = vadd.f32 %v8835_v5, %v5588_v11  ;;  %v4976_v11 = vrot.slane %v4974_v19, 4  ;;  %v4287_v55 = vrot.slane %v4285_v30, 5 }
 0x34c   : > { %v5656_v49 = vmax.f32 %v5624_v37, 0.0  ;;  %v4981_v37 = vrot.slane %v4979_v44, 3  ;;  %v4977_v25 = vor.u32 %v4976_v11, %v4973_v3 }
 0x34d   : > { %v5521_v48 = vpop.f32.mrf.mxu1 }
 0x34e   : > { %v5684_v54 = vpack.c.bf16 %v5656_v49, %v5655_v21  ;;  %v5522_v50 = vadd.f32 %v5521_v48, %v5433_v53  ;;  %v8914_v49 = vpop.f32.mrf.mxu3  ;;  %v5033_v48 = vrot.slane %v5031_v31, 3  ;;  %v5036_v53 = vrot.slane %v5034_v15, 4  ;;  %v8925_v11 = vpop.f32.mrf.mxu0 }
 0x34f   : > { %v4985_v29 = vor.u32 %v4984_v32, %v4981_v37 }
 0x350   : > { %5560 = vmatmul.bf16.gmra.mxu1 %v4943_v33  ;;  %5788 = vmatmul.bf16.gmra.mxu2 %v5684_v54  ;;  %v5589_v51 = vadd.f32 %v5522_v50, %v9245_v24  ;;  %v5039_v54 = vshrl.u32 %v4144_v36, 16  ;;  %v4379_v50 = vrot.slane %v8713_v16, 5  ;;  %v5037_v19 = vor.u32 %v5036_v53, %v5033_v48 }
 0x351   : > { %v4986_v16 = vsel %vm1128_vm6, %v4977_v25, %v4985_v29  ;;  %v4320_v25 = vunpack.c.l.b16 %v4016_v58  ;;  %v9250_v29 = vld [vmem:[#allocation20_spill] sm:$0xff] }
 0x352   : > { %v5625_v46 = vadd.f32 %v8835_v5, %v5589_v51  ;;  %v5041_v44 = vrot.slane %v5039_v54, 3  ;;  %v4282_v51 = vshrl.u32 %v8906_v47, 16  ;;  %v5014_v37 = vshrl.u32 %v4379_v50, 16 }
 0x353   : > { %v5017_v45 = vshll.u32 %v4379_v50, 16  ;;  %v4336_v30 = vpack.c.b16 %v4320_v25, %v4320_v25 }
 0x354   : > { %v5045_v18 = vor.u32 %v5044_v10, %v5041_v44  ;;  %v5016_v10 = vrot.slane %v5014_v37, 3 }
 0x355   : > { %v5523_v13 = vpop.f32.mrf.mxu1 }
 0x356   : > { %v5524_v0 = vadd.f32 %v5523_v13, %v5435_v40  ;;  %v5657_v40 = vmax.f32 %v5625_v46, 0.0  ;;  %v4284_v13 = vrot.slane %v4282_v51, 4  ;;  %v5046_v56 = vsel %vm1128_vm6, %v5037_v19, %v5045_v18  ;;  %v8927_v20 = vpop.f32.mrf.mxu3 }
 0x357   : > { %5397 = vmatmul.bf16.gmra.mxu3 %v5046_v56  ;;  %v5440_v46 = vadd.f32 %v8875_v14, %v8878_v17  ;;  %v4382_v18 = vrot.slane %v8906_v47, 5 }
 0x358   : > { %v5590_v21 = vadd.f32 %v5524_v0, %v3895_v22  ;;  %v4381_v0 = vsel %vm1079_vm7, %v4379_v50, %v4380_v9  ;;  %v4288_v3 = vor.u32 %v4287_v55, %v4284_v13  ;;  %v9249_v9 = vld [vmem:[#allocation16_spill] sm:$0xff]  ;;  %v5452_v55 = vpop.f32.mrf.mxu0 }
 0x359   : > { %v5022_v31 = vshrl.u32 %v4381_v0, 16  ;;  %v5025_v15 = vshll.u32 %v4381_v0, 16  ;;  %v3900_v19 = vadd.f32 %v9250_v29, %v9249_v9  ;;  %v5057_v47 = vshrl.u32 %v4382_v18, 16 }
 0x35a   : > { %v5626_v33 = vadd.f32 %v8835_v5, %v5590_v21  ;;  %v5048_v32 = vshrl.u32 %v4288_v3, 16  ;;  %v5051_v36 = vshll.u32 %v4288_v3, 16  ;;  %v9248_v21 = vld [vmem:[#allocation14_spill] sm:$0xff]  ;;  %v5443_v3 = vadd.f32 %v8884_v4, %v8889_v57 }
 0x35b   : > { %v5024_v50 = vrot.slane %v5022_v31, 3  ;;  %v5027_v51 = vrot.slane %v5025_v15, 4  ;;  %v5060_v31 = vshll.u32 %v4382_v18, 16 }
 0x35c   : > { %v5658_v24 = vmax.f32 %v5626_v33, 0.0  ;;  %v5050_v53 = vrot.slane %v5048_v32, 3  ;;  %v5053_v54 = vrot.slane %v5051_v36, 4 }
 0x35d   : > { %v5526_v59 = vpop.f32.mrf.mxu1  ;;  %v5028_v13 = vor.u32 %v5027_v51, %v5024_v50  ;;  %v5062_v4 = vrot.slane %v5060_v31, 4 }
 0x35e   : > { %v5685_v22 = vpack.c.bf16 %v5658_v24, %v5657_v40  ;;  %v5527_v28 = vadd.f32 %v5526_v59, %v5438_v63  ;;  %v5054_v40 = vor.u32 %v5053_v54, %v5050_v53  ;;  %v5019_v24 = vrot.slane %v5017_v45, 4 }
 0x35f   : > { %v4383_v63 = vrot.slane %v4336_v30, 5  ;;  %v5059_v54 = vrot.slane %v5057_v47, 3  ;;  %v5448_v30 = vadd.f32 %v8911_v8, %v8914_v49 }
 0x360   : > { %5565 = vmatmul.bf16.gmra.mxu1 %v4986_v16  ;;  %5793 = vmatmul.bf16.gmra.mxu2 %v5685_v22  ;;  %v5591_v48 = vadd.f32 %v5527_v28, %v9248_v21  ;;  %v5020_v22 = vor.u32 %v5019_v24, %v5016_v10  ;;  %v5363_v28 = vpop.f32.mrf.mxu3  ;;  %v5445_v21 = vadd.f32 %v8895_v42, %v8899_v43  ;;  %v5454_v9 = vpop.f32.mrf.mxu0 }
 0x361   : > { %5486 = vmatmul.bf16.gmra.mxu0 %v5054_v40  ;;  %v4384_v32 = vsel %vm1079_vm7, %v4382_v18, %v4383_v63  ;;  %v5063_v40 = vor.u32 %v5062_v4, %v5059_v54  ;;  %v5450_v18 = vadd.f32 %v8925_v11, %v8927_v20  ;;  %v9252_v63 = vld [vmem:[#allocation22_spill] sm:$0xff]  ;;  %v9255_v4 = vld [vmem:[#allocation24_spill] sm:$0xff] }
 0x362   : > { %v5627_v59 = vadd.f32 %v8835_v5, %v5591_v48  ;;  %v5029_v36 = vsel %vm1128_vm6, %v5020_v22, %v5028_v13  ;;  %v5065_v15 = vshrl.u32 %v4384_v32, 16 }
 0x364   : > { %v5659_v16 = vmax.f32 %v5627_v59, 0.0  ;;  %v5067_v57 = vrot.slane %v5065_v15, 3  ;;  %v5453_v15 = vadd.f32 %v5452_v55, %v5363_v28  ;;  %v8963_v55 = vpop.f32.mrf.mxu2 }
 0x365   : > { %v5528_v33 = vpop.f32.mrf.mxu1 }
 0x366   : > { %v5529_v44 = vadd.f32 %v5528_v33, %v5440_v46  ;;  %v5068_v46 = vshll.u32 %v4384_v32, 16  ;;  %v9251_v33 = vld [vmem:[#allocation25_spill] sm:$0xff] }
 0x367   : > { %v3905_v25 = vadd.f32 %v9251_v33, %v8588_v34 }
 0x368   : > { %v5592_v14 = vadd.f32 %v5529_v44, %v3900_v19  ;;  %v5070_v58 = vrot.slane %v5068_v46, 4  ;;  %v5365_v19 = vpop.f32.mrf.mxu3  ;;  %v5457_v34 = vpop.f32.mrf.mxu0 }
 0x36a   : > { %v5628_v17 = vadd.f32 %v8835_v5, %v5592_v14  ;;  %v5071_v24 = vor.u32 %v5070_v58, %v5067_v57  ;;  %v3915_v57 = vadd.f32 %v9255_v4, %v8645_v1  ;;  %v8968_v1 = vld [vmem:[%s9147_s6] ss:$0 sm:$0xff] }
 0x36c   : > { %v5660_v56 = vmax.f32 %v5628_v17, 0.0  ;;  %v5072_v51 = vsel %vm1128_vm6, %v5063_v40, %v5071_v24 }
 0x36d   : > { %v5531_v0 = vpop.f32.mrf.mxu1 }
 0x36e   : > { %v5686_v37 = vpack.c.bf16 %v5660_v56, %v5659_v16  ;;  %v5532_v45 = vadd.f32 %v5531_v0, %v5443_v3  ;;  %v9253_v16 = vld [vmem:[#allocation34_spill] sm:$0xff]  ;;  %v9254_v56 = vld [vmem:[#allocation27_spill] sm:$0xff] }
 0x36f   : > { %v3910_v0 = vadd.f32 %v9254_v56, %v9253_v16 }
 0x370   : > { %5570 = vmatmul.bf16.gmra.mxu1 %v5029_v36  ;;  %5798 = vmatmul.bf16.gmra.mxu2 %v5686_v37  ;;  %v5593_v48 = vadd.f32 %v5532_v45, %v8580_v39  ;;  %v5368_v17 = vpop.f32.mrf.mxu3  ;;  %v5459_v8 = vpop.f32.mrf.mxu0 }
 0x372   : > { %v5629_v44 = vadd.f32 %v8835_v5, %v5593_v48 }
 0x374   : > { %v5661_v43 = vmax.f32 %v5629_v44, 0.0 }
 0x375   : > { %v5533_v53 = vpop.f32.mrf.mxu1 }
 0x376   : > { %v5534_v29 = vadd.f32 %v5533_v53, %v5445_v21  ;;  %v5455_v21 = vadd.f32 %v5454_v9, %v5365_v19  ;;  %v5458_v19 = vadd.f32 %v5457_v34, %v5368_v17  ;;  %v9258_v34 = vld [vmem:[#allocation31_spill] sm:$0xff]  ;;  %v7257_v17 = vld [vmem:[%s7471_s17] sm:$0xff] }
 0x378   : > { %v5594_v10 = vadd.f32 %v5534_v29, %v3905_v25  ;;  %v5370_v36 = vpop.f32.mrf.mxu3  ;;  %v5462_v20 = vpop.f32.mrf.mxu0 }
 0x37a   : > { %v5630_v42 = vadd.f32 %v8835_v5, %v5594_v10 }
 0x37c   : > { %v5662_v39 = vmax.f32 %v5630_v42, 0.0 }
 0x37d   : > { %v5536_v50 = vpop.f32.mrf.mxu1 }
 0x37e   : > { %v5687_v59 = vpack.c.bf16 %v5662_v39, %v5661_v43  ;;  %v5537_v14 = vadd.f32 %v5536_v50, %v5448_v30  ;;  %v5460_v43 = vadd.f32 %v5459_v8, %v5370_v36  ;;  %v9256_v39 = vld [vmem:[#allocation29_spill] sm:$0xff] }
 0x380   : > { %5575 = vmatmul.bf16.gmra.mxu1 %v5072_v51  ;;  %5803 = vmatmul.bf16.gmra.mxu2 %v5687_v59  ;;  %v5595_v22 = vadd.f32 %v5537_v14, %v9252_v63  ;;  %v5373_v53 = vpop.f32.mrf.mxu3  ;;  %v9257_v59 = vld [vmem:[#allocation28_spill] sm:$0xff] }
 0x381   : > { %v3920_v14 = vadd.f32 %v9258_v34, %v9257_v59 }
 0x382   : > { %v5631_v37 = vadd.f32 %v8835_v5, %v5595_v22 }
 0x384   : > { %v5663_v45 = vmax.f32 %v5631_v37, 0.0 }
 0x385   : > { %v5538_v13 = vpop.f32.mrf.mxu1 }
 0x386   : > { %v5539_v3 = vadd.f32 %v5538_v13, %v5450_v18 }
 0x388   : > { %v5596_v32 = vadd.f32 %v5539_v3, %v3910_v0  ;;  %v5375_v40 = vpop.f32.mrf.mxu3 }
 0x38a   : > { %v5632_v49 = vadd.f32 %v8835_v5, %v5596_v32 }
 0x38c   : > { %v5664_v47 = vmax.f32 %v5632_v49, 0.0 }
 0x38d   : > { %v5541_v31 = vpop.f32.mrf.mxu1 }
 0x38e   : > { %v5688_v46 = vpack.c.bf16 %v5664_v47, %v5663_v45  ;;  %v5542_v11 = vadd.f32 %v5541_v31, %v5453_v15  ;;  %v5463_v45 = vadd.f32 %v5462_v20, %v5373_v53  ;;  %v7258_v47 = vld [vmem:[%s7471_s17 + $0x8] sm:$0xff]  ;;  %v9259_v20 = vld [vmem:[#allocation30_spill] sm:$0xff] }
 0x38f   : > { %v3925_v53 = vadd.f32 %v9259_v20, %v8704_v52 }
 0x390   : > { %5808 = vmatmul.bf16.gmra.mxu2 %v5688_v46  ;;  %v5597_v48 = vadd.f32 %v5542_v11, %v8635_v7  ;;  %v5464_v7 = vpop.f32.mrf.mxu0  ;;  %v5378_v0 = vpop.f32.mrf.mxu3 }
 0x391   : > { %v5465_v4 = vadd.f32 %v5464_v7, %v5375_v40 }
 0x392   : > { %v5633_v33 = vadd.f32 %v8835_v5, %v5597_v48 }
 0x394   : > { %v5665_v28 = vmax.f32 %v5633_v33, 0.0 }
 0x395   : > { %v5543_v54 = vpop.f32.mrf.mxu1 }
 0x396   : > { %v5544_v58 = vadd.f32 %v5543_v54, %v5455_v21 }
 0x398   : > { %v5598_v25 = vadd.f32 %v5544_v58, %v3915_v57  ;;  %v5467_v22 = vpop.f32.mrf.mxu0  ;;  %v5380_v48 = vpop.f32.mrf.mxu3 }
 0x39a   : > { %v5634_v29 = vadd.f32 %v8835_v5, %v5598_v25  ;;  %v7259_v25 = vld [vmem:[%s7471_s17 + $0x10] sm:$0xff] }
 0x39c   : > { %v5666_v44 = vmax.f32 %v5634_v29, 0.0 }
 0x39d   : > { %v5546_v9 = vpop.f32.mrf.mxu1 }
 0x39e   : > { %v5689_v10 = vpack.c.bf16 %v5666_v44, %v5665_v28  ;;  %v5547_v24 = vadd.f32 %v5546_v9, %v5458_v19 }
 0x3a0   : > { %5813 = vmatmul.bf16.gmra.mxu2 %v5689_v10  ;;  %v5599_v50 = vadd.f32 %v5547_v24, %v9256_v39  ;;  %v5469_v21 = vpop.f32.mrf.mxu0  ;;  %v5468_v39 = vadd.f32 %v5467_v22, %v5378_v0  ;;  %v7261_v22 = vld [vmem:[%s7471_s17 + $0x20] sm:$0xff] }
 0x3a2   : > { %v5635_v13 = vadd.f32 %v8835_v5, %v5599_v50  ;;  %v7260_v50 = vld [vmem:[%s7471_s17 + $0x18] sm:$0xff] }
 0x3a3   : > { %v5774_v42 = vpop.f32.mrf.mxu2 }
 0x3a4   : > { %v5775_v51 = vadd.f32 %v8968_v1, %v5774_v42  ;;  %v5667_v32 = vmax.f32 %v5635_v13, 0.0 }
 0x3a5   : > { %v5548_v30 = vpop.f32.mrf.mxu1 }
 0x3a6   : > { %v5854_v18 = vadd.f32 %v7257_v17, %v5775_v51  ;;  %v5549_v63 = vadd.f32 %v5548_v30, %v5460_v43  ;;  %v5383_v43 = vpop.f32.mrf.mxu3  ;;  %v5470_v17 = vadd.f32 %v5469_v21, %v5380_v48  ;;  %v7262_v48 = vld [vmem:[%s7471_s17 + $0x28] sm:$0xff] }
 0x3a8   : > { %v5886_v16 = vmax.f32 %v5854_v18, 0.0  ;;  %v5600_v56 = vadd.f32 %v5549_v63, %v3920_v14  ;;  %v9260_v18 = vld [vmem:[#allocation33_spill] sm:$0xff] }
 0x3aa   : > { %5918 = vst [vmem:[%s8979_s21] sm:$0xff] %v5886_v16  ;;  %v5636_v3 = vadd.f32 %v8835_v5, %v5600_v56  ;;  %v9261_v56 = vld [vmem:[#allocation32_spill] sm:$0xff] }
 0x3ab   : > { %v5776_v37 = vpop.f32.mrf.mxu2 }
 0x3ac   : > { %v5668_v8 = vmax.f32 %v5636_v3, 0.0  ;;  %v5777_v49 = vadd.f32 %v8968_v1, %v5776_v37  ;;  %v3930_v3 = vadd.f32 %v9261_v56, %v8733_v2 }
 0x3ad   : > { %v5551_v36 = vpop.f32.mrf.mxu1 }
 0x3ae   : > { %v5855_v31 = vadd.f32 %v7258_v47, %v5777_v49  ;;  %v5690_v15 = vpack.c.bf16 %v5668_v8, %v5667_v32  ;;  %v5552_v11 = vadd.f32 %v5551_v36, %v5463_v45  ;;  %v5385_v8 = vpop.f32.mrf.mxu3 }
 0x3b0   : > { %v5887_v46 = vmax.f32 %v5855_v31, 0.0  ;;  %5818 = vmatmul.bf16.gmra.mxu2 %v5690_v15  ;;  %v5601_v57 = vadd.f32 %v5552_v11, %v8692_v6  ;;  %v5472_v6 = vpop.f32.mrf.mxu0 }
 0x3b1   : > { %v5473_v21 = vadd.f32 %v5472_v6, %v5383_v43 }
 0x3b2   : > { %5919 = vst [vmem:[%s8979_s21 + $0x8] sm:$0xff] %v5887_v46  ;;  %v5637_v44 = vadd.f32 %v8835_v5, %v5601_v57 }
 0x3b3   : > { %v5779_v54 = vpop.f32.mrf.mxu2 }
 0x3b4   : > { %v5780_v58 = vadd.f32 %v8968_v1, %v5779_v54  ;;  %v5669_v40 = vmax.f32 %v5637_v44, 0.0 }
 0x3b5   : > { %v5553_v33 = vpop.f32.mrf.mxu1 }
 0x3b6   : > { %v5856_v29 = vadd.f32 %v7259_v25, %v5780_v58  ;;  %v5554_v28 = vadd.f32 %v5553_v33, %v5465_v4  ;;  %v5388_v20 = vpop.f32.mrf.mxu3 }
 0x3b8   : > { %v5888_v9 = vmax.f32 %v5856_v29, 0.0  ;;  %v5602_v19 = vadd.f32 %v5554_v28, %v3925_v53  ;;  %v5474_v37 = vpop.f32.mrf.mxu0 }
 0x3b9   : > { %v5475_v25 = vadd.f32 %v5474_v37, %v5385_v8 }
 0x3ba   : > { %5920 = vst [vmem:[%s8979_s21 + $0x10] sm:$0xff] %v5888_v9  ;;  %v5638_v7 = vadd.f32 %v8835_v5, %v5602_v19  ;;  %v3935_v9 = vadd.f32 %v8759_v38, %v8757_v62  ;;  %v7263_v19 = vld [vmem:[%s7471_s17 + $0x30] sm:$0xff] }
 0x3bb   : > { %v5781_v10 = vpop.f32.mrf.mxu2 }
 0x3bc   : > { %v5670_v24 = vmax.f32 %v5638_v7, 0.0  ;;  %v5782_v42 = vadd.f32 %v8968_v1, %v5781_v10 }
 0x3bd   : > { %v5556_v52 = vpop.f32.mrf.mxu1 }
 0x3be   : > { %v5857_v51 = vadd.f32 %v7260_v50, %v5782_v42  ;;  %v5691_v30 = vpack.c.bf16 %v5670_v24, %v5669_v40  ;;  %v5557_v34 = vadd.f32 %v5556_v52, %v5468_v39 }
 0x3c0   : > { %v5889_v59 = vmax.f32 %v5857_v51, 0.0  ;;  %5823 = vmatmul.bf16.gmra.mxu2 %v5691_v30  ;;  %v5603_v63 = vadd.f32 %v5557_v34, %v9260_v18  ;;  %v5477_v57 = vpop.f32.mrf.mxu0  ;;  %v7264_v30 = vld [vmem:[%s7471_s17 + $0x38] sm:$0xff] }
 0x3c1   : > { %v5478_v38 = vadd.f32 %v5477_v57, %v5388_v20 }
 0x3c2   : > { %5921 = vst [vmem:[%s8979_s21 + $0x18] sm:$0xff] %v5889_v59  ;;  %v5639_v49 = vadd.f32 %v8835_v5, %v5603_v63 }
 0x3c3   : > { %v5784_v14 = vpop.f32.mrf.mxu2 }
 0x3c4   : > { %v5785_v13 = vadd.f32 %v8968_v1, %v5784_v14  ;;  %v5671_v15 = vmax.f32 %v5639_v49, 0.0 }
 0x3c5   : > { %v5558_v16 = vpop.f32.mrf.mxu1 }
 0x3c6   : > { %v5858_v0 = vadd.f32 %v7261_v22, %v5785_v13  ;;  %v5559_v32 = vadd.f32 %v5558_v16, %v5470_v17  ;;  %v3940_v22 = vadd.f32 %v8780_v27, %v8778_v26  ;;  %v7266_v26 = vld [vmem:[%s7471_s17 + $0x48] sm:$0xff] }
 0x3c8   : > { %v5890_v36 = vmax.f32 %v5858_v0, 0.0  ;;  %v5604_v45 = vadd.f32 %v5559_v32, %v3930_v3  ;;  %v5479_v42 = vpop.f32.mrf.mxu0  ;;  %v7265_v0 = vld [vmem:[%s7471_s17 + $0x40] sm:$0xff] }
 0x3ca   : > { %5922 = vst [vmem:[%s8979_s21 + $0x20] sm:$0xff] %v5890_v36  ;;  %v5640_v47 = vadd.f32 %v8835_v5, %v5604_v45 }
 0x3cb   : > { %v5786_v31 = vpop.f32.mrf.mxu2 }
 0x3cc   : > { %v5672_v46 = vmax.f32 %v5640_v47, 0.0  ;;  %v5787_v11 = vadd.f32 %v8968_v1, %v5786_v31 }
 0x3cd   : > { %v5561_v2 = vpop.f32.mrf.mxu1 }
 0x3ce   : > { %v5859_v54 = vadd.f32 %v7262_v48, %v5787_v11  ;;  %v5692_v4 = vpack.c.bf16 %v5672_v46, %v5671_v15  ;;  %v5562_v33 = vadd.f32 %v5561_v2, %v5473_v21 }
 0x3d0   : > { %v5891_v58 = vmax.f32 %v5859_v54, 0.0  ;;  %5828 = vmatmul.bf16.gmra.mxu2 %v5692_v4  ;;  %v5605_v29 = vadd.f32 %v5562_v33, %v8745_v41  ;;  %v5390_v41 = vpop.f32.mrf.mxu3  ;;  %v5482_v63 = vpop.f32.mrf.mxu0 }
 0x3d1   : > { %v5480_v13 = vadd.f32 %v5479_v42, %v5390_v41 }
 0x3d2   : > { %5923 = vst [vmem:[%s8979_s21 + $0x28] sm:$0xff] %v5891_v58  ;;  %v5641_v6 = vadd.f32 %v8835_v5, %v5605_v29  ;;  %v3945_v29 = vadd.f32 %v8798_v23, %v8796_v35 }
 0x3d3   : > { %v5789_v53 = vpop.f32.mrf.mxu2 }
 0x3d4   : > { %v5790_v28 = vadd.f32 %v8968_v1, %v5789_v53  ;;  %v5673_v39 = vmax.f32 %v5641_v6, 0.0 }
 0x3d5   : > { %v5563_v44 = vpop.f32.mrf.mxu1 }
 0x3d6   : > { %v5860_v7 = vadd.f32 %v7263_v19, %v5790_v28  ;;  %v5564_v10 = vadd.f32 %v5563_v44, %v5475_v25  ;;  %v7267_v28 = vld [vmem:[%s7471_s17 + $0x50] sm:$0xff] }
 0x3d8   : > { %v5892_v40 = vmax.f32 %v5860_v7, 0.0  ;;  %v5606_v24 = vadd.f32 %v5564_v10, %v3935_v9  ;;  %v5393_v3 = vpop.f32.mrf.mxu3  ;;  %v5484_v48 = vpop.f32.mrf.mxu0 }
 0x3d9   : > { %v5483_v2 = vadd.f32 %v5482_v63, %v5393_v3  ;;  %v7270_v3 = vld [vmem:[%s9145_s4] ss:$0 sm:$0xff] }
 0x3da   : > { %5924 = vst [vmem:[%s8979_s21 + $0x30] sm:$0xff] %v5892_v40  ;;  %v5642_v43 = vadd.f32 %v8835_v5, %v5606_v24 }
 0x3db   : > { %v5791_v52 = vpop.f32.mrf.mxu2 }
 0x3dc   : > { %v5674_v50 = vmax.f32 %v5642_v43, 0.0  ;;  %v5792_v51 = vadd.f32 %v8968_v1, %v5791_v52  ;;  %v7268_v52 = vld [vmem:[%s7471_s17 + $0x58] sm:$0xff] }
 0x3dd   : > { %v5566_v62 = vpop.f32.mrf.mxu1 }
 0x3de   : > { %v5861_v59 = vadd.f32 %v7264_v30, %v5792_v51  ;;  %v5693_v34 = vpack.c.bf16 %v5674_v50, %v5673_v39  ;;  %v5567_v17 = vadd.f32 %v5566_v62, %v5478_v38 }
 0x3e0   : > { %v5893_v14 = vmax.f32 %v5861_v59, 0.0  ;;  %5833 = vmatmul.bf16.gmra.mxu2 %v5693_v34  ;;  %v5607_v16 = vadd.f32 %v5567_v17, %v8766_v61  ;;  %v5395_v54 = vpop.f32.mrf.mxu3  ;;  %v5487_v7 = vpop.f32.mrf.mxu0 }
 0x3e1   : > { %v5485_v33 = vadd.f32 %v5484_v48, %v5395_v54 }
 0x3e2   : > { %5925 = vst [vmem:[%s8979_s21 + $0x38] sm:$0xff] %v5893_v14  ;;  %v5643_v49 = vadd.f32 %v8835_v5, %v5607_v16 }
 0x3e3   : > { %v5794_v18 = vpop.f32.mrf.mxu2 }
 0x3e4   : > { %v5795_v56 = vadd.f32 %v8968_v1, %v5794_v18  ;;  %v5675_v31 = vmax.f32 %v5643_v49, 0.0  ;;  %v9262_v18 = vld [vmem:[#allocation36_spill] sm:$0xff] }
 0x3e5   : > { %v5568_v37 = vpop.f32.mrf.mxu1  ;;  %v3950_v63 = vadd.f32 %v8963_v55, %v9262_v18 }
 0x3e6   : > { %v5862_v32 = vadd.f32 %v7265_v0, %v5795_v56  ;;  %v5569_v8 = vadd.f32 %v5568_v37, %v5480_v13  ;;  %v7269_v13 = vld [vmem:[%s7471_s17 + $0x60] sm:$0xff] }
 0x3e8   : > { %v5894_v36 = vmax.f32 %v5862_v32, 0.0  ;;  %v5608_v45 = vadd.f32 %v5569_v8, %v3940_v22  ;;  %v5398_v19 = vpop.f32.mrf.mxu3  ;;  %v5489_v30 = vpop.f32.mrf.mxu0 }
 0x3e9   : > { %v5488_v43 = vadd.f32 %v5487_v7, %v5398_v19  ;;  %v7276_v7 = vld [vmem:[%s7471_s17 + $0x90] sm:$0xff] }
 0x3ea   : > { %5926 = vst [vmem:[%s8979_s21 + $0x40] sm:$0xff] %v5894_v36  ;;  %v5644_v47 = vadd.f32 %v8835_v5, %v5608_v45  ;;  %v7271_v36 = vld [vmem:[%s7471_s17 + $0x68] sm:$0xff] }
 0x3eb   : > { %v5796_v61 = vpop.f32.mrf.mxu2 }
 0x3ec   : > { %v5676_v15 = vmax.f32 %v5644_v47, 0.0  ;;  %v5797_v46 = vadd.f32 %v8968_v1, %v5796_v61 }
 0x3ed   : > { %v5571_v11 = vpop.f32.mrf.mxu1 }
 0x3ee   : > { %v5863_v27 = vadd.f32 %v7266_v26, %v5797_v46  ;;  %v5694_v21 = vpack.c.bf16 %v5676_v15, %v5675_v31  ;;  %v5572_v57 = vadd.f32 %v5571_v11, %v5483_v2  ;;  %v7272_v46 = vld [vmem:[%s7471_s17 + $0x70] sm:$0xff] }
 0x3f0   : > { %v5895_v4 = vmax.f32 %v5863_v27, 0.0  ;;  %5838 = vmatmul.bf16.gmra.mxu2 %v5694_v21  ;;  %v5609_v20 = vadd.f32 %v5572_v57, %v8787_v12  ;;  %v5400_v38 = vpop.f32.mrf.mxu3  ;;  %v7273_v21 = vld [vmem:[%s7471_s17 + $0x78] sm:$0xff] }
 0x3f2   : > { %5927 = vst [vmem:[%s8979_s21 + $0x48] sm:$0xff] %v5895_v4  ;;  %v5645_v10 = vadd.f32 %v8835_v5, %v5609_v20 }
 0x3f3   : > { %v5799_v58 = vpop.f32.mrf.mxu2 }
 0x3f4   : > { %v5800_v53 = vadd.f32 %v8968_v1, %v5799_v58  ;;  %v5677_v42 = vmax.f32 %v5645_v10, 0.0  ;;  %v7274_v58 = vld [vmem:[%s7471_s17 + $0x80] sm:$0xff] }
 0x3f5   : > { %v5573_v25 = vpop.f32.mrf.mxu1 }
 0x3f6   : > { %v5864_v44 = vadd.f32 %v7267_v28, %v5800_v53  ;;  %v5574_v9 = vadd.f32 %v5573_v25, %v5485_v33 }
 0x3f8   : > { %v5896_v6 = vmax.f32 %v5864_v44, 0.0  ;;  %v5610_v40 = vadd.f32 %v5574_v9, %v3945_v29  ;;  %v7275_v29 = vld [vmem:[%s7471_s17 + $0x88] sm:$0xff] }
 0x3fa   : > { %5928 = vst [vmem:[%s8979_s21 + $0x50] sm:$0xff] %v5896_v6  ;;  %v5646_v12 = vadd.f32 %v8835_v5, %v5610_v40  ;;  %v5490_v5 = vadd.f32 %v5489_v30, %v5400_v38 }
 0x3fb   : > { %v5801_v24 = vpop.f32.mrf.mxu2 }
 0x3fc   : > { %v5678_v41 = vmax.f32 %v5646_v12, 0.0  ;;  %v5802_v35 = vadd.f32 %v8968_v1, %v5801_v24  ;;  %v7277_v24 = vld [vmem:[%s7471_s17 + $0x98] sm:$0xff] }
 0x3fd   : > { %v5576_v23 = vpop.f32.mrf.mxu1 }
 0x3fe   : > { %v5865_v39 = vadd.f32 %v7268_v52, %v5802_v35  ;;  %v5695_v50 = vpack.c.bf16 %v5678_v41, %v5677_v42  ;;  %v5577_v62 = vadd.f32 %v5576_v23, %v5488_v43  ;;  %v7278_v23 = vld [vmem:[%s7471_s17 + $0xa0] sm:$0xff] }
 0x400   : > { %v5897_v51 = vmax.f32 %v5865_v39, 0.0  ;;  %5843 = vmatmul.bf16.gmra.mxu2 %v5695_v50  ;;  %v5611_v34 = vadd.f32 %v5577_v62, %v8805_v60  ;;  %v7279_v62 = vld [vmem:[%s7471_s17 + $0xa8] sm:$0xff] }
 0x402   : > { %5929 = vst [vmem:[%s8979_s21 + $0x58] sm:$0xff] %v5897_v51  ;;  %v5647_v37 = vadd.f32 %v7270_v3, %v5611_v34  ;;  %v7280_v34 = vld [vmem:[%s7471_s17 + $0xb0] sm:$0xff] }
 0x403   : > { %v5804_v59 = vpop.f32.mrf.mxu2 }
 0x404   : > { %v5805_v14 = vadd.f32 %v8968_v1, %v5804_v59  ;;  %v5679_v8 = vmax.f32 %v5647_v37, 0.0 }
 0x405   : > { %v5578_v17 = vpop.f32.mrf.mxu1 }
 0x406   : > { %v5866_v16 = vadd.f32 %v7269_v13, %v5805_v14  ;;  %v5579_v56 = vadd.f32 %v5578_v17, %v5490_v5  ;;  %v7281_v13 = vld [vmem:[%s7471_s17 + $0xb8] sm:$0xff] }
 0x408   : > { %v5898_v22 = vmax.f32 %v5866_v16, 0.0  ;;  %v5612_v0 = vadd.f32 %v5579_v56, %v3950_v63 }
 0x40a   : > { %5930 = vst [vmem:[%s8979_s21 + $0x60] sm:$0xff] %v5898_v22  ;;  %v5648_v60 = vadd.f32 %v7270_v3, %v5612_v0  ;;  %v7282_v22 = vld [vmem:[%s7471_s17 + $0xc0] sm:$0xff] }
 0x40b   : > { %v5806_v32 = vpop.f32.mrf.mxu2 }
 0x40c   : > { %v5680_v49 = vmax.f32 %v5648_v60, 0.0  ;;  %v5807_v55 = vadd.f32 %v8968_v1, %v5806_v32 }
 0x40e   : > { %v5867_v45 = vadd.f32 %v7271_v36, %v5807_v55  ;;  %v5696_v47 = vpack.c.bf16 %v5680_v49, %v5679_v8  ;;  %v7283_v49 = vld [vmem:[%s7471_s17 + $0xc8] sm:$0xff] }
 0x410   : > { %v5899_v61 = vmax.f32 %v5867_v45, 0.0  ;;  %5848 = vmatmul.bf16.gmra.mxu2 %v5696_v47 }
 0x412   : > { %5931 = vst [vmem:[%s8979_s21 + $0x68] sm:$0xff] %v5899_v61  ;;  %v7284_v61 = vld [vmem:[%s7471_s17 + $0xd0] sm:$0xff] }
 0x413   : > { %v5809_v31 = vpop.f32.mrf.mxu2 }
 0x414   : > { %v5810_v15 = vadd.f32 %v8968_v1, %v5809_v31 }
 0x416   : > { %v5868_v11 = vadd.f32 %v7272_v46, %v5810_v15 }
 0x418   : > { %v5900_v2 = vmax.f32 %v5868_v11, 0.0 }
 0x41a   : > { %5932 = vst [vmem:[%s8979_s21 + $0x70] sm:$0xff] %v5900_v2  ;;  %v7285_v2 = vld [vmem:[%s7471_s17 + $0xd8] sm:$0xff] }
 0x41b   : > { %v5811_v26 = vpop.f32.mrf.mxu2 }
 0x41c   : > { %v5812_v27 = vadd.f32 %v8968_v1, %v5811_v26 }
 0x41e   : > { %v5869_v48 = vadd.f32 %v7273_v21, %v5812_v27 }
 0x420   : > { %v5901_v54 = vmax.f32 %v5869_v48, 0.0 }
 0x422   : > { %5933 = vst [vmem:[%s8979_s21 + $0x78] sm:$0xff] %v5901_v54  ;;  %v7286_v54 = vld [vmem:[%s7471_s17 + $0xe0] sm:$0xff] }
 0x423   : > { %v5814_v4 = vpop.f32.mrf.mxu2 }
 0x424   : > { %v5815_v57 = vadd.f32 %v8968_v1, %v5814_v4 }
 0x426   : > { %v5870_v33 = vadd.f32 %v7274_v58, %v5815_v57 }
 0x428   : > { %v5902_v20 = vmax.f32 %v5870_v33, 0.0 }
 0x42a   : > { %5934 = vst [vmem:[%s8979_s21 + $0x80] sm:$0xff] %v5902_v20  ;;  %v7287_v20 = vld [vmem:[%s7471_s17 + $0xe8] sm:$0xff] }
 0x42b   : > { %v5816_v53 = vpop.f32.mrf.mxu2 }
 0x42c   : > { %v5817_v25 = vadd.f32 %v8968_v1, %v5816_v53 }
 0x42e   : > { %v5871_v28 = vadd.f32 %v7275_v29, %v5817_v25 }
 0x430   : > { %v5903_v44 = vmax.f32 %v5871_v28, 0.0 }
 0x432   : > { %5935 = vst [vmem:[%s8979_s21 + $0x88] sm:$0xff] %v5903_v44  ;;  %v7288_v44 = vld [vmem:[%s7471_s17 + $0xf0] sm:$0xff] }
 0x433   : > { %v5819_v9 = vpop.f32.mrf.mxu2 }
 0x434   : > { %v5820_v19 = vadd.f32 %v8968_v1, %v5819_v9 }
 0x436   : > { %v5872_v10 = vadd.f32 %v7276_v7, %v5820_v19 }
 0x438   : > { %v5904_v6 = vmax.f32 %v5872_v10, 0.0 }
 0x43a   : > { %5936 = vst [vmem:[%s8979_s21 + $0x90] sm:$0xff] %v5904_v6  ;;  %v7289_v6 = vld [vmem:[%s7471_s17 + $0xf8] sm:$0xff] }
 0x43b   : > { %v5821_v40 = vpop.f32.mrf.mxu2 }
 0x43c   : > { %v5822_v12 = vadd.f32 %v8968_v1, %v5821_v40 }
 0x43e   : > { %v5873_v42 = vadd.f32 %v7277_v24, %v5822_v12 }
 0x440   : > { %v5905_v43 = vmax.f32 %v5873_v42, 0.0 }
 0x442   : > { %5937 = vst [vmem:[%s8979_s21 + $0x98] sm:$0xff] %v5905_v43 }
 0x443   : > { %v5824_v41 = vpop.f32.mrf.mxu2 }
 0x444   : > { %v5825_v35 = vadd.f32 %v8968_v1, %v5824_v41 }
 0x446   : > { %v5874_v52 = vadd.f32 %v7278_v23, %v5825_v35 }
 0x448   : > { %v5906_v39 = vmax.f32 %v5874_v52, 0.0 }
 0x44a   : > { %5938 = vst [vmem:[%s8979_s21 + $0xa0] sm:$0xff] %v5906_v39 }
 0x44b   : > { %v5826_v50 = vpop.f32.mrf.mxu2 }
 0x44c   : > { %v5827_v51 = vadd.f32 %v8968_v1, %v5826_v50 }
 0x44e   : > { %v5875_v38 = vadd.f32 %v7279_v62, %v5827_v51 }
 0x450   : > { %v5907_v30 = vmax.f32 %v5875_v38, 0.0 }
 0x452   : > { %5939 = vst [vmem:[%s8979_s21 + $0xa8] sm:$0xff] %v5907_v30 }
 0x453   : > { %v5829_v59 = vpop.f32.mrf.mxu2 }
 0x454   : > { %v5830_v5 = vadd.f32 %v8968_v1, %v5829_v59 }
 0x456   : > { %v5876_v14 = vadd.f32 %v7280_v34, %v5830_v5 }
 0x458   : > { %v5908_v17 = vmax.f32 %v5876_v14, 0.0 }
 0x45a   : > { %5940 = vst [vmem:[%s8979_s21 + $0xb0] sm:$0xff] %v5908_v17 }
 0x45b   : > { %v5831_v18 = vpop.f32.mrf.mxu2 }
 0x45c   : > { %v5832_v63 = vadd.f32 %v8968_v1, %v5831_v18 }
 0x45e   : > { %v5877_v16 = vadd.f32 %v7281_v13, %v5832_v63 }
 0x460   : > { %v5909_v56 = vmax.f32 %v5877_v16, 0.0 }
 0x462   : > { %5941 = vst [vmem:[%s8979_s21 + $0xb8] sm:$0xff] %v5909_v56 }
 0x463   : > { %v5834_v3 = vpop.f32.mrf.mxu2 }
 0x464   : > { %v5835_v37 = vadd.f32 %v8968_v1, %v5834_v3 }
 0x466   : > { %v5878_v0 = vadd.f32 %v7282_v22, %v5835_v37 }
 0x468   : > { %v5910_v60 = vmax.f32 %v5878_v0, 0.0 }
 0x46a   : > { %5942 = vst [vmem:[%s8979_s21 + $0xc0] sm:$0xff] %v5910_v60 }
 0x46b   : > { %v5836_v32 = vpop.f32.mrf.mxu2 }
 0x46c   : > { %v5837_v8 = vadd.f32 %v8968_v1, %v5836_v32 }
 0x46e   : > { %v5879_v55 = vadd.f32 %v7283_v49, %v5837_v8 }
 0x470   : > { %v5911_v36 = vmax.f32 %v5879_v55, 0.0 }
 0x472   : > { %5943 = vst [vmem:[%s8979_s21 + $0xc8] sm:$0xff] %v5911_v36 }
 0x473   : > { %v5839_v45 = vpop.f32.mrf.mxu2 }
 0x474   : > { %v5840_v47 = vadd.f32 %v8968_v1, %v5839_v45 }
 0x476   : > { %v5880_v31 = vadd.f32 %v7284_v61, %v5840_v47 }
 0x478   : > { %v5912_v15 = vmax.f32 %v5880_v31, 0.0 }
 0x47a   : > { %5944 = vst [vmem:[%s8979_s21 + $0xd0] sm:$0xff] %v5912_v15 }
 0x47b   : > { %v5841_v46 = vpop.f32.mrf.mxu2 }
 0x47c   : > { %v5842_v11 = vadd.f32 %v8968_v1, %v5841_v46 }
 0x47e   : > { %v5881_v26 = vadd.f32 %v7285_v2, %v5842_v11 }
 0x480   : > { %v5913_v27 = vmax.f32 %v5881_v26, 0.0 }
 0x482   : > { %5945 = vst [vmem:[%s8979_s21 + $0xd8] sm:$0xff] %v5913_v27 }
 0x483   : > { %v5844_v21 = vpop.f32.mrf.mxu2 }
 0x484   : > { %v5845_v48 = vadd.f32 %v8968_v1, %v5844_v21 }
 0x486   : > { %v5882_v4 = vadd.f32 %v7286_v54, %v5845_v48 }
 0x488   : > { %v5914_v57 = vmax.f32 %v5882_v4, 0.0 }
 0x48a   : > { %5946 = vst [vmem:[%s8979_s21 + $0xe0] sm:$0xff] %v5914_v57 }
 0x48b   : > { %v5846_v58 = vpop.f32.mrf.mxu2 }
 0x48c   : > { %v5847_v33 = vadd.f32 %v8968_v1, %v5846_v58 }
 0x48e   : > { %v5883_v53 = vadd.f32 %v7287_v20, %v5847_v33 }
 0x490   : > { %v5915_v25 = vmax.f32 %v5883_v53, 0.0 }
 0x492   : > { %5947 = vst [vmem:[%s8979_s21 + $0xe8] sm:$0xff] %v5915_v25 }
 0x493   : > { %v5849_v29 = vpop.f32.mrf.mxu2 }
 0x494   : > { %v5850_v28 = vadd.f32 %v8968_v1, %v5849_v29 }
 0x496   : > { %v5884_v9 = vadd.f32 %v7288_v44, %v5850_v28 }
 0x498   : > { %v5916_v19 = vmax.f32 %v5884_v9, 0.0 }
 0x49a   : > { %5948 = vst [vmem:[%s8979_s21 + $0xf0] sm:$0xff] %v5916_v19 }
 0x49b   : > { %v5851_v7 = vpop.f32.mrf.mxu2 }
 0x49c   : > { %v5852_v10 = vadd.f32 %v8968_v1, %v5851_v7 }
 0x49e   : > { %v5885_v40 = vadd.f32 %v7289_v6, %v5852_v10 }
 0x4a0   : > { %v5917_v12 = vmax.f32 %v5885_v40, 0.0 }
 0x4a2   : > { %5949 = vst [vmem:[%s8979_s21 + $0xf8] sm:$0xff] %v5917_v12 }
 0x4a3   : > { %7317 = shalt.err (!%p7314_p3)
}
 0x4a4   : > { %s7355_s19 = smov 128   ;;  %s7356_s21 = smov 8  }
 0x4a5   : > { %7178 = dma.vmem_to_hbm [thread:$0]  (%p7435_p5), %s5964_s14, 4096, %s5966_s15, %s5951_s28, %s7355_s19, %s7355_s19, %s7356_s21  }
 0x4a6 PF: > { %p7184_p4 = scmp.ge.s32.totalorder %s7352_s27, 2  ;;  %s5980_s8 = sand.u32 1, %s7340_s24  }
 0x4a7   : > { %s5981_s9 = scalar_lea.sflag [#allocation4], %s5980_s8 }
 0x4a8   : > { %p7181_p7 = pnand %p7184_p4, %p7439_p6 }
 0x4aa   : > { %p7182_p8 = pneg %p7181_p7 }
 0x4ac   : > { %7335 = dma.done.wait (%p7182_p8), %s5981_s9, 4096  }
 0x4ad   : > { %7337 = vsyncadd (%p7182_p8), %s5981_s9, 4294963200  ;;  %p17_p9 = scmp.ge.s32.totalorder %s7422_s30, 4   ;;  %s9263_s24 = smov %s7344_s25 }
 0x4ae   : > { %s9264_s25 = smov %s7348_s26  ;;  %s9265_s26 = smov %s7433_s10 }
 0x4af   : > { %s9266_s27 = smov %s7422_s30  ;;  %19 = sbr.rel (!%p17_p9) target bundleno = 3 (0x3), region = 88 }
 0x4b4   :  { %5987 = vsyncpa [#allocation4], 1 }
 0x4b5   :  { %5989 = vsyncpa [#allocation4 + $0x1], 1 }

</bundles_post_ra>
